<compile_context>
chip_gen: v6e
topology: v6e:2x2x1
jax: 0.10.0
libtpu: 0.0.40
codegen_flags: <defaults>
</compile_context>

<pallas_src>
import numpy as np
import jax
import jax.numpy as jnp
from jax.experimental import pallas as pl
from jax.experimental.pallas import tpu as pltpu

# ---- model config (small but consistent with GMMTransformerModel.__init__) ----
N_COMPONENTS = 2
STATE_SIZE = 3
N_OBSERVATIONS = 4
D_MODEL = 32
NHEAD = 4
NUM_LAYERS = 2
DIM_FF = 64
HEAD_DIM = D_MODEL // NHEAD
N_PARAMETERS = N_COMPONENTS * (1 + STATE_SIZE + STATE_SIZE ** 2)   # 26
N_IN = N_PARAMETERS + N_OBSERVATIONS                               # 30
N_OUT = N_PARAMETERS                                               # 26
N_SCALE = N_COMPONENTS * STATE_SIZE * STATE_SIZE                   # 18
SCALE_START = N_COMPONENTS + N_COMPONENTS * STATE_SIZE             # 8
OUT_PAD = 128                                                      # lane-dense output width
LN_EPS = 1e-5
BATCH = 8                                                          # encoder sequence axis
STACK = NHEAD * BATCH                                              # stacked state rows = 32


# ------------------------- in-kernel helpers (jnp only) -------------------------
def _layernorm(x, gamma, beta):
    # var = E[x^2] - E[x]^2: the two cross-lane reductions are independent,
    # shortening the XLU dependency chain (review item).
    mu = jnp.mean(x, axis=-1, keepdims=True)
    ms = jnp.mean(x * x, axis=-1, keepdims=True)
    var = jnp.maximum(ms - mu * mu, 0.0)
    return (x - mu) * jax.lax.rsqrt(var + LN_EPS) * gamma + beta


def _gelu(x):
    # TODO(synk): PyTorch F.gelu default is the exact erf form; Mosaic has no erf
    # lowering, so the tanh approximation is used here (max abs error ~1e-3).
    c = 0.7978845608028654  # sqrt(2/pi)
    return 0.5 * x * (1.0 + jnp.tanh(c * (x + 0.044715 * x * x * x)))


def _softplus(x):
    # Numerically stable softplus: max(x,0) + log(1 + exp(-|x|)).
    return jnp.maximum(x, 0.0) + jnp.log(1.0 + jnp.exp(-jnp.abs(x)))


# --------------------------------- the kernel ---------------------------------
def gmm_transformer_kernel(
    x_ref,
    w_in_ref, b_in_ref,
    wqkv_ref, bqkv_ref, wo_ref, bo_ref,
    w1_ref, b1_ref, w2_ref, b2_ref,
    g1_ref, be1_ref, g2_ref, be2_ref,
    w_out_ref, b_out_ref,
    ga_ref, gb_ref,
    attn_mask_ref, diag_mask_ref, lower_mask_ref,
    out_ref,
):
    x = x_ref[...]                                    # (B, N_IN)
    B = x.shape[0]

    # feedforward_in, produced directly in the stacked (NHEAD*B, D_MODEL) layout:
    # 4 independent small dots + sublane-aligned concat (no lane slices/rotates).
    state = jnp.concatenate(
        [jnp.dot(x, w_in_ref[n], preferred_element_type=jnp.float32) + b_in_ref[n]
         for n in range(NHEAD)], axis=0)              # (32, 32)

    attn_mask = attn_mask_ref[...]                    # (32, 32) additive block-diag mask

    for l in range(NUM_LAYERS):
        # Load each per-layer parameter exactly once.
        wqkv, bqkv = wqkv_ref[l], bqkv_ref[l]
        wo, bo = wo_ref[l], bo_ref[l]
        w1, b1 = w1_ref[l], b1_ref[l]
        w2, b2 = w2_ref[l], b2_ref[l]
        g1, be1 = g1_ref[l], be1_ref[l]
        g2, be2 = g2_ref[l], be2_ref[l]

        # Fused Q/K/V projection (1/sqrt(head_dim) folded into packed Q weights/bias).
        qkv = jnp.dot(state, wqkv, preferred_element_type=jnp.float32) + bqkv   # (32, 96)

        # Attention: per head, batched over the 4 stacked tokens at once.  The
        # block-diagonal mask keeps each token's B rows attending only within
        # their own group; out_proj is folded per head so no concat of head
        # outputs is ever built.  The 4 head chains are data-independent (ILP).
        parts = []
        for h in range(NHEAD):
            cq = h * HEAD_DIM
            q_h = qkv[:, cq:cq + HEAD_DIM]                                      # (32, 8)
            k_h = qkv[:, D_MODEL + cq:D_MODEL + cq + HEAD_DIM]
            v_h = qkv[:, 2 * D_MODEL + cq:2 * D_MODEL + cq + HEAD_DIM]
            s_h = jax.lax.dot_general(                                          # q @ k^T
                q_h, k_h, (((1,), (1,)), ((), ())),
                preferred_element_type=jnp.float32) + attn_mask                 # (32, 32)
            m_h = jnp.max(s_h, axis=-1, keepdims=True)
            e_h = jnp.exp(s_h - m_h)                  # masked lanes -> exactly 0
            p_h = e_h * pl.reciprocal(jnp.sum(e_h, axis=-1, keepdims=True), approx=True)
            o_h = jnp.dot(p_h, v_h, preferred_element_type=jnp.float32)         # (32, 8)
            parts.append(jnp.dot(o_h, wo[cq:cq + HEAD_DIM, :],
                                 preferred_element_type=jnp.float32))           # (32, 32)
        attn = parts[0]
        for part in parts[1:]:
            attn = attn + part
        attn = attn + bo

        state = _layernorm(state + attn, g1, be1)                               # residual + norm1
        ff = _gelu(jnp.dot(state, w1, preferred_element_type=jnp.float32) + b1)
        ff = jnp.dot(ff, w2, preferred_element_type=jnp.float32) + b2
        state = _layernorm(state + ff, g2, be2)                                 # residual + norm2

    # x[..., -1, :] -> last token (sublane-aligned slice), then feedforward_out.
    last = state[(NHEAD - 1) * B:NHEAD * B]                                     # (B, D_MODEL)
    # w_out is zero-padded to 128 lanes in the wrapper -> y[:, N_OUT:] is exactly 0.
    y = jnp.dot(last, w_out_ref[...], preferred_element_type=jnp.float32) + b_out_ref[...]   # (B, 128)

    # ---------------- GMM head, fully vectorized (no slivers / concats) ----------------
    # TODO(synk): `PositiveDefinite` class body was not provided; standard
    # construction assumed: L = tril(raw) with softplus on the diagonal, out = L @ L^T.
    raw = y[:, SCALE_START:SCALE_START + N_SCALE]                               # (B, 18)
    lmat = diag_mask_ref[...] * _softplus(raw) + lower_mask_ref[...] * raw      # L entries, upper = 0

    # L L^T for every (batch row, component) via two constant gather matmuls:
    #   U[:, k*128 + d(c,i,j)] = L[c,i,k],  V[:, k*128 + d(c,i,j)] = L[c,j,k],
    # so scale = sum_k U_k * V_k lands directly in output lanes 8..25.
    u = jnp.dot(lmat, ga_ref[...], preferred_element_type=jnp.float32)          # (B, 384)
    v = jnp.dot(lmat, gb_ref[...], preferred_element_type=jnp.float32)          # (B, 384)
    scale128 = (u[:, 0:OUT_PAD] * v[:, 0:OUT_PAD]
                + u[:, OUT_PAD:2 * OUT_PAD] * v[:, OUT_PAD:2 * OUT_PAD]
                + u[:, 2 * OUT_PAD:3 * OUT_PAD] * v[:, 2 * OUT_PAD:3 * OUT_PAD])  # (B, 128)

    # Mixture weights: 2-lane softmax computed in the full 128-lane frame (exact divide).
    lane = jax.lax.broadcasted_iota(jnp.int32, (B, OUT_PAD), 1)
    wl = jnp.where(lane < N_COMPONENTS, y, -1e30)
    ew = jnp.exp(wl - jnp.max(wl, axis=-1, keepdims=True))
    phi_w = ew / jnp.sum(ew, axis=-1, keepdims=True)

    # Final assembly: start from y and overwrite only the changed lanes; lanes 2..7
    # (means) and 26..127 (zero pad) are already correct in y.  Single lane-dense store.
    out_ref[...] = jnp.where(
        lane < N_COMPONENTS, phi_w,
        jnp.where((lane >= SCALE_START) & (lane < N_OUT), scale128, y))


# ------------------------------ wrapper / params ------------------------------
def init_params(key):
    kit = iter(jax.random.split(key, 64))
    w = lambda *shape: jax.random.normal(next(kit), shape, jnp.float32) * 0.1
    b = lambda *shape: jax.random.normal(next(kit), shape, jnp.float32) * 0.02

    # PyTorch-shaped parameters (deterministic synthetic init; the module's
    # init_weights() zeroing of out_proj/linear2 is omitted so the full compute
    # path is numerically exercised).
    ffwd_in_w = w(D_MODEL * NHEAD, N_IN)             # nn.Linear(n_in, d_model*nhead).weight
    ffwd_in_b = b(D_MODEL * NHEAD)
    layers = []
    for _ in range(NUM_LAYERS):
        layers.append(dict(
            in_proj_w=w(3 * D_MODEL, D_MODEL), in_proj_b=b(3 * D_MODEL),
            out_proj_w=w(D_MODEL, D_MODEL), out_proj_b=b(D_MODEL),
            lin1_w=w(DIM_FF, D_MODEL), lin1_b=b(DIM_FF),
            lin2_w=w(D_MODEL, DIM_FF), lin2_b=b(D_MODEL),
            norm1_w=jnp.ones((D_MODEL,), jnp.float32), norm1_b=jnp.zeros((D_MODEL,), jnp.float32),
            norm2_w=jnp.ones((D_MODEL,), jnp.float32), norm2_b=jnp.zeros((D_MODEL,), jnp.float32),
        ))
    ffwd_out_w = w(N_OUT, D_MODEL)                   # nn.Linear(d_model, n_out).weight
    ffwd_out_b = b(N_OUT)

    # --- reorganize into the packed kernel layout (wrapper glue only) ---
    scale = 1.0 / (HEAD_DIM ** 0.5)

    def pack_qkv_w(lyr):
        W = lyr["in_proj_w"]
        return jnp.concatenate([W[0:D_MODEL].T * scale,          # fold 1/sqrt(head_dim) into Q
                                W[D_MODEL:2 * D_MODEL].T,
                                W[2 * D_MODEL:3 * D_MODEL].T], axis=1)          # (32, 96)

    def pack_qkv_b(lyr):
        bb = lyr["in_proj_b"]
        return jnp.concatenate([bb[0:D_MODEL] * scale,
                                bb[D_MODEL:2 * D_MODEL],
                                bb[2 * D_MODEL:3 * D_MODEL]]).reshape(1, 3 * D_MODEL)

    stack = lambda f: jnp.stack([f(lyr) for lyr in layers])
    p = {}
    # feedforward_in split per token block n (rows n*D_MODEL:(n+1)*D_MODEL of the weight).
    p["w_in"] = jnp.stack([ffwd_in_w[n * D_MODEL:(n + 1) * D_MODEL].T
                           for n in range(NHEAD)])                               # (4, 30, 32)
    p["b_in"] = jnp.stack([ffwd_in_b[n * D_MODEL:(n + 1) * D_MODEL].reshape(1, D_MODEL)
                           for n in range(NHEAD)])                               # (4, 1, 32)
    p["wqkv"] = stack(pack_qkv_w)                    # (L, 32, 96)
    p["bqkv"] = stack(pack_qkv_b)                    # (L, 1, 96)
    p["wo"] = stack(lambda l: l["out_proj_w"].T)     # (L, 32, 32)
    p["bo"] = stack(lambda l: l["out_proj_b"].reshape(1, D_MODEL))
    p["w1"] = stack(lambda l: l["lin1_w"].T)         # (L, 32, 64)
    p["b1"] = stack(lambda l: l["lin1_b"].reshape(1, DIM_FF))
    p["w2"] = stack(lambda l: l["lin2_w"].T)         # (L, 64, 32)
    p["b2"] = stack(lambda l: l["lin2_b"].reshape(1, D_MODEL))
    p["g1"] = stack(lambda l: l["norm1_w"].reshape(1, D_MODEL))
    p["be1"] = stack(lambda l: l["norm1_b"].reshape(1, D_MODEL))
    p["g2"] = stack(lambda l: l["norm2_w"].reshape(1, D_MODEL))
    p["be2"] = stack(lambda l: l["norm2_b"].reshape(1, D_MODEL))
    # feedforward_out, zero-padded to 128 output lanes for a lane-dense store.
    p["w_out"] = jnp.zeros((D_MODEL, OUT_PAD), jnp.float32).at[:, :N_OUT].set(ffwd_out_w.T)
    p["b_out"] = jnp.zeros((1, OUT_PAD), jnp.float32).at[:, :N_OUT].set(ffwd_out_b)

    # Constant gather matrices + masks for the vectorized GMM scale head and the
    # block-diagonal attention mask (all tiny, built once on the host).
    ga = np.zeros((N_SCALE, 3 * OUT_PAD), np.float32)
    gb = np.zeros((N_SCALE, 3 * OUT_PAD), np.float32)
    diag = np.zeros((1, N_SCALE), np.float32)
    lower = np.zeros((1, N_SCALE), np.float32)
    ss = STATE_SIZE * STATE_SIZE
    for c in range(N_COMPONENTS):
        for i in range(STATE_SIZE):
            for j in range(STATE_SIZE):
                src = c * ss + i * STATE_SIZE + j
                if i == j:
                    diag[0, src] = 1.0
                elif j < i:
                    lower[0, src] = 1.0
                d = SCALE_START + c * ss + i * STATE_SIZE + j
                for k in range(STATE_SIZE):
                    ga[c * ss + i * STATE_SIZE + k, k * OUT_PAD + d] = 1.0
                    gb[c * ss + j * STATE_SIZE + k, k * OUT_PAD + d] = 1.0
    p["ga"] = jnp.asarray(ga)
    p["gb"] = jnp.asarray(gb)
    p["diag_mask"] = jnp.asarray(diag)
    p["lower_mask"] = jnp.asarray(lower)

    blk = np.arange(STACK) // BATCH
    p["attn_mask"] = jnp.asarray(
        np.where(blk[:, None] == blk[None, :], 0.0, -1e30).astype(np.float32))   # (32, 32)
    return p


@jax.jit
def gmm_transformer_forward(x, p):
    # x: (B, N_IN) like the PyTorch module, or (G, B, N_IN) for G independent groups
    # (equivalent to vmapping the module); G maps to a parallel 1-D grid.
    squeeze = x.ndim == 2
    if squeeze:
        x = x[None]
    G, B, _ = x.shape

    weights = (p["w_in"], p["b_in"], p["wqkv"], p["bqkv"], p["wo"], p["bo"],
               p["w1"], p["b1"], p["w2"], p["b2"],
               p["g1"], p["be1"], p["g2"], p["be2"],
               p["w_out"], p["b_out"], p["ga"], p["gb"],
               p["attn_mask"], p["diag_mask"], p["lower_mask"])

    def full_spec(a):
        nd = a.ndim
        return pl.BlockSpec(a.shape, lambda g: (0,) * nd)   # resident across all grid steps

    out_padded = pl.pallas_call(
        gmm_transformer_kernel,
        out_shape=jax.ShapeDtypeStruct((G, B, OUT_PAD), jnp.float32),
        grid=(G,),
        in_specs=[pl.BlockSpec((None, B, N_IN), lambda g: (g, 0, 0))]
                 + [full_spec(a) for a in weights],
        out_specs=pl.BlockSpec((None, B, OUT_PAD), lambda g: (g, 0, 0)),
        compiler_params=pltpu.CompilerParams(dimension_semantics=("parallel",)),
    )(x, *weights)

    out = out_padded[..., :N_OUT]                    # slice the lane padding off outside
    return out[0] if squeeze else out


if __name__ == "__main__":
    key = jax.random.PRNGKey(0)
    kx, kg, kp = jax.random.split(key, 3)
    params = init_params(kp)

    # 2-D input (batch, n_in) = (8, 30): exactly what the PyTorch module's forward sees.
    x = jax.random.normal(kx, (BATCH, N_IN), jnp.float32)
    out = jax.block_until_ready(gmm_transformer_forward(x, params))
    assert out.shape == (BATCH, N_OUT)
    assert bool(jnp.all(jnp.isfinite(out)))
    assert bool(jnp.allclose(out[:, :N_COMPONENTS].sum(-1), 1.0, atol=1e-3))  # mixture weights

    # Independent groups (vmap of the module) exercise the parallel grid
    # (second TensorCore on v7x, launch/DMA amortization on v5e/v6e).
    xg = jax.random.normal(kg, (4, BATCH, N_IN), jnp.float32)
    outg = jax.block_until_ready(gmm_transformer_forward(xg, params))
    assert outg.shape == (4, BATCH, N_OUT)
    assert bool(jnp.all(jnp.isfinite(outg)))

    print("KERNEL_OK")
</pallas_src>

<mosaic_0001>
module attributes {stable_mosaic.version = 11 : i64} {
  func.func @gmm_transformer_kernel(%arg0: i32, %arg1: memref<1x8x30xf32, #tpu.memory_space<vmem>>, %arg2: memref<4x30x32xf32, #tpu.memory_space<vmem>>, %arg3: memref<4x1x32xf32, #tpu.memory_space<vmem>>, %arg4: memref<2x32x96xf32, #tpu.memory_space<vmem>>, %arg5: memref<2x1x96xf32, #tpu.memory_space<vmem>>, %arg6: memref<2x32x32xf32, #tpu.memory_space<vmem>>, %arg7: memref<2x1x32xf32, #tpu.memory_space<vmem>>, %arg8: memref<2x32x64xf32, #tpu.memory_space<vmem>>, %arg9: memref<2x1x64xf32, #tpu.memory_space<vmem>>, %arg10: memref<2x64x32xf32, #tpu.memory_space<vmem>>, %arg11: memref<2x1x32xf32, #tpu.memory_space<vmem>>, %arg12: memref<2x1x32xf32, #tpu.memory_space<vmem>>, %arg13: memref<2x1x32xf32, #tpu.memory_space<vmem>>, %arg14: memref<2x1x32xf32, #tpu.memory_space<vmem>>, %arg15: memref<2x1x32xf32, #tpu.memory_space<vmem>>, %arg16: memref<32x128xf32, #tpu.memory_space<vmem>>, %arg17: memref<1x128xf32, #tpu.memory_space<vmem>>, %arg18: memref<18x384xf32, #tpu.memory_space<vmem>>, %arg19: memref<18x384xf32, #tpu.memory_space<vmem>>, %arg20: memref<32x32xf32, #tpu.memory_space<vmem>>, %arg21: memref<1x18xf32, #tpu.memory_space<vmem>>, %arg22: memref<1x18xf32, #tpu.memory_space<vmem>>, %arg23: memref<1x8x128xf32, #tpu.memory_space<vmem>>) attributes {dimension_semantics = [#tpu.dimension_semantics<parallel>], iteration_bounds = array<i64: 1>, scalar_prefetch = 0 : i64, scratch_operands = 0 : i64, tpu.core_type = #tpu.core_type<tc>, window_params = [{transform_indices = @transform_0, window_bounds = array<i64: 1, 8, 30>}, {pipeline_mode = #tpu.pipeline_mode<synchronous>, transform_indices = @transform_1, window_bounds = array<i64: 4, 30, 32>}, {pipeline_mode = #tpu.pipeline_mode<synchronous>, transform_indices = @transform_2, window_bounds = array<i64: 4, 1, 32>}, {pipeline_mode = #tpu.pipeline_mode<synchronous>, transform_indices = @transform_3, window_bounds = array<i64: 2, 32, 96>}, {pipeline_mode = #tpu.pipeline_mode<synchronous>, transform_indices = @transform_4, window_bounds = array<i64: 2, 1, 96>}, {pipeline_mode = #tpu.pipeline_mode<synchronous>, transform_indices = @transform_5, window_bounds = array<i64: 2, 32, 32>}, {pipeline_mode = #tpu.pipeline_mode<synchronous>, transform_indices = @transform_6, window_bounds = array<i64: 2, 1, 32>}, {pipeline_mode = #tpu.pipeline_mode<synchronous>, transform_indices = @transform_7, window_bounds = array<i64: 2, 32, 64>}, {pipeline_mode = #tpu.pipeline_mode<synchronous>, transform_indices = @transform_8, window_bounds = array<i64: 2, 1, 64>}, {pipeline_mode = #tpu.pipeline_mode<synchronous>, transform_indices = @transform_9, window_bounds = array<i64: 2, 64, 32>}, {pipeline_mode = #tpu.pipeline_mode<synchronous>, transform_indices = @transform_10, window_bounds = array<i64: 2, 1, 32>}, {pipeline_mode = #tpu.pipeline_mode<synchronous>, transform_indices = @transform_11, window_bounds = array<i64: 2, 1, 32>}, {pipeline_mode = #tpu.pipeline_mode<synchronous>, transform_indices = @transform_12, window_bounds = array<i64: 2, 1, 32>}, {pipeline_mode = #tpu.pipeline_mode<synchronous>, transform_indices = @transform_13, window_bounds = array<i64: 2, 1, 32>}, {pipeline_mode = #tpu.pipeline_mode<synchronous>, transform_indices = @transform_14, window_bounds = array<i64: 2, 1, 32>}, {pipeline_mode = #tpu.pipeline_mode<synchronous>, transform_indices = @transform_15, window_bounds = array<i64: 32, 128>}, {pipeline_mode = #tpu.pipeline_mode<synchronous>, transform_indices = @transform_16, window_bounds = array<i64: 1, 128>}, {pipeline_mode = #tpu.pipeline_mode<synchronous>, transform_indices = @transform_17, window_bounds = array<i64: 18, 384>}, {pipeline_mode = #tpu.pipeline_mode<synchronous>, transform_indices = @transform_18, window_bounds = array<i64: 18, 384>}, {pipeline_mode = #tpu.pipeline_mode<synchronous>, transform_indices = @transform_19, window_bounds = array<i64: 32, 32>}, {pipeline_mode = #tpu.pipeline_mode<synchronous>, transform_indices = @transform_20, window_bounds = array<i64: 1, 18>}, {pipeline_mode = #tpu.pipeline_mode<synchronous>, transform_indices = @transform_21, window_bounds = array<i64: 1, 18>}, {transform_indices = @transform_22, window_bounds = array<i64: 1, 8, 128>}]} {
    %c0 = arith.constant 0 : index
    %c0_0 = arith.constant 0 : index
    %c0_1 = arith.constant 0 : index
    %0 = vector.load %arg1[%c0, %c0_0, %c0_1] : memref<1x8x30xf32, #tpu.memory_space<vmem>>, vector<1x8x30xf32>
    %1 = vector.shape_cast %0 : vector<1x8x30xf32> to vector<8x30xf32>
    %c0_2 = arith.constant 0 : index
    %c0_3 = arith.constant 0 : index
    %c0_4 = arith.constant 0 : index
    %2 = vector.load %arg2[%c0_2, %c0_3, %c0_4] : memref<4x30x32xf32, #tpu.memory_space<vmem>>, vector<1x30x32xf32>
    %3 = vector.shape_cast %2 : vector<1x30x32xf32> to vector<30x32xf32>
    %cst = arith.constant dense<0.000000e+00> : vector<8x32xf32>
    %4 = tpu.matmul %1, %3, %cst {dimension_numbers = #tpu.dot_dimension_numbers<[1], [0], [0], [1], [0, 0, 1, 1], [], []>} : vector<8x30xf32>, vector<30x32xf32>, vector<8x32xf32> -> vector<8x32xf32>
    %c0_5 = arith.constant 0 : index
    %c0_6 = arith.constant 0 : index
    %c0_7 = arith.constant 0 : index
    %5 = vector.load %arg3[%c0_5, %c0_6, %c0_7] : memref<4x1x32xf32, #tpu.memory_space<vmem>>, vector<1x1x32xf32>
    %6 = vector.shape_cast %5 : vector<1x1x32xf32> to vector<1x32xf32>
    %7 = vector.broadcast %6 : vector<1x32xf32> to vector<8x32xf32>
    %8 = arith.addf %4, %7 : vector<8x32xf32>
    %c1 = arith.constant 1 : index
    %c0_8 = arith.constant 0 : index
    %c0_9 = arith.constant 0 : index
    %9 = vector.load %arg2[%c1, %c0_8, %c0_9] : memref<4x30x32xf32, #tpu.memory_space<vmem>>, vector<1x30x32xf32>
    %10 = vector.shape_cast %9 : vector<1x30x32xf32> to vector<30x32xf32>
    %cst_10 = arith.constant dense<0.000000e+00> : vector<8x32xf32>
    %11 = tpu.matmul %1, %10, %cst_10 {dimension_numbers = #tpu.dot_dimension_numbers<[1], [0], [0], [1], [0, 0, 1, 1], [], []>} : vector<8x30xf32>, vector<30x32xf32>, vector<8x32xf32> -> vector<8x32xf32>
    %c1_11 = arith.constant 1 : index
    %c0_12 = arith.constant 0 : index
    %c0_13 = arith.constant 0 : index
    %12 = vector.load %arg3[%c1_11, %c0_12, %c0_13] : memref<4x1x32xf32, #tpu.memory_space<vmem>>, vector<1x1x32xf32>
    %13 = vector.shape_cast %12 : vector<1x1x32xf32> to vector<1x32xf32>
    %14 = vector.broadcast %13 : vector<1x32xf32> to vector<8x32xf32>
    %15 = arith.addf %11, %14 : vector<8x32xf32>
    %c2 = arith.constant 2 : index
    %c0_14 = arith.constant 0 : index
    %c0_15 = arith.constant 0 : index
    %16 = vector.load %arg2[%c2, %c0_14, %c0_15] : memref<4x30x32xf32, #tpu.memory_space<vmem>>, vector<1x30x32xf32>
    %17 = vector.shape_cast %16 : vector<1x30x32xf32> to vector<30x32xf32>
    %cst_16 = arith.constant dense<0.000000e+00> : vector<8x32xf32>
    %18 = tpu.matmul %1, %17, %cst_16 {dimension_numbers = #tpu.dot_dimension_numbers<[1], [0], [0], [1], [0, 0, 1, 1], [], []>} : vector<8x30xf32>, vector<30x32xf32>, vector<8x32xf32> -> vector<8x32xf32>
    %c2_17 = arith.constant 2 : index
    %c0_18 = arith.constant 0 : index
    %c0_19 = arith.constant 0 : index
    %19 = vector.load %arg3[%c2_17, %c0_18, %c0_19] : memref<4x1x32xf32, #tpu.memory_space<vmem>>, vector<1x1x32xf32>
    %20 = vector.shape_cast %19 : vector<1x1x32xf32> to vector<1x32xf32>
    %21 = vector.broadcast %20 : vector<1x32xf32> to vector<8x32xf32>
    %22 = arith.addf %18, %21 : vector<8x32xf32>
    %c3 = arith.constant 3 : index
    %c0_20 = arith.constant 0 : index
    %c0_21 = arith.constant 0 : index
    %23 = vector.load %arg2[%c3, %c0_20, %c0_21] : memref<4x30x32xf32, #tpu.memory_space<vmem>>, vector<1x30x32xf32>
    %24 = vector.shape_cast %23 : vector<1x30x32xf32> to vector<30x32xf32>
    %cst_22 = arith.constant dense<0.000000e+00> : vector<8x32xf32>
    %25 = tpu.matmul %1, %24, %cst_22 {dimension_numbers = #tpu.dot_dimension_numbers<[1], [0], [0], [1], [0, 0, 1, 1], [], []>} : vector<8x30xf32>, vector<30x32xf32>, vector<8x32xf32> -> vector<8x32xf32>
    %c3_23 = arith.constant 3 : index
    %c0_24 = arith.constant 0 : index
    %c0_25 = arith.constant 0 : index
    %26 = vector.load %arg3[%c3_23, %c0_24, %c0_25] : memref<4x1x32xf32, #tpu.memory_space<vmem>>, vector<1x1x32xf32>
    %27 = vector.shape_cast %26 : vector<1x1x32xf32> to vector<1x32xf32>
    %28 = vector.broadcast %27 : vector<1x32xf32> to vector<8x32xf32>
    %29 = arith.addf %25, %28 : vector<8x32xf32>
    %30 = tpu.concatenate %8, %15, %22, %29 in 0 : vector<8x32xf32>, vector<8x32xf32>, vector<8x32xf32>, vector<8x32xf32> -> vector<32x32xf32>
    %c0_26 = arith.constant 0 : index
    %c0_27 = arith.constant 0 : index
    %31 = vector.load %arg20[%c0_26, %c0_27] : memref<32x32xf32, #tpu.memory_space<vmem>>, vector<32x32xf32>
    %c0_28 = arith.constant 0 : index
    %c0_29 = arith.constant 0 : index
    %c0_30 = arith.constant 0 : index
    %32 = vector.load %arg4[%c0_28, %c0_29, %c0_30] : memref<2x32x96xf32, #tpu.memory_space<vmem>>, vector<1x32x96xf32>
    %33 = vector.shape_cast %32 : vector<1x32x96xf32> to vector<32x96xf32>
    %c0_31 = arith.constant 0 : index
    %c0_32 = arith.constant 0 : index
    %c0_33 = arith.constant 0 : index
    %34 = vector.load %arg5[%c0_31, %c0_32, %c0_33] : memref<2x1x96xf32, #tpu.memory_space<vmem>>, vector<1x1x96xf32>
    %35 = vector.shape_cast %34 : vector<1x1x96xf32> to vector<1x96xf32>
    %c0_34 = arith.constant 0 : index
    %c0_35 = arith.constant 0 : index
    %c0_36 = arith.constant 0 : index
    %36 = vector.load %arg6[%c0_34, %c0_35, %c0_36] : memref<2x32x32xf32, #tpu.memory_space<vmem>>, vector<1x32x32xf32>
    %37 = vector.shape_cast %36 : vector<1x32x32xf32> to vector<32x32xf32>
    %c0_37 = arith.constant 0 : index
    %c0_38 = arith.constant 0 : index
    %c0_39 = arith.constant 0 : index
    %38 = vector.load %arg7[%c0_37, %c0_38, %c0_39] : memref<2x1x32xf32, #tpu.memory_space<vmem>>, vector<1x1x32xf32>
    %39 = vector.shape_cast %38 : vector<1x1x32xf32> to vector<1x32xf32>
    %c0_40 = arith.constant 0 : index
    %c0_41 = arith.constant 0 : index
    %c0_42 = arith.constant 0 : index
    %40 = vector.load %arg8[%c0_40, %c0_41, %c0_42] : memref<2x32x64xf32, #tpu.memory_space<vmem>>, vector<1x32x64xf32>
    %41 = vector.shape_cast %40 : vector<1x32x64xf32> to vector<32x64xf32>
    %c0_43 = arith.constant 0 : index
    %c0_44 = arith.constant 0 : index
    %c0_45 = arith.constant 0 : index
    %42 = vector.load %arg9[%c0_43, %c0_44, %c0_45] : memref<2x1x64xf32, #tpu.memory_space<vmem>>, vector<1x1x64xf32>
    %43 = vector.shape_cast %42 : vector<1x1x64xf32> to vector<1x64xf32>
    %c0_46 = arith.constant 0 : index
    %c0_47 = arith.constant 0 : index
    %c0_48 = arith.constant 0 : index
    %44 = vector.load %arg10[%c0_46, %c0_47, %c0_48] : memref<2x64x32xf32, #tpu.memory_space<vmem>>, vector<1x64x32xf32>
    %45 = vector.shape_cast %44 : vector<1x64x32xf32> to vector<64x32xf32>
    %c0_49 = arith.constant 0 : index
    %c0_50 = arith.constant 0 : index
    %c0_51 = arith.constant 0 : index
    %46 = vector.load %arg11[%c0_49, %c0_50, %c0_51] : memref<2x1x32xf32, #tpu.memory_space<vmem>>, vector<1x1x32xf32>
    %47 = vector.shape_cast %46 : vector<1x1x32xf32> to vector<1x32xf32>
    %c0_52 = arith.constant 0 : index
    %c0_53 = arith.constant 0 : index
    %c0_54 = arith.constant 0 : index
    %48 = vector.load %arg12[%c0_52, %c0_53, %c0_54] : memref<2x1x32xf32, #tpu.memory_space<vmem>>, vector<1x1x32xf32>
    %49 = vector.shape_cast %48 : vector<1x1x32xf32> to vector<1x32xf32>
    %c0_55 = arith.constant 0 : index
    %c0_56 = arith.constant 0 : index
    %c0_57 = arith.constant 0 : index
    %50 = vector.load %arg13[%c0_55, %c0_56, %c0_57] : memref<2x1x32xf32, #tpu.memory_space<vmem>>, vector<1x1x32xf32>
    %51 = vector.shape_cast %50 : vector<1x1x32xf32> to vector<1x32xf32>
    %c0_58 = arith.constant 0 : index
    %c0_59 = arith.constant 0 : index
    %c0_60 = arith.constant 0 : index
    %52 = vector.load %arg14[%c0_58, %c0_59, %c0_60] : memref<2x1x32xf32, #tpu.memory_space<vmem>>, vector<1x1x32xf32>
    %53 = vector.shape_cast %52 : vector<1x1x32xf32> to vector<1x32xf32>
    %c0_61 = arith.constant 0 : index
    %c0_62 = arith.constant 0 : index
    %c0_63 = arith.constant 0 : index
    %54 = vector.load %arg15[%c0_61, %c0_62, %c0_63] : memref<2x1x32xf32, #tpu.memory_space<vmem>>, vector<1x1x32xf32>
    %55 = vector.shape_cast %54 : vector<1x1x32xf32> to vector<1x32xf32>
    %cst_64 = arith.constant dense<0.000000e+00> : vector<32x96xf32>
    %56 = tpu.matmul %30, %33, %cst_64 {dimension_numbers = #tpu.dot_dimension_numbers<[1], [0], [0], [1], [0, 0, 1, 1], [], []>} : vector<32x32xf32>, vector<32x96xf32>, vector<32x96xf32> -> vector<32x96xf32>
    %57 = vector.broadcast %35 : vector<1x96xf32> to vector<32x96xf32>
    %58 = arith.addf %56, %57 : vector<32x96xf32>
    %59 = vector.extract_strided_slice %58 {offsets = [0, 0], sizes = [32, 8], strides = [1, 1]} : vector<32x96xf32> to vector<32x8xf32>
    %60 = vector.extract_strided_slice %58 {offsets = [0, 32], sizes = [32, 8], strides = [1, 1]} : vector<32x96xf32> to vector<32x8xf32>
    %61 = vector.extract_strided_slice %58 {offsets = [0, 64], sizes = [32, 8], strides = [1, 1]} : vector<32x96xf32> to vector<32x8xf32>
    %cst_65 = arith.constant dense<0.000000e+00> : vector<32x32xf32>
    %62 = tpu.matmul %59, %60, %cst_65 {dimension_numbers = #tpu.dot_dimension_numbers<[1], [1], [0], [0], [0, 0, 1, 0], [], []>} : vector<32x8xf32>, vector<32x8xf32>, vector<32x32xf32> -> vector<32x32xf32>
    %63 = arith.addf %62, %31 : vector<32x32xf32>
    %cst_66 = arith.constant dense<0xFF800000> : vector<32xf32>
    %64 = vector.multi_reduction <maximumf>, %63, %cst_66 [1] : vector<32x32xf32> to vector<32xf32>
    %65 = vector.shape_cast %64 : vector<32xf32> to vector<32x1xf32>
    %66 = vector.broadcast %65 : vector<32x1xf32> to vector<32x32xf32>
    %67 = arith.subf %63, %66 : vector<32x32xf32>
    %68 = math.exp %67 : vector<32x32xf32>
    %cst_67 = arith.constant dense<0.000000e+00> : vector<32xf32>
    %69 = vector.multi_reduction <add>, %68, %cst_67 [1] : vector<32x32xf32> to vector<32xf32>
    %70 = vector.shape_cast %69 : vector<32xf32> to vector<32x1xf32>
    %71 = tpu.reciprocal %70 {approx = true} : vector<32x1xf32> -> vector<32x1xf32>
    %72 = vector.broadcast %71 : vector<32x1xf32> to vector<32x32xf32>
    %73 = arith.mulf %68, %72 : vector<32x32xf32>
    %cst_68 = arith.constant dense<0.000000e+00> : vector<32x8xf32>
    %74 = tpu.matmul %73, %61, %cst_68 {dimension_numbers = #tpu.dot_dimension_numbers<[1], [0], [0], [1], [0, 0, 1, 1], [], []>} : vector<32x32xf32>, vector<32x8xf32>, vector<32x8xf32> -> vector<32x8xf32>
    %75 = vector.extract_strided_slice %37 {offsets = [0, 0], sizes = [8, 32], strides = [1, 1]} : vector<32x32xf32> to vector<8x32xf32>
    %cst_69 = arith.constant dense<0.000000e+00> : vector<32x32xf32>
    %76 = tpu.matmul %74, %75, %cst_69 {dimension_numbers = #tpu.dot_dimension_numbers<[1], [0], [0], [1], [0, 0, 1, 1], [], []>} : vector<32x8xf32>, vector<8x32xf32>, vector<32x32xf32> -> vector<32x32xf32>
    %77 = vector.extract_strided_slice %58 {offsets = [0, 8], sizes = [32, 8], strides = [1, 1]} : vector<32x96xf32> to vector<32x8xf32>
    %78 = vector.extract_strided_slice %58 {offsets = [0, 40], sizes = [32, 8], strides = [1, 1]} : vector<32x96xf32> to vector<32x8xf32>
    %79 = vector.extract_strided_slice %58 {offsets = [0, 72], sizes = [32, 8], strides = [1, 1]} : vector<32x96xf32> to vector<32x8xf32>
    %cst_70 = arith.constant dense<0.000000e+00> : vector<32x32xf32>
    %80 = tpu.matmul %77, %78, %cst_70 {dimension_numbers = #tpu.dot_dimension_numbers<[1], [1], [0], [0], [0, 0, 1, 0], [], []>} : vector<32x8xf32>, vector<32x8xf32>, vector<32x32xf32> -> vector<32x32xf32>
    %81 = arith.addf %80, %31 : vector<32x32xf32>
    %cst_71 = arith.constant dense<0xFF800000> : vector<32xf32>
    %82 = vector.multi_reduction <maximumf>, %81, %cst_71 [1] : vector<32x32xf32> to vector<32xf32>
    %83 = vector.shape_cast %82 : vector<32xf32> to vector<32x1xf32>
    %84 = vector.broadcast %83 : vector<32x1xf32> to vector<32x32xf32>
    %85 = arith.subf %81, %84 : vector<32x32xf32>
    %86 = math.exp %85 : vector<32x32xf32>
    %cst_72 = arith.constant dense<0.000000e+00> : vector<32xf32>
    %87 = vector.multi_reduction <add>, %86, %cst_72 [1] : vector<32x32xf32> to vector<32xf32>
    %88 = vector.shape_cast %87 : vector<32xf32> to vector<32x1xf32>
    %89 = tpu.reciprocal %88 {approx = true} : vector<32x1xf32> -> vector<32x1xf32>
    %90 = vector.broadcast %89 : vector<32x1xf32> to vector<32x32xf32>
    %91 = arith.mulf %86, %90 : vector<32x32xf32>
    %cst_73 = arith.constant dense<0.000000e+00> : vector<32x8xf32>
    %92 = tpu.matmul %91, %79, %cst_73 {dimension_numbers = #tpu.dot_dimension_numbers<[1], [0], [0], [1], [0, 0, 1, 1], [], []>} : vector<32x32xf32>, vector<32x8xf32>, vector<32x8xf32> -> vector<32x8xf32>
    %93 = vector.extract_strided_slice %37 {offsets = [8, 0], sizes = [8, 32], strides = [1, 1]} : vector<32x32xf32> to vector<8x32xf32>
    %cst_74 = arith.constant dense<0.000000e+00> : vector<32x32xf32>
    %94 = tpu.matmul %92, %93, %cst_74 {dimension_numbers = #tpu.dot_dimension_numbers<[1], [0], [0], [1], [0, 0, 1, 1], [], []>} : vector<32x8xf32>, vector<8x32xf32>, vector<32x32xf32> -> vector<32x32xf32>
    %95 = vector.extract_strided_slice %58 {offsets = [0, 16], sizes = [32, 8], strides = [1, 1]} : vector<32x96xf32> to vector<32x8xf32>
    %96 = vector.extract_strided_slice %58 {offsets = [0, 48], sizes = [32, 8], strides = [1, 1]} : vector<32x96xf32> to vector<32x8xf32>
    %97 = vector.extract_strided_slice %58 {offsets = [0, 80], sizes = [32, 8], strides = [1, 1]} : vector<32x96xf32> to vector<32x8xf32>
    %cst_75 = arith.constant dense<0.000000e+00> : vector<32x32xf32>
    %98 = tpu.matmul %95, %96, %cst_75 {dimension_numbers = #tpu.dot_dimension_numbers<[1], [1], [0], [0], [0, 0, 1, 0], [], []>} : vector<32x8xf32>, vector<32x8xf32>, vector<32x32xf32> -> vector<32x32xf32>
    %99 = arith.addf %98, %31 : vector<32x32xf32>
    %cst_76 = arith.constant dense<0xFF800000> : vector<32xf32>
    %100 = vector.multi_reduction <maximumf>, %99, %cst_76 [1] : vector<32x32xf32> to vector<32xf32>
    %101 = vector.shape_cast %100 : vector<32xf32> to vector<32x1xf32>
    %102 = vector.broadcast %101 : vector<32x1xf32> to vector<32x32xf32>
    %103 = arith.subf %99, %102 : vector<32x32xf32>
    %104 = math.exp %103 : vector<32x32xf32>
    %cst_77 = arith.constant dense<0.000000e+00> : vector<32xf32>
    %105 = vector.multi_reduction <add>, %104, %cst_77 [1] : vector<32x32xf32> to vector<32xf32>
    %106 = vector.shape_cast %105 : vector<32xf32> to vector<32x1xf32>
    %107 = tpu.reciprocal %106 {approx = true} : vector<32x1xf32> -> vector<32x1xf32>
    %108 = vector.broadcast %107 : vector<32x1xf32> to vector<32x32xf32>
    %109 = arith.mulf %104, %108 : vector<32x32xf32>
    %cst_78 = arith.constant dense<0.000000e+00> : vector<32x8xf32>
    %110 = tpu.matmul %109, %97, %cst_78 {dimension_numbers = #tpu.dot_dimension_numbers<[1], [0], [0], [1], [0, 0, 1, 1], [], []>} : vector<32x32xf32>, vector<32x8xf32>, vector<32x8xf32> -> vector<32x8xf32>
    %111 = vector.extract_strided_slice %37 {offsets = [16, 0], sizes = [8, 32], strides = [1, 1]} : vector<32x32xf32> to vector<8x32xf32>
    %cst_79 = arith.constant dense<0.000000e+00> : vector<32x32xf32>
    %112 = tpu.matmul %110, %111, %cst_79 {dimension_numbers = #tpu.dot_dimension_numbers<[1], [0], [0], [1], [0, 0, 1, 1], [], []>} : vector<32x8xf32>, vector<8x32xf32>, vector<32x32xf32> -> vector<32x32xf32>
    %113 = vector.extract_strided_slice %58 {offsets = [0, 24], sizes = [32, 8], strides = [1, 1]} : vector<32x96xf32> to vector<32x8xf32>
    %114 = vector.extract_strided_slice %58 {offsets = [0, 56], sizes = [32, 8], strides = [1, 1]} : vector<32x96xf32> to vector<32x8xf32>
    %115 = vector.extract_strided_slice %58 {offsets = [0, 88], sizes = [32, 8], strides = [1, 1]} : vector<32x96xf32> to vector<32x8xf32>
    %cst_80 = arith.constant dense<0.000000e+00> : vector<32x32xf32>
    %116 = tpu.matmul %113, %114, %cst_80 {dimension_numbers = #tpu.dot_dimension_numbers<[1], [1], [0], [0], [0, 0, 1, 0], [], []>} : vector<32x8xf32>, vector<32x8xf32>, vector<32x32xf32> -> vector<32x32xf32>
    %117 = arith.addf %116, %31 : vector<32x32xf32>
    %cst_81 = arith.constant dense<0xFF800000> : vector<32xf32>
    %118 = vector.multi_reduction <maximumf>, %117, %cst_81 [1] : vector<32x32xf32> to vector<32xf32>
    %119 = vector.shape_cast %118 : vector<32xf32> to vector<32x1xf32>
    %120 = vector.broadcast %119 : vector<32x1xf32> to vector<32x32xf32>
    %121 = arith.subf %117, %120 : vector<32x32xf32>
    %122 = math.exp %121 : vector<32x32xf32>
    %cst_82 = arith.constant dense<0.000000e+00> : vector<32xf32>
    %123 = vector.multi_reduction <add>, %122, %cst_82 [1] : vector<32x32xf32> to vector<32xf32>
    %124 = vector.shape_cast %123 : vector<32xf32> to vector<32x1xf32>
    %125 = tpu.reciprocal %124 {approx = true} : vector<32x1xf32> -> vector<32x1xf32>
    %126 = vector.broadcast %125 : vector<32x1xf32> to vector<32x32xf32>
    %127 = arith.mulf %122, %126 : vector<32x32xf32>
    %cst_83 = arith.constant dense<0.000000e+00> : vector<32x8xf32>
    %128 = tpu.matmul %127, %115, %cst_83 {dimension_numbers = #tpu.dot_dimension_numbers<[1], [0], [0], [1], [0, 0, 1, 1], [], []>} : vector<32x32xf32>, vector<32x8xf32>, vector<32x8xf32> -> vector<32x8xf32>
    %129 = vector.extract_strided_slice %37 {offsets = [24, 0], sizes = [8, 32], strides = [1, 1]} : vector<32x32xf32> to vector<8x32xf32>
    %cst_84 = arith.constant dense<0.000000e+00> : vector<32x32xf32>
    %130 = tpu.matmul %128, %129, %cst_84 {dimension_numbers = #tpu.dot_dimension_numbers<[1], [0], [0], [1], [0, 0, 1, 1], [], []>} : vector<32x8xf32>, vector<8x32xf32>, vector<32x32xf32> -> vector<32x32xf32>
    %131 = arith.addf %76, %94 : vector<32x32xf32>
    %132 = arith.addf %131, %112 : vector<32x32xf32>
    %133 = arith.addf %132, %130 : vector<32x32xf32>
    %134 = vector.broadcast %39 : vector<1x32xf32> to vector<32x32xf32>
    %135 = arith.addf %133, %134 : vector<32x32xf32>
    %136 = arith.addf %30, %135 : vector<32x32xf32>
    %cst_85 = arith.constant dense<0.000000e+00> : vector<32xf32>
    %137 = vector.multi_reduction <add>, %136, %cst_85 [1] : vector<32x32xf32> to vector<32xf32>
    %138 = vector.shape_cast %137 : vector<32xf32> to vector<32x1xf32>
    %cst_86 = arith.constant 3.200000e+01 : f32
    %139 = vector.broadcast %cst_86 : f32 to vector<32x1xf32>
    %140 = arith.divf %138, %139 : vector<32x1xf32>
    %141 = arith.mulf %136, %136 : vector<32x32xf32>
    %cst_87 = arith.constant dense<0.000000e+00> : vector<32xf32>
    %142 = vector.multi_reduction <add>, %141, %cst_87 [1] : vector<32x32xf32> to vector<32xf32>
    %143 = vector.shape_cast %142 : vector<32xf32> to vector<32x1xf32>
    %cst_88 = arith.constant 3.200000e+01 : f32
    %144 = vector.broadcast %cst_88 : f32 to vector<32x1xf32>
    %145 = arith.divf %143, %144 : vector<32x1xf32>
    %146 = arith.mulf %140, %140 : vector<32x1xf32>
    %147 = arith.subf %145, %146 : vector<32x1xf32>
    %cst_89 = arith.constant 0.000000e+00 : f32
    %148 = vector.broadcast %cst_89 : f32 to vector<32x1xf32>
    %149 = arith.maximumf %147, %148 : vector<32x1xf32>
    %150 = vector.broadcast %140 : vector<32x1xf32> to vector<32x32xf32>
    %151 = arith.subf %136, %150 : vector<32x32xf32>
    %cst_90 = arith.constant 9.99999974E-6 : f32
    %152 = vector.broadcast %cst_90 : f32 to vector<32x1xf32>
    %153 = arith.addf %149, %152 : vector<32x1xf32>
    %154 = math.rsqrt %153 : vector<32x1xf32>
    %155 = vector.broadcast %154 : vector<32x1xf32> to vector<32x32xf32>
    %156 = arith.mulf %151, %155 : vector<32x32xf32>
    %157 = vector.broadcast %49 : vector<1x32xf32> to vector<32x32xf32>
    %158 = arith.mulf %156, %157 : vector<32x32xf32>
    %159 = vector.broadcast %51 : vector<1x32xf32> to vector<32x32xf32>
    %160 = arith.addf %158, %159 : vector<32x32xf32>
    %cst_91 = arith.constant dense<0.000000e+00> : vector<32x64xf32>
    %161 = tpu.matmul %160, %41, %cst_91 {dimension_numbers = #tpu.dot_dimension_numbers<[1], [0], [0], [1], [0, 0, 1, 1], [], []>} : vector<32x32xf32>, vector<32x64xf32>, vector<32x64xf32> -> vector<32x64xf32>
    %162 = vector.broadcast %43 : vector<1x64xf32> to vector<32x64xf32>
    %163 = arith.addf %161, %162 : vector<32x64xf32>
    %cst_92 = arith.constant 5.000000e-01 : f32
    %164 = vector.broadcast %cst_92 : f32 to vector<32x64xf32>
    %165 = arith.mulf %164, %163 : vector<32x64xf32>
    %cst_93 = arith.constant 4.471500e-02 : f32
    %166 = vector.broadcast %cst_93 : f32 to vector<32x64xf32>
    %167 = arith.mulf %166, %163 : vector<32x64xf32>
    %168 = arith.mulf %167, %163 : vector<32x64xf32>
    %169 = arith.mulf %168, %163 : vector<32x64xf32>
    %170 = arith.addf %163, %169 : vector<32x64xf32>
    %cst_94 = arith.constant 0.797884583 : f32
    %171 = vector.broadcast %cst_94 : f32 to vector<32x64xf32>
    %172 = arith.mulf %171, %170 : vector<32x64xf32>
    %173 = math.tanh %172 : vector<32x64xf32>
    %cst_95 = arith.constant 1.000000e+00 : f32
    %174 = vector.broadcast %cst_95 : f32 to vector<32x64xf32>
    %175 = arith.addf %174, %173 : vector<32x64xf32>
    %176 = arith.mulf %165, %175 : vector<32x64xf32>
    %cst_96 = arith.constant dense<0.000000e+00> : vector<32x32xf32>
    %177 = tpu.matmul %176, %45, %cst_96 {dimension_numbers = #tpu.dot_dimension_numbers<[1], [0], [0], [1], [0, 0, 1, 1], [], []>} : vector<32x64xf32>, vector<64x32xf32>, vector<32x32xf32> -> vector<32x32xf32>
    %178 = vector.broadcast %47 : vector<1x32xf32> to vector<32x32xf32>
    %179 = arith.addf %177, %178 : vector<32x32xf32>
    %180 = arith.addf %160, %179 : vector<32x32xf32>
    %cst_97 = arith.constant dense<0.000000e+00> : vector<32xf32>
    %181 = vector.multi_reduction <add>, %180, %cst_97 [1] : vector<32x32xf32> to vector<32xf32>
    %182 = vector.shape_cast %181 : vector<32xf32> to vector<32x1xf32>
    %cst_98 = arith.constant 3.200000e+01 : f32
    %183 = vector.broadcast %cst_98 : f32 to vector<32x1xf32>
    %184 = arith.divf %182, %183 : vector<32x1xf32>
    %185 = arith.mulf %180, %180 : vector<32x32xf32>
    %cst_99 = arith.constant dense<0.000000e+00> : vector<32xf32>
    %186 = vector.multi_reduction <add>, %185, %cst_99 [1] : vector<32x32xf32> to vector<32xf32>
    %187 = vector.shape_cast %186 : vector<32xf32> to vector<32x1xf32>
    %cst_100 = arith.constant 3.200000e+01 : f32
    %188 = vector.broadcast %cst_100 : f32 to vector<32x1xf32>
    %189 = arith.divf %187, %188 : vector<32x1xf32>
    %190 = arith.mulf %184, %184 : vector<32x1xf32>
    %191 = arith.subf %189, %190 : vector<32x1xf32>
    %cst_101 = arith.constant 0.000000e+00 : f32
    %192 = vector.broadcast %cst_101 : f32 to vector<32x1xf32>
    %193 = arith.maximumf %191, %192 : vector<32x1xf32>
    %194 = vector.broadcast %184 : vector<32x1xf32> to vector<32x32xf32>
    %195 = arith.subf %180, %194 : vector<32x32xf32>
    %cst_102 = arith.constant 9.99999974E-6 : f32
    %196 = vector.broadcast %cst_102 : f32 to vector<32x1xf32>
    %197 = arith.addf %193, %196 : vector<32x1xf32>
    %198 = math.rsqrt %197 : vector<32x1xf32>
    %199 = vector.broadcast %198 : vector<32x1xf32> to vector<32x32xf32>
    %200 = arith.mulf %195, %199 : vector<32x32xf32>
    %201 = vector.broadcast %53 : vector<1x32xf32> to vector<32x32xf32>
    %202 = arith.mulf %200, %201 : vector<32x32xf32>
    %203 = vector.broadcast %55 : vector<1x32xf32> to vector<32x32xf32>
    %204 = arith.addf %202, %203 : vector<32x32xf32>
    %c1_103 = arith.constant 1 : index
    %c0_104 = arith.constant 0 : index
    %c0_105 = arith.constant 0 : index
    %205 = vector.load %arg4[%c1_103, %c0_104, %c0_105] : memref<2x32x96xf32, #tpu.memory_space<vmem>>, vector<1x32x96xf32>
    %206 = vector.shape_cast %205 : vector<1x32x96xf32> to vector<32x96xf32>
    %c1_106 = arith.constant 1 : index
    %c0_107 = arith.constant 0 : index
    %c0_108 = arith.constant 0 : index
    %207 = vector.load %arg5[%c1_106, %c0_107, %c0_108] : memref<2x1x96xf32, #tpu.memory_space<vmem>>, vector<1x1x96xf32>
    %208 = vector.shape_cast %207 : vector<1x1x96xf32> to vector<1x96xf32>
    %c1_109 = arith.constant 1 : index
    %c0_110 = arith.constant 0 : index
    %c0_111 = arith.constant 0 : index
    %209 = vector.load %arg6[%c1_109, %c0_110, %c0_111] : memref<2x32x32xf32, #tpu.memory_space<vmem>>, vector<1x32x32xf32>
    %210 = vector.shape_cast %209 : vector<1x32x32xf32> to vector<32x32xf32>
    %c1_112 = arith.constant 1 : index
    %c0_113 = arith.constant 0 : index
    %c0_114 = arith.constant 0 : index
    %211 = vector.load %arg7[%c1_112, %c0_113, %c0_114] : memref<2x1x32xf32, #tpu.memory_space<vmem>>, vector<1x1x32xf32>
    %212 = vector.shape_cast %211 : vector<1x1x32xf32> to vector<1x32xf32>
    %c1_115 = arith.constant 1 : index
    %c0_116 = arith.constant 0 : index
    %c0_117 = arith.constant 0 : index
    %213 = vector.load %arg8[%c1_115, %c0_116, %c0_117] : memref<2x32x64xf32, #tpu.memory_space<vmem>>, vector<1x32x64xf32>
    %214 = vector.shape_cast %213 : vector<1x32x64xf32> to vector<32x64xf32>
    %c1_118 = arith.constant 1 : index
    %c0_119 = arith.constant 0 : index
    %c0_120 = arith.constant 0 : index
    %215 = vector.load %arg9[%c1_118, %c0_119, %c0_120] : memref<2x1x64xf32, #tpu.memory_space<vmem>>, vector<1x1x64xf32>
    %216 = vector.shape_cast %215 : vector<1x1x64xf32> to vector<1x64xf32>
    %c1_121 = arith.constant 1 : index
    %c0_122 = arith.constant 0 : index
    %c0_123 = arith.constant 0 : index
    %217 = vector.load %arg10[%c1_121, %c0_122, %c0_123] : memref<2x64x32xf32, #tpu.memory_space<vmem>>, vector<1x64x32xf32>
    %218 = vector.shape_cast %217 : vector<1x64x32xf32> to vector<64x32xf32>
    %c1_124 = arith.constant 1 : index
    %c0_125 = arith.constant 0 : index
    %c0_126 = arith.constant 0 : index
    %219 = vector.load %arg11[%c1_124, %c0_125, %c0_126] : memref<2x1x32xf32, #tpu.memory_space<vmem>>, vector<1x1x32xf32>
    %220 = vector.shape_cast %219 : vector<1x1x32xf32> to vector<1x32xf32>
    %c1_127 = arith.constant 1 : index
    %c0_128 = arith.constant 0 : index
    %c0_129 = arith.constant 0 : index
    %221 = vector.load %arg12[%c1_127, %c0_128, %c0_129] : memref<2x1x32xf32, #tpu.memory_space<vmem>>, vector<1x1x32xf32>
    %222 = vector.shape_cast %221 : vector<1x1x32xf32> to vector<1x32xf32>
    %c1_130 = arith.constant 1 : index
    %c0_131 = arith.constant 0 : index
    %c0_132 = arith.constant 0 : index
    %223 = vector.load %arg13[%c1_130, %c0_131, %c0_132] : memref<2x1x32xf32, #tpu.memory_space<vmem>>, vector<1x1x32xf32>
    %224 = vector.shape_cast %223 : vector<1x1x32xf32> to vector<1x32xf32>
    %c1_133 = arith.constant 1 : index
    %c0_134 = arith.constant 0 : index
    %c0_135 = arith.constant 0 : index
    %225 = vector.load %arg14[%c1_133, %c0_134, %c0_135] : memref<2x1x32xf32, #tpu.memory_space<vmem>>, vector<1x1x32xf32>
    %226 = vector.shape_cast %225 : vector<1x1x32xf32> to vector<1x32xf32>
    %c1_136 = arith.constant 1 : index
    %c0_137 = arith.constant 0 : index
    %c0_138 = arith.constant 0 : index
    %227 = vector.load %arg15[%c1_136, %c0_137, %c0_138] : memref<2x1x32xf32, #tpu.memory_space<vmem>>, vector<1x1x32xf32>
    %228 = vector.shape_cast %227 : vector<1x1x32xf32> to vector<1x32xf32>
    %cst_139 = arith.constant dense<0.000000e+00> : vector<32x96xf32>
    %229 = tpu.matmul %204, %206, %cst_139 {dimension_numbers = #tpu.dot_dimension_numbers<[1], [0], [0], [1], [0, 0, 1, 1], [], []>} : vector<32x32xf32>, vector<32x96xf32>, vector<32x96xf32> -> vector<32x96xf32>
    %230 = vector.broadcast %208 : vector<1x96xf32> to vector<32x96xf32>
    %231 = arith.addf %229, %230 : vector<32x96xf32>
    %232 = vector.extract_strided_slice %231 {offsets = [0, 0], sizes = [32, 8], strides = [1, 1]} : vector<32x96xf32> to vector<32x8xf32>
    %233 = vector.extract_strided_slice %231 {offsets = [0, 32], sizes = [32, 8], strides = [1, 1]} : vector<32x96xf32> to vector<32x8xf32>
    %234 = vector.extract_strided_slice %231 {offsets = [0, 64], sizes = [32, 8], strides = [1, 1]} : vector<32x96xf32> to vector<32x8xf32>
    %cst_140 = arith.constant dense<0.000000e+00> : vector<32x32xf32>
    %235 = tpu.matmul %232, %233, %cst_140 {dimension_numbers = #tpu.dot_dimension_numbers<[1], [1], [0], [0], [0, 0, 1, 0], [], []>} : vector<32x8xf32>, vector<32x8xf32>, vector<32x32xf32> -> vector<32x32xf32>
    %236 = arith.addf %235, %31 : vector<32x32xf32>
    %cst_141 = arith.constant dense<0xFF800000> : vector<32xf32>
    %237 = vector.multi_reduction <maximumf>, %236, %cst_141 [1] : vector<32x32xf32> to vector<32xf32>
    %238 = vector.shape_cast %237 : vector<32xf32> to vector<32x1xf32>
    %239 = vector.broadcast %238 : vector<32x1xf32> to vector<32x32xf32>
    %240 = arith.subf %236, %239 : vector<32x32xf32>
    %241 = math.exp %240 : vector<32x32xf32>
    %cst_142 = arith.constant dense<0.000000e+00> : vector<32xf32>
    %242 = vector.multi_reduction <add>, %241, %cst_142 [1] : vector<32x32xf32> to vector<32xf32>
    %243 = vector.shape_cast %242 : vector<32xf32> to vector<32x1xf32>
    %244 = tpu.reciprocal %243 {approx = true} : vector<32x1xf32> -> vector<32x1xf32>
    %245 = vector.broadcast %244 : vector<32x1xf32> to vector<32x32xf32>
    %246 = arith.mulf %241, %245 : vector<32x32xf32>
    %cst_143 = arith.constant dense<0.000000e+00> : vector<32x8xf32>
    %247 = tpu.matmul %246, %234, %cst_143 {dimension_numbers = #tpu.dot_dimension_numbers<[1], [0], [0], [1], [0, 0, 1, 1], [], []>} : vector<32x32xf32>, vector<32x8xf32>, vector<32x8xf32> -> vector<32x8xf32>
    %248 = vector.extract_strided_slice %210 {offsets = [0, 0], sizes = [8, 32], strides = [1, 1]} : vector<32x32xf32> to vector<8x32xf32>
    %cst_144 = arith.constant dense<0.000000e+00> : vector<32x32xf32>
    %249 = tpu.matmul %247, %248, %cst_144 {dimension_numbers = #tpu.dot_dimension_numbers<[1], [0], [0], [1], [0, 0, 1, 1], [], []>} : vector<32x8xf32>, vector<8x32xf32>, vector<32x32xf32> -> vector<32x32xf32>
    %250 = vector.extract_strided_slice %231 {offsets = [0, 8], sizes = [32, 8], strides = [1, 1]} : vector<32x96xf32> to vector<32x8xf32>
    %251 = vector.extract_strided_slice %231 {offsets = [0, 40], sizes = [32, 8], strides = [1, 1]} : vector<32x96xf32> to vector<32x8xf32>
    %252 = vector.extract_strided_slice %231 {offsets = [0, 72], sizes = [32, 8], strides = [1, 1]} : vector<32x96xf32> to vector<32x8xf32>
    %cst_145 = arith.constant dense<0.000000e+00> : vector<32x32xf32>
    %253 = tpu.matmul %250, %251, %cst_145 {dimension_numbers = #tpu.dot_dimension_numbers<[1], [1], [0], [0], [0, 0, 1, 0], [], []>} : vector<32x8xf32>, vector<32x8xf32>, vector<32x32xf32> -> vector<32x32xf32>
    %254 = arith.addf %253, %31 : vector<32x32xf32>
    %cst_146 = arith.constant dense<0xFF800000> : vector<32xf32>
    %255 = vector.multi_reduction <maximumf>, %254, %cst_146 [1] : vector<32x32xf32> to vector<32xf32>
    %256 = vector.shape_cast %255 : vector<32xf32> to vector<32x1xf32>
    %257 = vector.broadcast %256 : vector<32x1xf32> to vector<32x32xf32>
    %258 = arith.subf %254, %257 : vector<32x32xf32>
    %259 = math.exp %258 : vector<32x32xf32>
    %cst_147 = arith.constant dense<0.000000e+00> : vector<32xf32>
    %260 = vector.multi_reduction <add>, %259, %cst_147 [1] : vector<32x32xf32> to vector<32xf32>
    %261 = vector.shape_cast %260 : vector<32xf32> to vector<32x1xf32>
    %262 = tpu.reciprocal %261 {approx = true} : vector<32x1xf32> -> vector<32x1xf32>
    %263 = vector.broadcast %262 : vector<32x1xf32> to vector<32x32xf32>
    %264 = arith.mulf %259, %263 : vector<32x32xf32>
    %cst_148 = arith.constant dense<0.000000e+00> : vector<32x8xf32>
    %265 = tpu.matmul %264, %252, %cst_148 {dimension_numbers = #tpu.dot_dimension_numbers<[1], [0], [0], [1], [0, 0, 1, 1], [], []>} : vector<32x32xf32>, vector<32x8xf32>, vector<32x8xf32> -> vector<32x8xf32>
    %266 = vector.extract_strided_slice %210 {offsets = [8, 0], sizes = [8, 32], strides = [1, 1]} : vector<32x32xf32> to vector<8x32xf32>
    %cst_149 = arith.constant dense<0.000000e+00> : vector<32x32xf32>
    %267 = tpu.matmul %265, %266, %cst_149 {dimension_numbers = #tpu.dot_dimension_numbers<[1], [0], [0], [1], [0, 0, 1, 1], [], []>} : vector<32x8xf32>, vector<8x32xf32>, vector<32x32xf32> -> vector<32x32xf32>
    %268 = vector.extract_strided_slice %231 {offsets = [0, 16], sizes = [32, 8], strides = [1, 1]} : vector<32x96xf32> to vector<32x8xf32>
    %269 = vector.extract_strided_slice %231 {offsets = [0, 48], sizes = [32, 8], strides = [1, 1]} : vector<32x96xf32> to vector<32x8xf32>
    %270 = vector.extract_strided_slice %231 {offsets = [0, 80], sizes = [32, 8], strides = [1, 1]} : vector<32x96xf32> to vector<32x8xf32>
    %cst_150 = arith.constant dense<0.000000e+00> : vector<32x32xf32>
    %271 = tpu.matmul %268, %269, %cst_150 {dimension_numbers = #tpu.dot_dimension_numbers<[1], [1], [0], [0], [0, 0, 1, 0], [], []>} : vector<32x8xf32>, vector<32x8xf32>, vector<32x32xf32> -> vector<32x32xf32>
    %272 = arith.addf %271, %31 : vector<32x32xf32>
    %cst_151 = arith.constant dense<0xFF800000> : vector<32xf32>
    %273 = vector.multi_reduction <maximumf>, %272, %cst_151 [1] : vector<32x32xf32> to vector<32xf32>
    %274 = vector.shape_cast %273 : vector<32xf32> to vector<32x1xf32>
    %275 = vector.broadcast %274 : vector<32x1xf32> to vector<32x32xf32>
    %276 = arith.subf %272, %275 : vector<32x32xf32>
    %277 = math.exp %276 : vector<32x32xf32>
    %cst_152 = arith.constant dense<0.000000e+00> : vector<32xf32>
    %278 = vector.multi_reduction <add>, %277, %cst_152 [1] : vector<32x32xf32> to vector<32xf32>
    %279 = vector.shape_cast %278 : vector<32xf32> to vector<32x1xf32>
    %280 = tpu.reciprocal %279 {approx = true} : vector<32x1xf32> -> vector<32x1xf32>
    %281 = vector.broadcast %280 : vector<32x1xf32> to vector<32x32xf32>
    %282 = arith.mulf %277, %281 : vector<32x32xf32>
    %cst_153 = arith.constant dense<0.000000e+00> : vector<32x8xf32>
    %283 = tpu.matmul %282, %270, %cst_153 {dimension_numbers = #tpu.dot_dimension_numbers<[1], [0], [0], [1], [0, 0, 1, 1], [], []>} : vector<32x32xf32>, vector<32x8xf32>, vector<32x8xf32> -> vector<32x8xf32>
    %284 = vector.extract_strided_slice %210 {offsets = [16, 0], sizes = [8, 32], strides = [1, 1]} : vector<32x32xf32> to vector<8x32xf32>
    %cst_154 = arith.constant dense<0.000000e+00> : vector<32x32xf32>
    %285 = tpu.matmul %283, %284, %cst_154 {dimension_numbers = #tpu.dot_dimension_numbers<[1], [0], [0], [1], [0, 0, 1, 1], [], []>} : vector<32x8xf32>, vector<8x32xf32>, vector<32x32xf32> -> vector<32x32xf32>
    %286 = vector.extract_strided_slice %231 {offsets = [0, 24], sizes = [32, 8], strides = [1, 1]} : vector<32x96xf32> to vector<32x8xf32>
    %287 = vector.extract_strided_slice %231 {offsets = [0, 56], sizes = [32, 8], strides = [1, 1]} : vector<32x96xf32> to vector<32x8xf32>
    %288 = vector.extract_strided_slice %231 {offsets = [0, 88], sizes = [32, 8], strides = [1, 1]} : vector<32x96xf32> to vector<32x8xf32>
    %cst_155 = arith.constant dense<0.000000e+00> : vector<32x32xf32>
    %289 = tpu.matmul %286, %287, %cst_155 {dimension_numbers = #tpu.dot_dimension_numbers<[1], [1], [0], [0], [0, 0, 1, 0], [], []>} : vector<32x8xf32>, vector<32x8xf32>, vector<32x32xf32> -> vector<32x32xf32>
    %290 = arith.addf %289, %31 : vector<32x32xf32>
    %cst_156 = arith.constant dense<0xFF800000> : vector<32xf32>
    %291 = vector.multi_reduction <maximumf>, %290, %cst_156 [1] : vector<32x32xf32> to vector<32xf32>
    %292 = vector.shape_cast %291 : vector<32xf32> to vector<32x1xf32>
    %293 = vector.broadcast %292 : vector<32x1xf32> to vector<32x32xf32>
    %294 = arith.subf %290, %293 : vector<32x32xf32>
    %295 = math.exp %294 : vector<32x32xf32>
    %cst_157 = arith.constant dense<0.000000e+00> : vector<32xf32>
    %296 = vector.multi_reduction <add>, %295, %cst_157 [1] : vector<32x32xf32> to vector<32xf32>
    %297 = vector.shape_cast %296 : vector<32xf32> to vector<32x1xf32>
    %298 = tpu.reciprocal %297 {approx = true} : vector<32x1xf32> -> vector<32x1xf32>
    %299 = vector.broadcast %298 : vector<32x1xf32> to vector<32x32xf32>
    %300 = arith.mulf %295, %299 : vector<32x32xf32>
    %cst_158 = arith.constant dense<0.000000e+00> : vector<32x8xf32>
    %301 = tpu.matmul %300, %288, %cst_158 {dimension_numbers = #tpu.dot_dimension_numbers<[1], [0], [0], [1], [0, 0, 1, 1], [], []>} : vector<32x32xf32>, vector<32x8xf32>, vector<32x8xf32> -> vector<32x8xf32>
    %302 = vector.extract_strided_slice %210 {offsets = [24, 0], sizes = [8, 32], strides = [1, 1]} : vector<32x32xf32> to vector<8x32xf32>
    %cst_159 = arith.constant dense<0.000000e+00> : vector<32x32xf32>
    %303 = tpu.matmul %301, %302, %cst_159 {dimension_numbers = #tpu.dot_dimension_numbers<[1], [0], [0], [1], [0, 0, 1, 1], [], []>} : vector<32x8xf32>, vector<8x32xf32>, vector<32x32xf32> -> vector<32x32xf32>
    %304 = arith.addf %249, %267 : vector<32x32xf32>
    %305 = arith.addf %304, %285 : vector<32x32xf32>
    %306 = arith.addf %305, %303 : vector<32x32xf32>
    %307 = vector.broadcast %212 : vector<1x32xf32> to vector<32x32xf32>
    %308 = arith.addf %306, %307 : vector<32x32xf32>
    %309 = arith.addf %204, %308 : vector<32x32xf32>
    %cst_160 = arith.constant dense<0.000000e+00> : vector<32xf32>
    %310 = vector.multi_reduction <add>, %309, %cst_160 [1] : vector<32x32xf32> to vector<32xf32>
    %311 = vector.shape_cast %310 : vector<32xf32> to vector<32x1xf32>
    %cst_161 = arith.constant 3.200000e+01 : f32
    %312 = vector.broadcast %cst_161 : f32 to vector<32x1xf32>
    %313 = arith.divf %311, %312 : vector<32x1xf32>
    %314 = arith.mulf %309, %309 : vector<32x32xf32>
    %cst_162 = arith.constant dense<0.000000e+00> : vector<32xf32>
    %315 = vector.multi_reduction <add>, %314, %cst_162 [1] : vector<32x32xf32> to vector<32xf32>
    %316 = vector.shape_cast %315 : vector<32xf32> to vector<32x1xf32>
    %cst_163 = arith.constant 3.200000e+01 : f32
    %317 = vector.broadcast %cst_163 : f32 to vector<32x1xf32>
    %318 = arith.divf %316, %317 : vector<32x1xf32>
    %319 = arith.mulf %313, %313 : vector<32x1xf32>
    %320 = arith.subf %318, %319 : vector<32x1xf32>
    %cst_164 = arith.constant 0.000000e+00 : f32
    %321 = vector.broadcast %cst_164 : f32 to vector<32x1xf32>
    %322 = arith.maximumf %320, %321 : vector<32x1xf32>
    %323 = vector.broadcast %313 : vector<32x1xf32> to vector<32x32xf32>
    %324 = arith.subf %309, %323 : vector<32x32xf32>
    %cst_165 = arith.constant 9.99999974E-6 : f32
    %325 = vector.broadcast %cst_165 : f32 to vector<32x1xf32>
    %326 = arith.addf %322, %325 : vector<32x1xf32>
    %327 = math.rsqrt %326 : vector<32x1xf32>
    %328 = vector.broadcast %327 : vector<32x1xf32> to vector<32x32xf32>
    %329 = arith.mulf %324, %328 : vector<32x32xf32>
    %330 = vector.broadcast %222 : vector<1x32xf32> to vector<32x32xf32>
    %331 = arith.mulf %329, %330 : vector<32x32xf32>
    %332 = vector.broadcast %224 : vector<1x32xf32> to vector<32x32xf32>
    %333 = arith.addf %331, %332 : vector<32x32xf32>
    %cst_166 = arith.constant dense<0.000000e+00> : vector<32x64xf32>
    %334 = tpu.matmul %333, %214, %cst_166 {dimension_numbers = #tpu.dot_dimension_numbers<[1], [0], [0], [1], [0, 0, 1, 1], [], []>} : vector<32x32xf32>, vector<32x64xf32>, vector<32x64xf32> -> vector<32x64xf32>
    %335 = vector.broadcast %216 : vector<1x64xf32> to vector<32x64xf32>
    %336 = arith.addf %334, %335 : vector<32x64xf32>
    %cst_167 = arith.constant 5.000000e-01 : f32
    %337 = vector.broadcast %cst_167 : f32 to vector<32x64xf32>
    %338 = arith.mulf %337, %336 : vector<32x64xf32>
    %cst_168 = arith.constant 4.471500e-02 : f32
    %339 = vector.broadcast %cst_168 : f32 to vector<32x64xf32>
    %340 = arith.mulf %339, %336 : vector<32x64xf32>
    %341 = arith.mulf %340, %336 : vector<32x64xf32>
    %342 = arith.mulf %341, %336 : vector<32x64xf32>
    %343 = arith.addf %336, %342 : vector<32x64xf32>
    %cst_169 = arith.constant 0.797884583 : f32
    %344 = vector.broadcast %cst_169 : f32 to vector<32x64xf32>
    %345 = arith.mulf %344, %343 : vector<32x64xf32>
    %346 = math.tanh %345 : vector<32x64xf32>
    %cst_170 = arith.constant 1.000000e+00 : f32
    %347 = vector.broadcast %cst_170 : f32 to vector<32x64xf32>
    %348 = arith.addf %347, %346 : vector<32x64xf32>
    %349 = arith.mulf %338, %348 : vector<32x64xf32>
    %cst_171 = arith.constant dense<0.000000e+00> : vector<32x32xf32>
    %350 = tpu.matmul %349, %218, %cst_171 {dimension_numbers = #tpu.dot_dimension_numbers<[1], [0], [0], [1], [0, 0, 1, 1], [], []>} : vector<32x64xf32>, vector<64x32xf32>, vector<32x32xf32> -> vector<32x32xf32>
    %351 = vector.broadcast %220 : vector<1x32xf32> to vector<32x32xf32>
    %352 = arith.addf %350, %351 : vector<32x32xf32>
    %353 = arith.addf %333, %352 : vector<32x32xf32>
    %cst_172 = arith.constant dense<0.000000e+00> : vector<32xf32>
    %354 = vector.multi_reduction <add>, %353, %cst_172 [1] : vector<32x32xf32> to vector<32xf32>
    %355 = vector.shape_cast %354 : vector<32xf32> to vector<32x1xf32>
    %cst_173 = arith.constant 3.200000e+01 : f32
    %356 = vector.broadcast %cst_173 : f32 to vector<32x1xf32>
    %357 = arith.divf %355, %356 : vector<32x1xf32>
    %358 = arith.mulf %353, %353 : vector<32x32xf32>
    %cst_174 = arith.constant dense<0.000000e+00> : vector<32xf32>
    %359 = vector.multi_reduction <add>, %358, %cst_174 [1] : vector<32x32xf32> to vector<32xf32>
    %360 = vector.shape_cast %359 : vector<32xf32> to vector<32x1xf32>
    %cst_175 = arith.constant 3.200000e+01 : f32
    %361 = vector.broadcast %cst_175 : f32 to vector<32x1xf32>
    %362 = arith.divf %360, %361 : vector<32x1xf32>
    %363 = arith.mulf %357, %357 : vector<32x1xf32>
    %364 = arith.subf %362, %363 : vector<32x1xf32>
    %cst_176 = arith.constant 0.000000e+00 : f32
    %365 = vector.broadcast %cst_176 : f32 to vector<32x1xf32>
    %366 = arith.maximumf %364, %365 : vector<32x1xf32>
    %367 = vector.broadcast %357 : vector<32x1xf32> to vector<32x32xf32>
    %368 = arith.subf %353, %367 : vector<32x32xf32>
    %cst_177 = arith.constant 9.99999974E-6 : f32
    %369 = vector.broadcast %cst_177 : f32 to vector<32x1xf32>
    %370 = arith.addf %366, %369 : vector<32x1xf32>
    %371 = math.rsqrt %370 : vector<32x1xf32>
    %372 = vector.broadcast %371 : vector<32x1xf32> to vector<32x32xf32>
    %373 = arith.mulf %368, %372 : vector<32x32xf32>
    %374 = vector.broadcast %226 : vector<1x32xf32> to vector<32x32xf32>
    %375 = arith.mulf %373, %374 : vector<32x32xf32>
    %376 = vector.broadcast %228 : vector<1x32xf32> to vector<32x32xf32>
    %377 = arith.addf %375, %376 : vector<32x32xf32>
    %378 = vector.extract_strided_slice %377 {offsets = [24, 0], sizes = [8, 32], strides = [1, 1]} : vector<32x32xf32> to vector<8x32xf32>
    %c0_178 = arith.constant 0 : index
    %c0_179 = arith.constant 0 : index
    %379 = vector.load %arg16[%c0_178, %c0_179] : memref<32x128xf32, #tpu.memory_space<vmem>>, vector<32x128xf32>
    %cst_180 = arith.constant dense<0.000000e+00> : vector<8x128xf32>
    %380 = tpu.matmul %378, %379, %cst_180 {dimension_numbers = #tpu.dot_dimension_numbers<[1], [0], [0], [1], [0, 0, 1, 1], [], []>} : vector<8x32xf32>, vector<32x128xf32>, vector<8x128xf32> -> vector<8x128xf32>
    %c0_181 = arith.constant 0 : index
    %c0_182 = arith.constant 0 : index
    %381 = vector.load %arg17[%c0_181, %c0_182] : memref<1x128xf32, #tpu.memory_space<vmem>>, vector<1x128xf32>
    %382 = vector.broadcast %381 : vector<1x128xf32> to vector<8x128xf32>
    %383 = arith.addf %380, %382 : vector<8x128xf32>
    %384 = vector.extract_strided_slice %383 {offsets = [0, 8], sizes = [8, 18], strides = [1, 1]} : vector<8x128xf32> to vector<8x18xf32>
    %c0_183 = arith.constant 0 : index
    %c0_184 = arith.constant 0 : index
    %385 = vector.load %arg21[%c0_183, %c0_184] : memref<1x18xf32, #tpu.memory_space<vmem>>, vector<1x18xf32>
    %cst_185 = arith.constant 0.000000e+00 : f32
    %386 = vector.broadcast %cst_185 : f32 to vector<8x18xf32>
    %387 = arith.maximumf %384, %386 : vector<8x18xf32>
    %388 = math.absf %384 : vector<8x18xf32>
    %cst_186 = arith.constant 0.000000e+00 : f32
    %389 = vector.broadcast %cst_186 : f32 to vector<8x18xf32>
    %390 = arith.subf %389, %388 : vector<8x18xf32>
    %391 = math.exp %390 : vector<8x18xf32>
    %cst_187 = arith.constant 1.000000e+00 : f32
    %392 = vector.broadcast %cst_187 : f32 to vector<8x18xf32>
    %393 = arith.addf %392, %391 : vector<8x18xf32>
    %394 = math.log %393 : vector<8x18xf32>
    %395 = arith.addf %387, %394 : vector<8x18xf32>
    %396 = vector.broadcast %385 : vector<1x18xf32> to vector<8x18xf32>
    %397 = arith.mulf %396, %395 : vector<8x18xf32>
    %c0_188 = arith.constant 0 : index
    %c0_189 = arith.constant 0 : index
    %398 = vector.load %arg22[%c0_188, %c0_189] : memref<1x18xf32, #tpu.memory_space<vmem>>, vector<1x18xf32>
    %399 = vector.broadcast %398 : vector<1x18xf32> to vector<8x18xf32>
    %400 = arith.mulf %399, %384 : vector<8x18xf32>
    %401 = arith.addf %397, %400 : vector<8x18xf32>
    %c0_190 = arith.constant 0 : index
    %c0_191 = arith.constant 0 : index
    %402 = vector.load %arg18[%c0_190, %c0_191] : memref<18x384xf32, #tpu.memory_space<vmem>>, vector<18x384xf32>
    %cst_192 = arith.constant dense<0.000000e+00> : vector<8x384xf32>
    %403 = tpu.matmul %401, %402, %cst_192 {dimension_numbers = #tpu.dot_dimension_numbers<[1], [0], [0], [1], [0, 0, 1, 1], [], []>} : vector<8x18xf32>, vector<18x384xf32>, vector<8x384xf32> -> vector<8x384xf32>
    %c0_193 = arith.constant 0 : index
    %c0_194 = arith.constant 0 : index
    %404 = vector.load %arg19[%c0_193, %c0_194] : memref<18x384xf32, #tpu.memory_space<vmem>>, vector<18x384xf32>
    %cst_195 = arith.constant dense<0.000000e+00> : vector<8x384xf32>
    %405 = tpu.matmul %401, %404, %cst_195 {dimension_numbers = #tpu.dot_dimension_numbers<[1], [0], [0], [1], [0, 0, 1, 1], [], []>} : vector<8x18xf32>, vector<18x384xf32>, vector<8x384xf32> -> vector<8x384xf32>
    %406 = vector.extract_strided_slice %403 {offsets = [0, 0], sizes = [8, 128], strides = [1, 1]} : vector<8x384xf32> to vector<8x128xf32>
    %407 = vector.extract_strided_slice %405 {offsets = [0, 0], sizes = [8, 128], strides = [1, 1]} : vector<8x384xf32> to vector<8x128xf32>
    %408 = arith.mulf %406, %407 : vector<8x128xf32>
    %409 = vector.extract_strided_slice %403 {offsets = [0, 128], sizes = [8, 128], strides = [1, 1]} : vector<8x384xf32> to vector<8x128xf32>
    %410 = vector.extract_strided_slice %405 {offsets = [0, 128], sizes = [8, 128], strides = [1, 1]} : vector<8x384xf32> to vector<8x128xf32>
    %411 = arith.mulf %409, %410 : vector<8x128xf32>
    %412 = arith.addf %408, %411 : vector<8x128xf32>
    %413 = vector.extract_strided_slice %403 {offsets = [0, 256], sizes = [8, 128], strides = [1, 1]} : vector<8x384xf32> to vector<8x128xf32>
    %414 = vector.extract_strided_slice %405 {offsets = [0, 256], sizes = [8, 128], strides = [1, 1]} : vector<8x384xf32> to vector<8x128xf32>
    %415 = arith.mulf %413, %414 : vector<8x128xf32>
    %416 = arith.addf %412, %415 : vector<8x128xf32>
    %417 = tpu.iota {dimensions = array<i32: 1>} : vector<8x128xi32>
    %c2_i32 = arith.constant 2 : i32
    %418 = vector.broadcast %c2_i32 : i32 to vector<8x128xi32>
    %419 = arith.cmpi slt, %417, %418 : vector<8x128xi32>
    %cst_196 = arith.constant -1.000000e+30 : f32
    %420 = vector.broadcast %cst_196 : f32 to vector<8x128xf32>
    %421 = arith.select %419, %383, %420 : vector<8x128xi1>, vector<8x128xf32>
    %cst_197 = arith.constant dense<0xFF800000> : vector<8xf32>
    %422 = vector.multi_reduction <maximumf>, %421, %cst_197 [1] : vector<8x128xf32> to vector<8xf32>
    %423 = vector.shape_cast %422 : vector<8xf32> to vector<8x1xf32>
    %424 = vector.broadcast %423 : vector<8x1xf32> to vector<8x128xf32>
    %425 = arith.subf %421, %424 : vector<8x128xf32>
    %426 = math.exp %425 : vector<8x128xf32>
    %cst_198 = arith.constant dense<0.000000e+00> : vector<8xf32>
    %427 = vector.multi_reduction <add>, %426, %cst_198 [1] : vector<8x128xf32> to vector<8xf32>
    %428 = vector.shape_cast %427 : vector<8xf32> to vector<8x1xf32>
    %429 = vector.broadcast %428 : vector<8x1xf32> to vector<8x128xf32>
    %430 = arith.divf %426, %429 : vector<8x128xf32>
    %c2_i32_199 = arith.constant 2 : i32
    %431 = vector.broadcast %c2_i32_199 : i32 to vector<8x128xi32>
    %432 = arith.cmpi slt, %417, %431 : vector<8x128xi32>
    %c8_i32 = arith.constant 8 : i32
    %433 = vector.broadcast %c8_i32 : i32 to vector<8x128xi32>
    %434 = arith.cmpi sge, %417, %433 : vector<8x128xi32>
    %c26_i32 = arith.constant 26 : i32
    %435 = vector.broadcast %c26_i32 : i32 to vector<8x128xi32>
    %436 = arith.cmpi slt, %417, %435 : vector<8x128xi32>
    %437 = arith.andi %434, %436 : vector<8x128xi1>
    %438 = arith.select %437, %416, %383 : vector<8x128xi1>, vector<8x128xf32>
    %439 = arith.select %432, %430, %438 : vector<8x128xi1>, vector<8x128xf32>
    %c0_200 = arith.constant 0 : index
    %c0_201 = arith.constant 0 : index
    %c0_202 = arith.constant 0 : index
    %440 = vector.load %arg23[%c0_200, %c0_201, %c0_202] : memref<1x8x128xf32, #tpu.memory_space<vmem>>, vector<1x8x128xf32>
    %441 = vector.shape_cast %440 : vector<1x8x128xf32> to vector<8x128xf32>
    %442 = vector.shape_cast %439 : vector<8x128xf32> to vector<1x8x128xf32>
    tpu.vector_store %arg23[%c0_200, %c0_201, %c0_202], %442 {strides = array<i32>} : memref<1x8x128xf32, #tpu.memory_space<vmem>>, vector<1x8x128xf32>,
    return
  }
  func.func @transform_0(%arg0: i32) -> (i32, i32, i32) {
    %c0_i32 = arith.constant 0 : i32
    %c0_i32_0 = arith.constant 0 : i32
    %c0_i32_1 = arith.constant 0 : i32
    return %arg0, %c0_i32, %c0_i32_0 : i32, i32, i32
  }
  func.func @transform_1(%arg0: i32) -> (i32, i32, i32) {
    %c0_i32 = arith.constant 0 : i32
    %c0_i32_0 = arith.constant 0 : i32
    %c0_i32_1 = arith.constant 0 : i32
    %c0_i32_2 = arith.constant 0 : i32
    return %c0_i32, %c0_i32_0, %c0_i32_1 : i32, i32, i32
  }
  func.func @transform_2(%arg0: i32) -> (i32, i32, i32) {
    %c0_i32 = arith.constant 0 : i32
    %c0_i32_0 = arith.constant 0 : i32
    %c0_i32_1 = arith.constant 0 : i32
    %c0_i32_2 = arith.constant 0 : i32
    return %c0_i32, %c0_i32_0, %c0_i32_1 : i32, i32, i32
  }
  func.func @transform_3(%arg0: i32) -> (i32, i32, i32) {
    %c0_i32 = arith.constant 0 : i32
    %c0_i32_0 = arith.constant 0 : i32
    %c0_i32_1 = arith.constant 0 : i32
    %c0_i32_2 = arith.constant 0 : i32
    return %c0_i32, %c0_i32_0, %c0_i32_1 : i32, i32, i32
  }
  func.func @transform_4(%arg0: i32) -> (i32, i32, i32) {
    %c0_i32 = arith.constant 0 : i32
    %c0_i32_0 = arith.constant 0 : i32
    %c0_i32_1 = arith.constant 0 : i32
    %c0_i32_2 = arith.constant 0 : i32
    return %c0_i32, %c0_i32_0, %c0_i32_1 : i32, i32, i32
  }
  func.func @transform_5(%arg0: i32) -> (i32, i32, i32) {
    %c0_i32 = arith.constant 0 : i32
    %c0_i32_0 = arith.constant 0 : i32
    %c0_i32_1 = arith.constant 0 : i32
    %c0_i32_2 = arith.constant 0 : i32
    return %c0_i32, %c0_i32_0, %c0_i32_1 : i32, i32, i32
  }
  func.func @transform_6(%arg0: i32) -> (i32, i32, i32) {
    %c0_i32 = arith.constant 0 : i32
    %c0_i32_0 = arith.constant 0 : i32
    %c0_i32_1 = arith.constant 0 : i32
    %c0_i32_2 = arith.constant 0 : i32
    return %c0_i32, %c0_i32_0, %c0_i32_1 : i32, i32, i32
  }
  func.func @transform_7(%arg0: i32) -> (i32, i32, i32) {
    %c0_i32 = arith.constant 0 : i32
    %c0_i32_0 = arith.constant 0 : i32
    %c0_i32_1 = arith.constant 0 : i32
    %c0_i32_2 = arith.constant 0 : i32
    return %c0_i32, %c0_i32_0, %c0_i32_1 : i32, i32, i32
  }
  func.func @transform_8(%arg0: i32) -> (i32, i32, i32) {
    %c0_i32 = arith.constant 0 : i32
    %c0_i32_0 = arith.constant 0 : i32
    %c0_i32_1 = arith.constant 0 : i32
    %c0_i32_2 = arith.constant 0 : i32
    return %c0_i32, %c0_i32_0, %c0_i32_1 : i32, i32, i32
  }
  func.func @transform_9(%arg0: i32) -> (i32, i32, i32) {
    %c0_i32 = arith.constant 0 : i32
    %c0_i32_0 = arith.constant 0 : i32
    %c0_i32_1 = arith.constant 0 : i32
    %c0_i32_2 = arith.constant 0 : i32
    return %c0_i32, %c0_i32_0, %c0_i32_1 : i32, i32, i32
  }
  func.func @transform_10(%arg0: i32) -> (i32, i32, i32) {
    %c0_i32 = arith.constant 0 : i32
    %c0_i32_0 = arith.constant 0 : i32
    %c0_i32_1 = arith.constant 0 : i32
    %c0_i32_2 = arith.constant 0 : i32
    return %c0_i32, %c0_i32_0, %c0_i32_1 : i32, i32, i32
  }
  func.func @transform_11(%arg0: i32) -> (i32, i32, i32) {
    %c0_i32 = arith.constant 0 : i32
    %c0_i32_0 = arith.constant 0 : i32
    %c0_i32_1 = arith.constant 0 : i32
    %c0_i32_2 = arith.constant 0 : i32
    return %c0_i32, %c0_i32_0, %c0_i32_1 : i32, i32, i32
  }
  func.func @transform_12(%arg0: i32) -> (i32, i32, i32) {
    %c0_i32 = arith.constant 0 : i32
    %c0_i32_0 = arith.constant 0 : i32
    %c0_i32_1 = arith.constant 0 : i32
    %c0_i32_2 = arith.constant 0 : i32
    return %c0_i32, %c0_i32_0, %c0_i32_1 : i32, i32, i32
  }
  func.func @transform_13(%arg0: i32) -> (i32, i32, i32) {
    %c0_i32 = arith.constant 0 : i32
    %c0_i32_0 = arith.constant 0 : i32
    %c0_i32_1 = arith.constant 0 : i32
    %c0_i32_2 = arith.constant 0 : i32
    return %c0_i32, %c0_i32_0, %c0_i32_1 : i32, i32, i32
  }
  func.func @transform_14(%arg0: i32) -> (i32, i32, i32) {
    %c0_i32 = arith.constant 0 : i32
    %c0_i32_0 = arith.constant 0 : i32
    %c0_i32_1 = arith.constant 0 : i32
    %c0_i32_2 = arith.constant 0 : i32
    return %c0_i32, %c0_i32_0, %c0_i32_1 : i32, i32, i32
  }
  func.func @transform_15(%arg0: i32) -> (i32, i32) {
    %c0_i32 = arith.constant 0 : i32
    %c0_i32_0 = arith.constant 0 : i32
    %c0_i32_1 = arith.constant 0 : i32
    return %c0_i32, %c0_i32_0 : i32, i32
  }
  func.func @transform_16(%arg0: i32) -> (i32, i32) {
    %c0_i32 = arith.constant 0 : i32
    %c0_i32_0 = arith.constant 0 : i32
    %c0_i32_1 = arith.constant 0 : i32
    return %c0_i32, %c0_i32_0 : i32, i32
  }
  func.func @transform_17(%arg0: i32) -> (i32, i32) {
    %c0_i32 = arith.constant 0 : i32
    %c0_i32_0 = arith.constant 0 : i32
    %c0_i32_1 = arith.constant 0 : i32
    return %c0_i32, %c0_i32_0 : i32, i32
  }
  func.func @transform_18(%arg0: i32) -> (i32, i32) {
    %c0_i32 = arith.constant 0 : i32
    %c0_i32_0 = arith.constant 0 : i32
    %c0_i32_1 = arith.constant 0 : i32
    return %c0_i32, %c0_i32_0 : i32, i32
  }
  func.func @transform_19(%arg0: i32) -> (i32, i32) {
    %c0_i32 = arith.constant 0 : i32
    %c0_i32_0 = arith.constant 0 : i32
    %c0_i32_1 = arith.constant 0 : i32
    return %c0_i32, %c0_i32_0 : i32, i32
  }
  func.func @transform_20(%arg0: i32) -> (i32, i32) {
    %c0_i32 = arith.constant 0 : i32
    %c0_i32_0 = arith.constant 0 : i32
    %c0_i32_1 = arith.constant 0 : i32
    return %c0_i32, %c0_i32_0 : i32, i32
  }
  func.func @transform_21(%arg0: i32) -> (i32, i32) {
    %c0_i32 = arith.constant 0 : i32
    %c0_i32_0 = arith.constant 0 : i32
    %c0_i32_1 = arith.constant 0 : i32
    return %c0_i32, %c0_i32_0 : i32, i32
  }
  func.func @transform_22(%arg0: i32) -> (i32, i32, i32) {
    %c0_i32 = arith.constant 0 : i32
    %c0_i32_0 = arith.constant 0 : i32
    %c0_i32_1 = arith.constant 0 : i32
    return %arg0, %c0_i32, %c0_i32_0 : i32, i32, i32
  }
}

</mosaic_0001>

<bundles_post_ra>
// kernel: gmm_transformer_forward.1
= control target key start
LH: loop header
LB: loop body
LE: loop exit
PB: predicated region body
PF: predicated region fallthrough
CT: control target
= control target key end

     0   :  { %s7681_s0 = inlined_call_operand.vmem [shape: f32[1,8,30], index: 0, kind: input, shape index: {}]   ;;  %s7682_s1 = inlined_call_operand.vmem [shape: f32[4,30,32], index: 1, kind: input, shape index: {}]   ;;  %s7683_s2 = inlined_call_operand.vmem [shape: f32[4,1,32], index: 2, kind: input, shape index: {}]   ;;  %s7684_s3 = inlined_call_operand.vmem [shape: f32[2,32,96], index: 3, kind: input, shape index: {}]   ;;  %s7685_s4 = inlined_call_operand.vmem [shape: f32[2,1,96], index: 4, kind: input, shape index: {}]   ;;  %s7686_s5 = inlined_call_operand.vmem [shape: f32[2,32,32], index: 5, kind: input, shape index: {}]   ;;  %s7687_s6 = inlined_call_operand.vmem [shape: f32[2,1,32], index: 6, kind: input, shape index: {}]   ;;  %s7688_s7 = inlined_call_operand.vmem [shape: f32[2,32,64], index: 7, kind: input, shape index: {}]   ;;  %s7689_s8 = inlined_call_operand.vmem [shape: f32[2,1,64], index: 8, kind: input, shape index: {}]   ;;  %s7690_s9 = inlined_call_operand.vmem [shape: f32[2,64,32], index: 9, kind: input, shape index: {}]   ;;  %s7691_s10 = inlined_call_operand.hbm [shape: f32[2,1,32], index: 10, kind: input, shape index: {}]   ;;  %s7692_s11 = inlined_call_operand.hbm [shape: f32[2,1,32], index: 11, kind: input, shape index: {}]   ;;  %s7693_s12 = inlined_call_operand.hbm [shape: f32[2,1,32], index: 12, kind: input, shape index: {}]   ;;  %s7694_s13 = inlined_call_operand.hbm [shape: f32[2,1,32], index: 13, kind: input, shape index: {}]   ;;  %s7695_s14 = inlined_call_operand.hbm [shape: f32[2,1,32], index: 14, kind: input, shape index: {}]   ;;  %s7696_s15 = inlined_call_operand.hbm [shape: f32[32,128], index: 15, kind: input, shape index: {}]   ;;  %s7697_s16 = inlined_call_operand.hbm [shape: f32[1,128], index: 16, kind: input, shape index: {}]   ;;  %s7698_s17 = inlined_call_operand.vmem [shape: f32[18,384], index: 17, kind: input, shape index: {}]   ;;  %s7699_s18 = inlined_call_operand.vmem [shape: f32[18,384], index: 18, kind: input, shape index: {}]   ;;  %s7700_s19 = inlined_call_operand.hbm [shape: f32[32,32], index: 19, kind: input, shape index: {}]   ;;  %s7701_s20 = inlined_call_operand.hbm [shape: f32[1,18], index: 20, kind: input, shape index: {}]   ;;  %s7702_s21 = inlined_call_operand.hbm [shape: f32[1,18], index: 21, kind: input, shape index: {}]   ;;  %s7703_s22 = inlined_call_operand.vmem [shape: f32[1,8,128], index: 22, kind: output, shape index: {}]  }
   0x1   :  { %7710 = sst [smem:[#allocation24_spill]] %s7681_s0 }
   0x2   :  { %7711 = sst [smem:[#allocation25_spill]] %s7682_s1 }
   0x3   :  { %7712 = sst [smem:[#allocation26_spill]] %s7683_s2 }
   0x4   :  { %7713 = sst [smem:[#allocation27_spill]] %s7684_s3 }
   0x5   :  { %7714 = sst [smem:[#allocation28_spill]] %s7685_s4 }
   0x6   :  { %7715 = sst [smem:[#allocation29_spill]] %s7686_s5 }
   0x7   :  { %7716 = sst [smem:[#allocation30_spill]] %s7687_s6 }
   0x8   :  { %27 = vsyncpa [#allocation3], 0 }
   0x9   :  { %28 = vsyncpa [#allocation5], 0 }
   0xa   :  { %29 = vsyncpa [#allocation8], 0 }
   0xb   :  { %30 = vsyncpa [#allocation11], 0 }
   0xc   :  { %31 = vsyncpa [#allocation14], 0 }
   0xd   :  { %32 = vsyncpa [#allocation17], 0  ;;  %s6417_s3 = smov [#allocation4]   ;;  %s6418_s29 = smov [#allocation7]  }
   0xe   :  { %s70_s28 = sshll.u32 %s6417_s3, 4  ;;  %s94_s30 = sshll.u32 %s6418_s29, 4  ;;  %s71_s28 = int_to_ptr.vmem [resolvable:$true] %s70_s28  ;;  %s95_s30 = int_to_ptr.vmem [resolvable:$true] %s94_s30 }
   0xf   :  { %s6213_s4 = scalar_lea.vmem %s71_s28, 32  ;;  %p6218_p1 = scmp.lt.s32.totalorder %s71_s28, %s71_s28 }
  0x10   :  { %p6214_p0 = scmp.ne.s32.totalorder %s71_s28, %s6213_s4  ;;  %p6219_p2 = scmp.lt.s32.totalorder %s6213_s4, %s6213_s4 }
  0x12   :  { %p6220_p3 = por %p6219_p2, %p6218_p1 }
  0x14   :  { %p6221_p4 = pnand %p6220_p3, %p6214_p0 }
  0x16   :  { %6224 = shalt.err (!%p6221_p4)
}
  0x17   :  { %s6419_s0 = smov 16   ;;  %s6420_s23 = smov 1  }
  0x18   :  { %76 = dma.hbm_to_vmem [thread:$0]  %s7692_s11, 32, %s71_s28, [#allocation5], %s6419_s0, %s6419_s0, %s6420_s23  }
  0x19   :  { %s6233_s24 = scalar_lea.vmem %s95_s30, 32  ;;  %p6238_p6 = scmp.lt.s32.totalorder %s95_s30, %s95_s30 }
  0x1a   :  { %p6234_p5 = scmp.ne.s32.totalorder %s95_s30, %s6233_s24  ;;  %p6239_p7 = scmp.lt.s32.totalorder %s6233_s24, %s6233_s24 }
  0x1c   :  { %p6240_p8 = por %p6239_p7, %p6238_p6 }
  0x1e   :  { %p6241_p9 = pnand %p6240_p8, %p6234_p5 }
  0x20   :  { %6244 = shalt.err (!%p6241_p9)
}
  0x21   :  { %100 = dma.hbm_to_vmem [thread:$0]  %s7694_s13, 32, %s95_s30, [#allocation8], %s6419_s0, %s6419_s0, %s6420_s23  }
  0x22   :  { %s6421_s26 = smov [#allocation10]  }
  0x23   :  { %s118_s2 = sshll.u32 %s6421_s26, 4  ;;  %s119_s2 = int_to_ptr.vmem [resolvable:$true] %s118_s2 }
  0x24   :  { %s6253_s27 = scalar_lea.vmem %s119_s2, 512  ;;  %p6258_p11 = scmp.lt.s32.totalorder %s119_s2, %s119_s2 }
  0x25   :  { %p6254_p10 = scmp.ne.s32.totalorder %s119_s2, %s6253_s27  ;;  %p6259_p12 = scmp.lt.s32.totalorder %s6253_s27, %s6253_s27 }
  0x27   :  { %p6260_p13 = por %p6259_p12, %p6258_p11 }
  0x29   :  { %p6261_p0 = pnand %p6260_p13, %p6254_p10 }
  0x2b   :  { %6264 = shalt.err (!%p6261_p0)
}
  0x2c   :  { %s6422_s11 = smov 128   ;;  %s6423_s3 = smov 8  }
  0x2d   :  { %124 = dma.hbm_to_vmem [thread:$0]  %s7696_s15, 512, %s119_s2, [#allocation11], %s6422_s11, %s6422_s11, %s6423_s3  }
  0x2e   :  { %s6424_s4 = smov [#allocation13]   ;;  %s6425_s13 = smov [#allocation2]  }
  0x2f   :  { %s144_s1 = sshll.u32 %s6424_s4, 4  ;;  %s58_s30 = sshll.u32 %s6425_s13, 4  ;;  %s145_s1 = int_to_ptr.vmem [resolvable:$true] %s144_s1  ;;  %s59_s30 = int_to_ptr.vmem [resolvable:$true] %s58_s30 }
  0x30   :  { %s6273_s5 = scalar_lea.vmem %s145_s1, 512  ;;  %p6278_p2 = scmp.lt.s32.totalorder %s145_s1, %s145_s1 }
  0x31   :  { %p6274_p1 = scmp.ne.s32.totalorder %s145_s1, %s6273_s5  ;;  %p6279_p3 = scmp.lt.s32.totalorder %s6273_s5, %s6273_s5 }
  0x33   :  { %p6280_p4 = por %p6279_p3, %p6278_p2 }
  0x35   :  { %p6281_p5 = pnand %p6280_p4, %p6274_p1 }
  0x37   :  { %6284 = shalt.err (!%p6281_p5)
}
  0x38   :  { %150 = dma.hbm_to_vmem [thread:$0]  %s7700_s19, 512, %s145_s1, [#allocation14], %s6422_s11, %s6422_s11, %s6423_s3  }
  0x39   :  { %s6293_s25 = scalar_lea.vmem %s59_s30, 32  ;;  %p6298_p7 = scmp.lt.s32.totalorder %s59_s30, %s59_s30 }
  0x3a   :  { %p6294_p6 = scmp.ne.s32.totalorder %s59_s30, %s6293_s25  ;;  %p6299_p8 = scmp.lt.s32.totalorder %s6293_s25, %s6293_s25 }
  0x3c   :  { %p6300_p9 = por %p6299_p8, %p6298_p7 }
  0x3e   :  { %p6301_p10 = pnand %p6300_p9, %p6294_p6 }
  0x40   :  { %6304 = shalt.err (!%p6301_p10)
}
  0x41   :  { %64 = dma.hbm_to_vmem [thread:$0]  %s7691_s10, 32, %s59_s30, [#allocation3], %s6419_s0, %s6419_s0, %s6420_s23  }
  0x42   :  { %s6426_s2 = smov [#allocation6]   ;;  %s6427_s28 = smov [#allocation9]  }
  0x43   :  { %s82_s27 = sshll.u32 %s6426_s2, 4  ;;  %s106_s19 = sshll.u32 %s6427_s28, 4  ;;  %s83_s27 = int_to_ptr.vmem [resolvable:$true] %s82_s27  ;;  %s107_s19 = int_to_ptr.vmem [resolvable:$true] %s106_s19 }
  0x44   :  { %s6313_s11 = scalar_lea.vmem %s83_s27, 32  ;;  %p6318_p12 = scmp.lt.s32.totalorder %s83_s27, %s83_s27 }
  0x45   :  { %p6314_p11 = scmp.ne.s32.totalorder %s83_s27, %s6313_s11  ;;  %p6319_p13 = scmp.lt.s32.totalorder %s6313_s11, %s6313_s11 }
  0x47   :  { %p6320_p0 = por %p6319_p13, %p6318_p12 }
  0x49   :  { %p6321_p1 = pnand %p6320_p0, %p6314_p11 }
  0x4b   :  { %6324 = shalt.err (!%p6321_p1)
}
  0x4c   :  { %88 = dma.hbm_to_vmem [thread:$0]  %s7693_s12, 32, %s83_s27, [#allocation5], %s6419_s0, %s6419_s0, %s6420_s23  }
  0x4d   :  { %s6333_s10 = scalar_lea.vmem %s107_s19, 32  ;;  %p6338_p3 = scmp.lt.s32.totalorder %s107_s19, %s107_s19 }
  0x4e   :  { %p6334_p2 = scmp.ne.s32.totalorder %s107_s19, %s6333_s10  ;;  %p6339_p4 = scmp.lt.s32.totalorder %s6333_s10, %s6333_s10 }
  0x50   :  { %p6340_p5 = por %p6339_p4, %p6338_p3 }
  0x52   :  { %p6341_p6 = pnand %p6340_p5, %p6334_p2 }
  0x54   :  { %6344 = shalt.err (!%p6341_p6)
}
  0x55   :  { %112 = dma.hbm_to_vmem [thread:$0]  %s7695_s14, 32, %s107_s19, [#allocation8], %s6419_s0, %s6419_s0, %s6420_s23  }
  0x56   :  { %s6428_s13 = smov [#allocation12]   ;;  %s6429_s5 = smov [#allocation15]  }
  0x57   :  { %s131_s30 = sshll.u32 %s6428_s13, 4  ;;  %s157_s12 = sshll.u32 %s6429_s5, 4  ;;  %s132_s30 = int_to_ptr.vmem [resolvable:$true] %s131_s30  ;;  %s158_s12 = int_to_ptr.vmem [resolvable:$true] %s157_s12 }
  0x58   :  { %s6353_s24 = scalar_lea.vmem %s132_s30, 16  ;;  %s6357_s6 = scalar_lea.vmem %s132_s30, 32 }
  0x59   :  { %p6354_p7 = scmp.ne.s32.totalorder %s132_s30, %s6353_s24  ;;  %p6358_p8 = scmp.lt.s32.totalorder %s132_s30, %s132_s30 }
  0x5a   :  { %p6359_p9 = scmp.lt.s32.totalorder %s6357_s6, %s6353_s24 }
  0x5c   :  { %p6360_p10 = por %p6359_p9, %p6358_p8 }
  0x5e   :  { %p6361_p11 = pnand %p6360_p10, %p6354_p7 }
  0x60   :  { %6364 = shalt.err (!%p6361_p11)
}
  0x61   :  { %134 = dma.hbm_to_vmem [thread:$0]  %s7697_s16, 16, %s132_s30, [#allocation11]  }
  0x62   :  { %s6373_s26 = scalar_lea.vmem %s158_s12, 16  ;;  %s6377_s14 = scalar_lea.vmem %s158_s12, 32 }
  0x63   :  { %p6374_p12 = scmp.ne.s32.totalorder %s158_s12, %s6373_s26  ;;  %p6378_p13 = scmp.lt.s32.totalorder %s158_s12, %s158_s12 }
  0x64   :  { %p6379_p0 = scmp.lt.s32.totalorder %s6377_s14, %s6373_s26 }
  0x66   :  { %p6380_p1 = por %p6379_p0, %p6378_p13 }
  0x68   :  { %p6381_p2 = pnand %p6380_p1, %p6374_p12 }
  0x6a   :  { %6384 = shalt.err (!%p6381_p2)
}
  0x6b   :  { %160 = dma.hbm_to_vmem [thread:$0]  %s7701_s20, 16, %s158_s12, [#allocation14]  }
  0x6c   :  { %s6430_s2 = smov [#allocation16]  }
  0x6d   :  { %s167_s27 = sshll.u32 %s6430_s2, 4  ;;  %s168_s27 = int_to_ptr.vmem [resolvable:$true] %s167_s27 }
  0x6e   :  { %s6393_s28 = scalar_lea.vmem %s168_s27, 16  ;;  %s6397_s19 = scalar_lea.vmem %s168_s27, 32 }
  0x6f   :  { %p6394_p3 = scmp.ne.s32.totalorder %s168_s27, %s6393_s28  ;;  %p6398_p4 = scmp.lt.s32.totalorder %s168_s27, %s168_s27 }
  0x70   :  { %p6399_p5 = scmp.lt.s32.totalorder %s6397_s19, %s6393_s28 }
  0x72   :  { %p6400_p6 = por %p6399_p5, %p6398_p4 }
  0x74   :  { %p6401_p7 = pnand %p6400_p6, %p6394_p3 }
  0x76   :  { %6404 = shalt.err (!%p6401_p7)
}
  0x77   :  { %170 = dma.hbm_to_vmem [thread:$0]  %s7702_s21, 16, %s168_s27, [#allocation17]  }
  0x78   :  { %6405 = dma.done.wait [#allocation3], 32  }
  0x79   :  { %6406 = vsyncadd [#allocation3], 4294967264 }
  0x7a   :  { %6407 = dma.done.wait [#allocation5], 64  }
  0x7b   :  { %6408 = vsyncadd [#allocation5], 4294967232 }
  0x7c   :  { %6409 = dma.done.wait [#allocation8], 64  }
  0x7d   :  { %6410 = vsyncadd [#allocation8], 4294967232 }
  0x7e   :  { %6411 = dma.done.wait [#allocation11], 528  }
  0x7f   :  { %6412 = vsyncadd [#allocation11], 4294966768 }
  0x80   :  { %6413 = dma.done.wait [#allocation14], 528  }
  0x81   :  { %6414 = vsyncadd [#allocation14], 4294966768 }
  0x82   :  { %6415 = dma.done.wait [#allocation17], 16  }
  0x83   :  { %6416 = vsyncadd [#allocation17], 4294967280  ;;  %v6431_v0 = vmov 0.0   ;;  %vm6432_vm0 = vmmov 0   ;;  %vm217_vm1 = vcmask 1045504   ;;  %s7717_s3 = sld [smem:[#allocation25_spill]] }
  0x84   :  { %5535 = vmatprep.subr.mxu0 %v6431_v0  ;;  %5546 = vmatprep.subr.mxu1 %v6431_v0  ;;  %s7718_s2 = sld [smem:[#allocation24_spill]]  ;;  %vm213_vm2 = vcmask 244736   ;;  %vm587_vm3 = vcmask 261120   ;;  %vm697_vm4 = vcmask 64512   ;;  %s6433_s30 = smov 96   ;;  %v6770_v55 = vld [vmem:[#allocation13 + $0x8] sm:$0xff] }
  0x85   :  { %5543 = vmatprep.mubr.msk.f32.mxu0 %vm6432_vm0, %v6431_v0  ;;  %5554 = vmatprep.mubr.msk.f32.mxu1 %vm6432_vm0, %v6431_v0  ;;  %s7719_s15 = sld [smem:[#allocation27_spill]]  ;;  %s6434_s5 = smov 64   ;;  %v6772_v57 = vld [vmem:[#allocation13] sm:$0xff]  ;;  %v6775_v60 = vld [vmem:[#allocation13 + $0x18] sm:$0xff]  ;;  %vm2402_vm5 = vcmask 523264   ;;  %vm4702_vm6 = vcmask 1041408  }
  0x86   :  { %s7720_s19 = sld [smem:[#allocation26_spill]]  ;;  %s6435_s12 = smov 88   ;;  %vm4698_vm8 = vcmask 146432  }
  0x87   :  { %s7721_s13 = sld [smem:[#allocation28_spill]]  ;;  %s6436_s24 = smov 120  }
  0x88   :  { %s6437_s6 = smov 80   ;;  %s6438_s25 = smov 112  }
  0x89   :  { %v205_v1 = vld [vmem:[%s7717_s3 + $0x18] sm:$0x3f]  ;;  %v204_v3 = vld [vmem:[%s7717_s3 + $0x10] sm:$0xff]  ;;  %v203_v5 = vld [vmem:[%s7717_s3 + $0x8] sm:$0xff]  ;;  %s6440_s26 = smov 72   ;;  %s6441_s14 = smov 104  }
  0x8a   :  { %v5052_v2 = vld [vmem:[%s7717_s3 + $0x38] sm:$0x3f]  ;;  %5536 = vmatpush3.msk.msra.mxu0 %vm217_vm1, %v205_v1  ;;  %v5051_v4 = vld [vmem:[%s7717_s3 + $0x30] sm:$0xff]  ;;  %v5050_v6 = vld [vmem:[%s7717_s3 + $0x28] sm:$0xff]  ;;  %s6442_s0 = smov 48   ;;  %s7722_s27 = sld [smem:[#allocation29_spill]] }
  0x8b   :  { %5547 = vmatpush3.msk.msra.mxu1 %vm217_vm1, %v5052_v2  ;;  %5537 = vmatprep.subr.mxu0 %v6431_v0  ;;  %v202_v7 = vld [vmem:[%s7717_s3] sm:$0xff]  ;;  %v5060_v10 = vld [vmem:[%s7717_s3 + $0x58] sm:$0x3f]  ;;  %v5059_v12 = vld [vmem:[%s7717_s3 + $0x50] sm:$0xff]  ;;  %s6443_s16 = smov 40   ;;  %s7723_s1 = sld [smem:[#allocation30_spill]] }
  0x8c   :  { %5548 = vmatprep.subr.mxu1 %v6431_v0  ;;  %5538 = vmatpush3.msra.mxu0 %v204_v3  ;;  %v5049_v8 = vld [vmem:[%s7717_s3 + $0x20] sm:$0xff]  ;;  %v5068_v11 = vld [vmem:[%s7717_s3 + $0x78] sm:$0x3f]  ;;  %v5067_v13 = vld [vmem:[%s7717_s3 + $0x70] sm:$0xff] }
  0x8d   :  { %5549 = vmatpush3.msra.mxu1 %v5051_v4  ;;  %5539 = vmatprep.subr.mxu0 %v6431_v0  ;;  %v201_v9 = vld [vmem:[%s7718_s2] sm:$0xff]  ;;  %v5058_v14 = vld [vmem:[%s7717_s3 + $0x48] sm:$0xff]  ;;  %v556_v18 = vld [vmem:[%s7719_s15 + $0x18] sm:$0xff] }
  0x8e   :  { %5550 = vmatprep.subr.mxu1 %v6431_v0  ;;  %5540 = vmatpush3.msra.mxu0 %v203_v5  ;;  %v5066_v15 = vld [vmem:[%s7717_s3 + $0x68] sm:$0xff]  ;;  %v5057_v16 = vld [vmem:[%s7717_s3 + $0x40] sm:$0xff]  ;;  %v555_v19 = vld [vmem:[%s7719_s15 + $0x10] sm:$0xff] }
  0x8f   :  { %5551 = vmatpush3.msra.mxu1 %v5050_v6  ;;  %5541 = vmatprep.subr.mxu0 %v6431_v0  ;;  %v5065_v17 = vld [vmem:[%s7717_s3 + $0x60] sm:$0xff]  ;;  %v554_v20 = vld [vmem:[%s7719_s15 + $0x8] sm:$0xff]  ;;  %s6439_s3 = smov 56  }
  0x90   :  { %5552 = vmatprep.subr.mxu1 %v6431_v0  ;;  %5542 = vmatpush3.msra.mxu0 %v202_v7  ;;  %v553_v21 = vld [vmem:[%s7719_s15] sm:$0xff] }
  0x91   :  { %5553 = vmatpush3.msra.mxu1 %v5049_v8  ;;  %5544 = vmatmul.mubr.msk.f32.vlgmr.msra.gmra.mxu0 %vm213_vm2, %v201_v9  ;;  %v5046_v22 = vld [vmem:[%s7720_s19] ss:$0 sm:$0xff]  ;;  %v5054_v23 = vld [vmem:[%s7720_s19 + $0x1] ss:$0 sm:$0xff]  ;;  %v5062_v30 = vld [vmem:[%s7720_s19 + $0x2] ss:$0 sm:$0xff] }
  0x92   :  { %5555 = vmatmul.mubr.msk.f32.vlgmr.msra.gmra.mxu1 %vm213_vm2, %v201_v9  ;;  %5557 = vmatprep.subr.mxu0 %v6431_v0  ;;  %v5070_v31 = vld [vmem:[%s7720_s19 + $0x3] ss:$0 sm:$0xff]  ;;  %v5073_v38 = vld [vmem:[%s7721_s13] ss:$0 sm:$0xff] }
  0x93   :  { %5568 = vmatprep.subr.mxu1 %v6431_v0  ;;  %5558 = vmatpush3.msk.msra.mxu0 %vm217_vm1, %v5060_v10  ;;  %v6781_v4 = vld [vmem:[#allocation13 + $0x10] sm:$0xff] }
  0x94   :  { %5569 = vmatpush3.msk.msra.mxu1 %vm217_vm1, %v5068_v11  ;;  %5559 = vmatprep.subr.mxu0 %v6431_v0 }
  0x95   :  { %5570 = vmatprep.subr.mxu1 %v6431_v0  ;;  %5560 = vmatpush3.msra.mxu0 %v5059_v12 }
  0x96   :  { %5571 = vmatpush3.msra.mxu1 %v5067_v13  ;;  %5561 = vmatprep.subr.mxu0 %v6431_v0 }
  0x97   :  { %5572 = vmatprep.subr.mxu1 %v6431_v0  ;;  %5562 = vmatpush3.msra.mxu0 %v5058_v14 }
  0x98   :  { %5573 = vmatpush3.msra.mxu1 %v5066_v15  ;;  %5563 = vmatprep.subr.mxu0 %v6431_v0 }
  0x99   :  { %5574 = vmatprep.subr.mxu1 %v6431_v0  ;;  %5564 = vmatpush3.msra.mxu0 %v5057_v16 }
  0x9a   :  { %5565 = vmatprep.mubr.msk.f32.mxu0 %vm6432_vm0, %v6431_v0  ;;  %5575 = vmatpush3.msra.mxu1 %v5065_v17 }
  0x9b   :  { %5576 = vmatprep.mubr.msk.f32.mxu1 %vm6432_vm0, %v6431_v0  ;;  %5566 = vmatmul.mubr.msk.f32.vlgmr.msra.gmra.mxu0 %vm213_vm2, %v201_v9 }
  0x9c   :  { %5577 = vmatmul.mubr.msk.f32.vlgmr.msra.gmra.mxu1 %vm213_vm2, %v201_v9  ;;  %5579 = vmatprep.subr.mxu0 %v556_v18 }
  0x9d   :  { %5580 = vmatpush3.msra.mxu0 %v556_v18 }
  0x9e   :  { %5581 = vmatprep.subr.mxu0 %v555_v19 }
  0x9f   :  { %5582 = vmatpush3.msra.mxu0 %v555_v19 }
  0xa0   :  { %5583 = vmatprep.subr.mxu0 %v554_v20 }
  0xa1   :  { %5584 = vmatpush3.msra.mxu0 %v554_v20 }
  0xa2   :  { %5585 = vmatprep.subr.mxu0 %v553_v21 }
  0xa3   :  { %5586 = vmatpush3.msra.mxu0 %v553_v21 }
 0x151   :  { %v287_v24 = vpop.f32.mrf.mxu0 }
 0x152   :  { %v373_v25 = vpop.f32.mrf.mxu1  ;;  %v6705_v26 = vadd.f32 %v5046_v22, %v287_v24 }
 0x153   :  { %v6707_v27 = vadd.f32 %v5054_v23, %v373_v25  ;;  %v5545_v28 = vpop.f32.mrf.mxu0 }
 0x154   :  { %v5556_v29 = vpop.f32.mrf.mxu1  ;;  %5587 = vmatprep.mubr.msk.f32.mxu0 %vm587_vm3, %v6705_v26 }
 0x155   :  { %5588 = vmatmul.mubr.msk.f32.vlgmr.msra.gmra.mxu0 %vm587_vm3, %v6707_v27 }
 0x15b   :  { %v459_v32 = vpop.f32.mrf.mxu0 }
 0x15c   :  { %v545_v33 = vpop.f32.mrf.mxu1  ;;  %v6719_v34 = vadd.f32 %v5062_v30, %v459_v32 }
 0x15d   :  { %v6721_v35 = vadd.f32 %v5070_v31, %v545_v33  ;;  %v5567_v36 = vpop.f32.mrf.mxu0 }
 0x15e   :  { %v5578_v37 = vpop.f32.mrf.mxu1  ;;  %5590 = vmatprep.mubr.msk.f32.mxu0 %vm587_vm3, %v6719_v34 }
 0x15f   :  { %5591 = vmatmul.mubr.msk.f32.gmra.mxu0 %vm587_vm3, %v6721_v35 }
 0x215   :  { %v5589_v39 = vpop.f32.mrf.mxu0 }
 0x216   :  { %v6730_v40 = vadd.f32 %v5589_v39, %v5073_v38 }
 0x217   :  { %v666_v41 = vpop.f32.mrf.mxu0 }
 0x218   :  { %v6732_v42 = vadd.f32 %v5073_v38, %v666_v41  ;;  %691 = vrot.lane.b32.xlu1 %v6730_v40, %s6433_s30 }
 0x21a   :  { %5601 = vmatprep.mubr.msk.f32.mxu1 %vm697_vm4, %v6732_v42 }
 0x21c   :  { %689 = vrot.lane.b32.xlu1 %v6732_v42, %s6433_s30 }
 0x21f   :  { %v5592_v43 = vpop.f32.mrf.mxu0 }
 0x220   :  { %v6740_v44 = vadd.f32 %v5592_v43, %v5073_v38 }
 0x221   :  { %v676_v45 = vpop.f32.mrf.mxu0 }
 0x222   :  { %695 = vrot.lane.b32.xlu0 %v6740_v44, %s6433_s30  ;;  %849 = vrot.lane.b32.xlu1 %v6740_v44, %s6434_s5  ;;  %v6746_v46 = vadd.f32 %v5073_v38, %v676_v45 }
 0x226   :  { %693 = vrot.lane.b32.xlu0 %v6746_v46, %s6433_s30  ;;  %845 = vrot.lane.b32.xlu1 %v6730_v40, %s6434_s5 }
 0x22a   :  { %847 = vrot.lane.b32.xlu0 %v6746_v46, %s6434_s5  ;;  %843 = vrot.lane.b32.xlu1 %v6732_v42, %s6434_s5 }
 0x28a   :  { %v692_v47 = vpop.permute.xlu1 %691 }
 0x28e   :  { %v690_v48 = vpop.permute.xlu1 %689 }
 0x294   :  { %v696_v49 = vpop.permute.xlu0 %695  ;;  %v850_v50 = vpop.permute.xlu1 %849 }
 0x295   :  { %5593 = vmatprep.subr.msk.mxu1 %vm697_vm4, %v696_v49  ;;  %5607 = vmatprep.subr.mxu0 %v850_v50 }
 0x296   :  { %5594 = vmatpush3.xpose.msk.msra.mxu1 %vm697_vm4, %v696_v49  ;;  %5608 = vmatpush3.msra.mxu0 %v850_v50 }
 0x298   :  { %v694_v51 = vpop.permute.xlu0 %693  ;;  %v846_v52 = vpop.permute.xlu1 %845 }
 0x299   :  { %5595 = vmatprep.subr.msk.mxu1 %vm697_vm4, %v694_v51 }
 0x29a   :  { %5596 = vmatpush3.xpose.msk.msra.mxu1 %vm697_vm4, %v694_v51 }
 0x29b   :  { %5597 = vmatprep.subr.msk.mxu1 %vm697_vm4, %v692_v47 }
 0x29c   :  { %v848_v53 = vpop.permute.xlu0 %847  ;;  %v844_v54 = vpop.permute.xlu1 %843 }
 0x29d   :  { %5609 = vmatprep.subr.mxu0 %v848_v53 }
 0x29e   :  { %5598 = vmatpush3.xpose.msk.msra.mxu1 %vm697_vm4, %v692_v47  ;;  %5610 = vmatpush3.msra.mxu0 %v848_v53 }
 0x29f   :  { %5599 = vmatprep.subr.msk.mxu1 %vm697_vm4, %v690_v48  ;;  %5611 = vmatprep.subr.mxu0 %v846_v52 }
 0x2a0   :  { %5612 = vmatpush3.msra.mxu0 %v846_v52 }
 0x2a1   :  { %5613 = vmatprep.subr.mxu0 %v844_v54 }
 0x2a2   :  { %5600 = vmatpush3.xpose.msk.msra.mxu1 %vm697_vm4, %v690_v48  ;;  %5614 = vmatpush3.msra.mxu0 %v844_v54 }
 0x2a5   :  { %5602 = vmatmul.mubr.msk.f32.vlgmr.msra.gmra.mxu1 %vm697_vm4, %v6730_v40 }
 0x2a6   :  { %5604 = vmatprep.mubr.msk.f32.mxu1 %vm697_vm4, %v6746_v46 }
 0x2a9   :  { %5605 = vmatmul.mubr.msk.f32.gmra.mxu1 %vm697_vm4, %v6740_v44 }
 0x365   :  { %v5603_v56 = vpop.f32.mrf.mxu1 }
 0x366   :  { %v786_v58 = vadd.f32 %v5603_v56, %v6770_v55 }
 0x367   :  { %v780_v59 = vpop.f32.mrf.mxu1 }
 0x368   :  { %v781_v61 = vadd.f32 %v780_v59, %v6772_v57  ;;  %v802_v62 = vsel %vm587_vm3, %v786_v58, -inf }
 0x369   :  { %803 = vmax.xlane.f32.xlu1 %v802_v62  ;;  %v5606_v63 = vpop.f32.mrf.mxu1 }
 0x36a   :  { %v796_v1 = vadd.f32 %v5606_v63, %v6775_v60  ;;  %v799_v2 = vsel %vm587_vm3, %v781_v61, -inf }
 0x36b   :  { %v790_v3 = vpop.f32.mrf.mxu1  ;;  %800 = vmax.xlane.f32.xlu0 %v799_v2 }
 0x36c   :  { %v791_v5 = vadd.f32 %v790_v3, %v6781_v4  ;;  %v808_v6 = vsel %vm587_vm3, %v796_v1, -inf }
 0x36e   :  { %v805_v7 = vsel %vm587_vm3, %v791_v5, -inf }
 0x36f   :  { %809 = vmax.xlane.f32.xlu0 %v808_v6 }
 0x373   :  { %806 = vmax.xlane.f32.xlu0 %v805_v7 }
 0x37a   :  { %964 = vrot.lane.b32.xlu1 %v6746_v46, %s6435_s12 }
 0x389   :  { %966 = vrot.lane.b32.xlu0 %v6740_v44, %s6435_s12 }
 0x3f2   :  { %v804_v8 = vpop.xlane.xlu1 %803 }
 0x3f3   :  { %v812_v9 = vsub.f32 %v786_v58, %v804_v8 }
 0x3f4   :  { %v801_v10 = vpop.xlane.xlu0 %800 }
 0x3f5   :  { %v817_v11 = vmul.f32 1.442695, %v812_v9  ;;  %v811_v12 = vsub.f32 %v781_v61, %v801_v10 }
 0x3f6   :  { %v965_v31 = vpop.permute.xlu1 %964 }
 0x3f7   :  { %6023 = vpow2.f32 %v817_v11  ;;  %v815_v13 = vmul.f32 1.442695, %v811_v12 }
 0x3f8   :  { %v810_v14 = vpop.xlane.xlu0 %809 }
 0x3f9   :  { %6025 = vpow2.f32 %v815_v13  ;;  %v814_v21 = vsub.f32 %v796_v1, %v810_v14 }
 0x3fb   :  { %v821_v23 = vmul.f32 1.442695, %v814_v21 }
 0x3fc   :  { %v807_v15 = vpop.xlane.xlu0 %806 }
 0x3fd   :  { %v813_v22 = vsub.f32 %v791_v5, %v807_v15  ;;  %6027 = vpow2.f32 %v821_v23 }
 0x3ff   :  { %v819_v24 = vmul.f32 1.442695, %v813_v22 }
 0x400   :  { %v967_v16 = vpop.permute.xlu0 %966 }
 0x401   :  { %5621 = vmatprep.subr.msk.mxu0 %vm697_vm4, %v967_v16  ;;  %6029 = vpow2.f32 %v819_v24 }
 0x404   :  { %v6024_v17 = vpop.eup %6023 }
 0x405   :  { %v826_v18 = vsel %vm587_vm3, %v6024_v17, 0.0 }
 0x406   :  { %v6026_v19 = vpop.eup %6025  ;;  %827 = vadd.xlane.f32.xlu0 %v826_v18 }
 0x407   :  { %v823_v20 = vsel %vm587_vm3, %v6026_v19, 0.0 }
 0x408   :  { %824 = vadd.xlane.f32.xlu1 %v823_v20 }
 0x40a   :  { %v6028_v25 = vpop.eup %6027 }
 0x40b   :  { %v832_v29 = vsel %vm587_vm3, %v6028_v25, 0.0 }
 0x40e   :  { %v6030_v28 = vpop.eup %6029 }
 0x40f   :  { %v829_v30 = vsel %vm587_vm3, %v6030_v28, 0.0 }
 0x419   :  { %960 = vrot.lane.b32.xlu1 %v6732_v42, %s6435_s12 }
 0x41c   :  { %962 = vrot.lane.b32.xlu0 %v6730_v40, %s6435_s12 }
 0x43b   :  { %833 = vadd.xlane.f32.xlu0 %v832_v29 }
 0x43d   :  { %830 = vadd.xlane.f32.xlu1 %v829_v30 }
 0x44e   :  { %954 = vrot.lane.b32.xlu1 %v6730_v40, %s6436_s24 }
 0x451   :  { %952 = vrot.lane.b32.xlu0 %v6732_v42, %s6436_s24 }
 0x452   :  { %958 = vrot.lane.b32.xlu1 %v6740_v44, %s6436_s24 }
 0x455   :  { %956 = vrot.lane.b32.xlu0 %v6746_v46, %s6436_s24 }
 0x456   :  { %1331 = vrot.lane.b32.xlu1 %v6746_v46, %s6437_s6 }
 0x459   :  { %1333 = vrot.lane.b32.xlu0 %v6740_v44, %s6437_s6 }
 0x45a   :  { %1327 = vrot.lane.b32.xlu1 %v6732_v42, %s6437_s6 }
 0x45d   :  { %1329 = vrot.lane.b32.xlu0 %v6730_v40, %s6437_s6 }
 0x45e   :  { %1321 = vrot.lane.b32.xlu1 %v6730_v40, %s6438_s25 }
 0x461   :  { %1319 = vrot.lane.b32.xlu0 %v6732_v42, %s6438_s25 }
 0x462   :  { %1325 = vrot.lane.b32.xlu1 %v6740_v44, %s6438_s25 }
 0x465   :  { %1323 = vrot.lane.b32.xlu0 %v6746_v46, %s6438_s25 }
 0x48f   :  { %v828_v32 = vpop.xlane.xlu0 %827 }
 0x490   :  { %6031 = vrcp.f32 %v828_v32 }
 0x491   :  { %v825_v33 = vpop.xlane.xlu1 %824 }
 0x492   :  { %6033 = vrcp.f32 %v825_v33 }
 0x493   :  { %v963_v41 = vpop.permute.xlu0 %962 }
 0x495   :  { %v961_v43 = vpop.permute.xlu1 %960 }
 0x49d   :  { %v6032_v36 = vpop.eup %6031 }
 0x49e   :  { %v840_v39 = vmul.f32 %v6032_v36, %v6024_v17 }
 0x49f   :  { %v6034_v37 = vpop.eup %6033 }
 0x4a0   :  { %v839_v38 = vmul.f32 %v6034_v37, %v6026_v19 }
 0x4a2   :  { %5615 = vmatprep.mubr.msk.f32.mxu0 %vm587_vm3, %v839_v38 }
 0x4a3   :  { %5616 = vmatmul.mubr.msk.f32.vlgmr.msra.gmra.mxu0 %vm587_vm3, %v840_v39 }
 0x4a4   :  { %5622 = vmatpush3.xpose.msk.msra.mxu0 %vm697_vm4, %v967_v16 }
 0x4a5   :  { %5623 = vmatprep.subr.msk.mxu0 %vm697_vm4, %v965_v31 }
 0x4a8   :  { %5624 = vmatpush3.xpose.msk.msra.mxu0 %vm697_vm4, %v965_v31 }
 0x4a9   :  { %5625 = vmatprep.subr.msk.mxu0 %vm697_vm4, %v963_v41 }
 0x4ac   :  { %5626 = vmatpush3.xpose.msk.msra.mxu0 %vm697_vm4, %v963_v41 }
 0x4ad   :  { %5627 = vmatprep.subr.msk.mxu0 %vm697_vm4, %v961_v43 }
 0x4b0   :  { %5628 = vmatpush3.xpose.msk.msra.mxu0 %vm697_vm4, %v961_v43 }
 0x4c4   :  { %v834_v45 = vpop.xlane.xlu0 %833 }
 0x4c5   :  { %6035 = vrcp.f32 %v834_v45 }
 0x4c6   :  { %v831_v47 = vpop.xlane.xlu1 %830 }
 0x4c7   :  { %6037 = vrcp.f32 %v831_v47 }
 0x4c8   :  { %v953_v48 = vpop.permute.xlu0 %952 }
 0x4ca   :  { %v955_v51 = vpop.permute.xlu1 %954 }
 0x4cc   :  { %v957_v49 = vpop.permute.xlu0 %956 }
 0x4ce   :  { %v959_v58 = vpop.permute.xlu1 %958 }
 0x4d0   :  { %v1334_v50 = vpop.permute.xlu0 %1333 }
 0x4d1   :  { %5657 = vmatprep.subr.msk.mxu0 %vm697_vm4, %v1334_v50 }
 0x4d2   :  { %v6036_v52 = vpop.eup %6035  ;;  %v1332_v61 = vpop.permute.xlu1 %1331 }
 0x4d3   :  { %v842_v56 = vmul.f32 %v6036_v52, %v6028_v25 }
 0x4d4   :  { %v6038_v53 = vpop.eup %6037  ;;  %v1330_v59 = vpop.permute.xlu0 %1329 }
 0x4d5   :  { %v841_v54 = vmul.f32 %v6038_v53, %v6030_v28 }
 0x4d6   :  { %v1328_v63 = vpop.permute.xlu1 %1327 }
 0x4d7   :  { %5618 = vmatprep.mubr.msk.f32.mxu0 %vm587_vm3, %v841_v54 }
 0x4d8   :  { %5619 = vmatmul.mubr.msk.f32.gmra.mxu0 %vm587_vm3, %v842_v56  ;;  %v1320_v62 = vpop.permute.xlu0 %1319 }
 0x4d9   :  { %5629 = vmatprep.mubr.msk.f32.mxu0 %vm697_vm4, %v953_v48 }
 0x4da   :  { %v1322_v1 = vpop.permute.xlu1 %1321 }
 0x4dc   :  { %5630 = vmatmul.mubr.msk.f32.vlgmr.msra.gmra.mxu0 %vm697_vm4, %v955_v51  ;;  %v1324_v2 = vpop.permute.xlu0 %1323 }
 0x4dd   :  { %5658 = vmatpush3.xpose.msk.msra.mxu0 %vm697_vm4, %v1334_v50  ;;  %5632 = vmatprep.mubr.msk.f32.mxu0 %vm697_vm4, %v957_v49 }
 0x4de   :  { %5659 = vmatprep.subr.msk.mxu0 %vm697_vm4, %v1332_v61  ;;  %v1326_v3 = vpop.permute.xlu1 %1325 }
 0x4e0   :  { %5633 = vmatmul.mubr.msk.f32.gmra.mxu0 %vm697_vm4, %v959_v58 }
 0x4e1   :  { %5660 = vmatpush3.xpose.msk.msra.mxu0 %vm697_vm4, %v1332_v61  ;;  %5665 = vmatprep.mubr.msk.f32.mxu0 %vm697_vm4, %v1320_v62 }
 0x4e2   :  { %5661 = vmatprep.subr.msk.mxu0 %vm697_vm4, %v1330_v59 }
 0x4e5   :  { %5662 = vmatpush3.xpose.msk.msra.mxu0 %vm697_vm4, %v1330_v59 }
 0x4e6   :  { %5663 = vmatprep.subr.msk.mxu0 %vm697_vm4, %v1328_v63 }
 0x4e9   :  { %5664 = vmatpush3.xpose.msk.msra.mxu0 %vm697_vm4, %v1328_v63 }
 0x4ec   :  { %5666 = vmatmul.mubr.msk.f32.vlgmr.msra.gmra.mxu0 %vm697_vm4, %v1322_v1 }
 0x4ed   :  { %5668 = vmatprep.mubr.msk.f32.mxu0 %vm697_vm4, %v1324_v2 }
 0x4f0   :  { %5669 = vmatmul.mubr.msk.f32.gmra.mxu0 %vm697_vm4, %v1326_v3 }
 0x563   :  { %v6850_v5 = vpop.f32.mrf.mxu0 }
 0x565   :  { %v6852_v6 = vpop.f32.mrf.mxu0 }
 0x598   :  { %v6854_v7 = vpop.f32.mrf.mxu0 }
 0x59a   :  { %v6856_v8 = vpop.f32.mrf.mxu0 }
 0x59c   :  { %v5631_v9 = vpop.f32.mrf.mxu0 }
 0x59d   :  { %v1056_v10 = vadd.f32 %v5631_v9, %v6770_v55 }
 0x59e   :  { %v1050_v11 = vpop.f32.mrf.mxu0 }
 0x59f   :  { %v1051_v12 = vadd.f32 %v1050_v11, %v6772_v57  ;;  %v1072_v13 = vsel %vm587_vm3, %v1056_v10, -inf }
 0x5a0   :  { %1073 = vmax.xlane.f32.xlu1 %v1072_v13  ;;  %v5634_v14 = vpop.f32.mrf.mxu0 }
 0x5a1   :  { %v1069_v15 = vsel %vm587_vm3, %v1051_v12, -inf  ;;  %v1066_v18 = vadd.f32 %v5634_v14, %v6775_v60 }
 0x5a2   :  { %1070 = vmax.xlane.f32.xlu0 %v1069_v15  ;;  %v1060_v16 = vpop.f32.mrf.mxu0 }
 0x5a3   :  { %v1061_v17 = vadd.f32 %v1060_v16, %v6781_v4  ;;  %v1078_v20 = vsel %vm587_vm3, %v1066_v18, -inf }
 0x5a5   :  { %v1075_v19 = vsel %vm587_vm3, %v1061_v17, -inf }
 0x5a6   :  { %1076 = vmax.xlane.f32.xlu0 %v1075_v19 }
 0x5aa   :  { %1079 = vmax.xlane.f32.xlu0 %v1078_v20  ;;  %v559_v20 = vld [vmem:[%s7722_s27 + $0x8] sm:$0xff] }
 0x5ac   :  { %v5667_v50 = vpop.f32.mrf.mxu0 }
 0x5ad   :  { %v6919_v63 = vadd.f32 %v5667_v50, %v6770_v55 }
 0x5ae   :  { %v1417_v51 = vpop.f32.mrf.mxu0 }
 0x5af   :  { %v6896_v53 = vadd.f32 %v1417_v51, %v6772_v57  ;;  %v1439_v1 = vsel %vm587_vm3, %v6919_v63, -inf }
 0x5b0   :  { %v5670_v52 = vpop.f32.mrf.mxu0 }
 0x5b1   :  { %1119 = vrot.lane.b32.xlu1 %v6740_v44, %s6439_s3  ;;  %v1436_v58 = vsel %vm587_vm3, %v6896_v53, -inf  ;;  %v6908_v59 = vadd.f32 %v5670_v52, %v6775_v60 }
 0x5b2   :  { %v1427_v54 = vpop.f32.mrf.mxu0 }
 0x5b3   :  { %v6901_v56 = vadd.f32 %v1427_v54, %v6781_v4  ;;  %v1445_v62 = vsel %vm587_vm3, %v6908_v59, -inf }
 0x5b5   :  { %v1442_v61 = vsel %vm587_vm3, %v6901_v56, -inf }
 0x629   :  { %v1074_v21 = vpop.xlane.xlu1 %1073 }
 0x62a   :  { %v1082_v22 = vsub.f32 %v1056_v10, %v1074_v21 }
 0x62b   :  { %v1071_v23 = vpop.xlane.xlu0 %1070 }
 0x62c   :  { %v1087_v24 = vmul.f32 1.442695, %v1082_v22  ;;  %v1081_v25 = vsub.f32 %v1051_v12, %v1071_v23 }
 0x62d   :  { %v1120_v28 = vpop.permute.xlu1 %1119 }
 0x62e   :  { %6039 = vpow2.f32 %v1087_v24  ;;  %v1085_v29 = vmul.f32 1.442695, %v1081_v25  ;;  %5635 = vmatprep.subr.mxu1 %v1120_v28 }
 0x62f   :  { %5636 = vmatpush3.msra.mxu1 %v1120_v28  ;;  %v1077_v30 = vpop.xlane.xlu0 %1076 }
 0x630   :  { %6041 = vpow2.f32 %v1085_v29  ;;  %v1083_v45 = vsub.f32 %v1061_v17, %v1077_v30  ;;  %v558_v30 = vld [vmem:[%s7722_s27] sm:$0xff] }
 0x632   :  { %v1089_v47 = vmul.f32 1.442695, %v1083_v45 }
 0x633   :  { %v1080_v31 = vpop.xlane.xlu0 %1079 }
 0x634   :  { %v1084_v32 = vsub.f32 %v1066_v18, %v1080_v31 }
 0x636   :  { %v1091_v33 = vmul.f32 1.442695, %v1084_v32 }
 0x638   :  { %6043 = vpow2.f32 %v1091_v33 }
 0x639   :  { %6045 = vpow2.f32 %v1089_v47 }
 0x63b   :  { %v6868_v36 = vpop.eup %6039 }
 0x63c   :  { %v1096_v37 = vsel %vm587_vm3, %v6868_v36, 0.0 }
 0x63d   :  { %v6042_v38 = vpop.eup %6041  ;;  %1097 = vadd.xlane.f32.xlu0 %v1096_v37 }
 0x63e   :  { %v1093_v39 = vsel %vm587_vm3, %v6042_v38, 0.0 }
 0x63f   :  { %1094 = vadd.xlane.f32.xlu1 %v1093_v39 }
 0x645   :  { %v6873_v41 = vpop.eup %6043 }
 0x646   :  { %v1102_v43 = vsel %vm587_vm3, %v6873_v41, 0.0  ;;  %v6889_v48 = vpop.eup %6045 }
 0x647   :  { %1103 = vadd.xlane.f32.xlu0 %v1102_v43  ;;  %v1099_v49 = vsel %vm587_vm3, %v6889_v48, 0.0 }
 0x650   :  { %1115 = vrot.lane.b32.xlu1 %v6730_v40, %s6439_s3 }
 0x65d   :  { %1117 = vrot.lane.b32.xlu0 %v6746_v46, %s6439_s3 }
 0x661   :  { %1700 = vrot.lane.b32.xlu0 %v6740_v44, %s6440_s26 }
 0x665   :  { %1696 = vrot.lane.b32.xlu0 %v6730_v40, %s6440_s26 }
 0x669   :  { %1686 = vrot.lane.b32.xlu0 %v6732_v42, %s6441_s14 }
 0x66d   :  { %1690 = vrot.lane.b32.xlu0 %v6746_v46, %s6441_s14 }
 0x674   :  { %1100 = vadd.xlane.f32.xlu1 %v1099_v49 }
 0x685   :  { %1113 = vrot.lane.b32.xlu1 %v6732_v42, %s6439_s3 }
 0x689   :  { %1698 = vrot.lane.b32.xlu1 %v6746_v46, %s6440_s26 }
 0x68c   :  { %1437 = vmax.xlane.f32.xlu0 %v1436_v58 }
 0x68d   :  { %1694 = vrot.lane.b32.xlu1 %v6732_v42, %s6440_s26 }
 0x690   :  { %1443 = vmax.xlane.f32.xlu0 %v1442_v61 }
 0x691   :  { %1688 = vrot.lane.b32.xlu1 %v6730_v40, %s6441_s14 }
 0x694   :  { %1446 = vmax.xlane.f32.xlu0 %v1445_v62 }
 0x695   :  { %1692 = vrot.lane.b32.xlu1 %v6740_v44, %s6441_s14 }
 0x6b9   :  { %1440 = vmax.xlane.f32.xlu1 %v1439_v1 }
 0x6c6   :  { %v1098_v3 = vpop.xlane.xlu0 %1097 }
 0x6c8   :  { %v1095_v2 = vpop.xlane.xlu1 %1094 }
 0x6c9   :  { %6047 = vrcp.f32 %v1095_v2 }
 0x6ca   :  { %1486 = vrot.lane.b32.xlu1 %v6740_v44, %s6442_s0  ;;  %6049 = vrcp.f32 %v1098_v3 }
 0x6cc   :  { %v1116_v12 = vpop.permute.xlu1 %1115 }
 0x6d0   :  { %v1104_v9 = vpop.xlane.xlu0 %1103 }
 0x6d1   :  { %6051 = vrcp.f32 %v1104_v9 }
 0x6d4   :  { %v1118_v10 = vpop.permute.xlu0 %1117 }
 0x6d5   :  { %5637 = vmatprep.subr.mxu1 %v1118_v10 }
 0x6d6   :  { %v6048_v11 = vpop.eup %6047  ;;  %5638 = vmatpush3.msra.mxu1 %v1118_v10 }
 0x6d7   :  { %5639 = vmatprep.subr.mxu1 %v1116_v12  ;;  %v1109_v13 = vmul.f32 %v6048_v11, %v6042_v38  ;;  %v6050_v18 = vpop.eup %6049 }
 0x6d8   :  { %5640 = vmatpush3.msra.mxu1 %v1116_v12  ;;  %v1701_v14 = vpop.permute.xlu0 %1700  ;;  %v1110_v21 = vmul.f32 %v6050_v18, %v6868_v36 }
 0x6d9   :  { %5643 = vmatprep.mubr.msk.f32.mxu1 %vm587_vm3, %v1109_v13  ;;  %5693 = vmatprep.subr.msk.mxu0 %vm697_vm4, %v1701_v14 }
 0x6da   :  { %5694 = vmatpush3.xpose.msk.msra.mxu0 %vm697_vm4, %v1701_v14 }
 0x6dc   :  { %v1697_v15 = vpop.permute.xlu0 %1696 }
 0x6de   :  { %v6052_v24 = vpop.eup %6051 }
 0x6df   :  { %v1112_v29 = vmul.f32 %v6052_v24, %v6873_v41 }
 0x6e0   :  { %v1687_v16 = vpop.permute.xlu0 %1686 }
 0x6e1   :  { %5701 = vmatprep.mubr.msk.f32.mxu0 %vm697_vm4, %v1687_v16 }
 0x6e4   :  { %v1691_v32 = vpop.permute.xlu0 %1690 }
 0x6fd   :  { %v1101_v17 = vpop.xlane.xlu1 %1100 }
 0x6fe   :  { %6053 = vrcp.f32 %v1101_v17 }
 0x701   :  { %v1114_v19 = vpop.permute.xlu1 %1113 }
 0x702   :  { %5641 = vmatprep.subr.mxu1 %v1114_v19 }
 0x703   :  { %5642 = vmatpush3.msra.mxu1 %v1114_v19 }
 0x704   :  { %5644 = vmatmul.mubr.msk.f32.vlgmr.msra.gmra.mxu1 %vm587_vm3, %v1110_v21  ;;  %5649 = vmatprep.subr.mxu1 %v559_v20 }
 0x705   :  { %v1699_v22 = vpop.permute.xlu1 %1698  ;;  %5650 = vmatpush3.msra.mxu1 %v559_v20 }
 0x706   :  { %5695 = vmatprep.subr.msk.mxu0 %vm697_vm4, %v1699_v22 }
 0x707   :  { %5696 = vmatpush3.xpose.msk.msra.mxu0 %vm697_vm4, %v1699_v22 }
 0x708   :  { %5697 = vmatprep.subr.msk.mxu0 %vm697_vm4, %v1697_v15 }
 0x709   :  { %v1695_v23 = vpop.permute.xlu1 %1694 }
 0x70b   :  { %v6054_v25 = vpop.eup %6053  ;;  %5698 = vmatpush3.xpose.msk.msra.mxu0 %vm697_vm4, %v1697_v15 }
 0x70c   :  { %5699 = vmatprep.subr.msk.mxu0 %vm697_vm4, %v1695_v23  ;;  %v1111_v28 = vmul.f32 %v6054_v25, %v6889_v48 }
 0x70d   :  { %v1689_v31 = vpop.permute.xlu1 %1688 }
 0x70e   :  { %5646 = vmatprep.mubr.msk.f32.mxu1 %vm587_vm3, %v1111_v28 }
 0x70f   :  { %5647 = vmatmul.mubr.msk.f32.gmra.mxu1 %vm587_vm3, %v1112_v29  ;;  %5700 = vmatpush3.xpose.msk.msra.mxu0 %vm697_vm4, %v1695_v23 }
 0x710   :  { %5729 = vmatprep.subr.mxu0 %v558_v30 }
 0x711   :  { %v1693_v33 = vpop.permute.xlu1 %1692 }
 0x712   :  { %5702 = vmatmul.mubr.msk.f32.vlgmr.msra.gmra.mxu0 %vm697_vm4, %v1689_v31 }
 0x713   :  { %5704 = vmatprep.mubr.msk.f32.mxu0 %vm697_vm4, %v1691_v32  ;;  %5730 = vmatpush3.msra.mxu0 %v558_v30 }
 0x715   :  { %v1438_v36 = vpop.xlane.xlu0 %1437 }
 0x716   :  { %v1448_v37 = vsub.f32 %v6896_v53, %v1438_v36  ;;  %5705 = vmatmul.mubr.msk.f32.gmra.mxu0 %vm697_vm4, %v1693_v33 }
 0x717   :  { %5731 = vmatprep.mubr.msk.f32.mxu0 %vm697_vm4, %v6852_v6 }
 0x718   :  { %v1452_v38 = vmul.f32 1.442695, %v1448_v37 }
 0x719   :  { %v1444_v43 = vpop.xlane.xlu0 %1443 }
 0x71a   :  { %6055 = vpow2.f32 %v1452_v38  ;;  %5732 = vmatmul.mubr.msk.f32.vlgmr.msra.gmra.mxu0 %vm697_vm4, %v6850_v5  ;;  %v1450_v48 = vsub.f32 %v6901_v56, %v1444_v43 }
 0x71b   :  { %5734 = vmatprep.mubr.msk.f32.mxu0 %vm697_vm4, %v6856_v8 }
 0x71d   :  { %v1447_v6 = vpop.xlane.xlu0 %1446 }
 0x71e   :  { %5735 = vmatmul.mubr.msk.f32.gmra.mxu0 %vm697_vm4, %v6854_v7  ;;  %v1451_v45 = vsub.f32 %v6908_v59, %v1447_v6  ;;  %v1456_v7 = vmul.f32 1.442695, %v1450_v48 }
 0x720   :  { %v1458_v8 = vmul.f32 1.442695, %v1451_v45 }
 0x727   :  { %v6056_v39 = vpop.eup %6055 }
 0x728   :  { %v1460_v41 = vsel %vm587_vm3, %v6056_v39, 0.0 }
 0x729   :  { %1461 = vadd.xlane.f32.xlu1 %v1460_v41 }
 0x73a   :  { %1482 = vrot.lane.b32.xlu1 %v6730_v40, %s6442_s0 }
 0x742   :  { %v1441_v47 = vpop.xlane.xlu1 %1440 }
 0x743   :  { %v1449_v5 = vsub.f32 %v6919_v63, %v1441_v47 }
 0x745   :  { %v1454_v49 = vmul.f32 1.442695, %v1449_v5 }
 0x746   :  { %v1487_v50 = vpop.permute.xlu1 %1486 }
 0x747   :  { %6057 = vpow2.f32 %v1454_v49  ;;  %5671 = vmatprep.subr.mxu1 %v1487_v50 }
 0x748   :  { %6059 = vpow2.f32 %v1458_v8 }
 0x749   :  { %6061 = vpow2.f32 %v1456_v7 }
 0x754   :  { %v6058_v51 = vpop.eup %6057 }
 0x755   :  { %v1463_v52 = vsel %vm587_vm3, %v6058_v51, 0.0  ;;  %v6966_v53 = vpop.eup %6059 }
 0x756   :  { %1464 = vadd.xlane.f32.xlu0 %v1463_v52  ;;  %v1469_v54 = vsel %vm587_vm3, %v6966_v53, 0.0  ;;  %v6062_v58 = vpop.eup %6061 }
 0x757   :  { %v1466_v56 = vsel %vm587_vm3, %v6062_v58, 0.0 }
 0x75a   :  { %1470 = vadd.xlane.f32.xlu0 %v1469_v54 }
 0x75e   :  { %1467 = vadd.xlane.f32.xlu1 %v1466_v56 }
 0x76f   :  { %1480 = vrot.lane.b32.xlu1 %v6732_v42, %s6442_s0 }
 0x770   :  { %1484 = vrot.lane.b32.xlu0 %v6746_v46, %s6442_s0 }
 0x7b2   :  { %v1462_v59 = vpop.xlane.xlu1 %1461 }
 0x7b3   :  { %6063 = vrcp.f32 %v1462_v59 }
 0x7c0   :  { %v6064_v63 = vpop.eup %6063 }
 0x7c1   :  { %v1476_v9 = vmul.f32 %v6064_v63, %v6056_v39 }
 0x7c4   :  { %v5645_v61 = vpop.f32.mrf.mxu1 }
 0x7c6   :  { %v1203_v62 = vpop.f32.mrf.mxu1 }
 0x7c7   :  { %5651 = vmatprep.mubr.msk.f32.mxu1 %vm697_vm4, %v1203_v62 }
 0x7c8   :  { %5652 = vmatmul.mubr.msk.f32.vlgmr.msra.gmra.mxu1 %vm697_vm4, %v5645_v61 }
 0x7c9   :  { %5672 = vmatpush3.msra.mxu1 %v1487_v50 }
 0x7cf   :  { %v5648_v1 = vpop.f32.mrf.mxu1 }
 0x7d1   :  { %v1213_v2 = vpop.f32.mrf.mxu1 }
 0x7d2   :  { %5654 = vmatprep.mubr.msk.f32.mxu1 %vm697_vm4, %v1213_v2  ;;  %v5703_v3 = vpop.f32.mrf.mxu0 }
 0x7d3   :  { %v1790_v10 = vadd.f32 %v5703_v3, %v6770_v55  ;;  %5655 = vmatmul.mubr.msk.f32.gmra.mxu1 %vm697_vm4, %v5648_v1 }
 0x7d4   :  { %5679 = vmatprep.mubr.msk.f32.mxu1 %vm587_vm3, %v1476_v9  ;;  %v1784_v11 = vpop.f32.mrf.mxu0 }
 0x7d5   :  { %v1785_v12 = vadd.f32 %v1784_v11, %v6772_v57  ;;  %v1806_v13 = vsel %vm587_vm3, %v1790_v10, -inf  ;;  %v1483_v57 = vpop.permute.xlu1 %1482 }
 0x7d6   :  { %v5706_v14 = vpop.f32.mrf.mxu0  ;;  %1807 = vmax.xlane.f32.xlu1 %v1806_v13 }
 0x7d7   :  { %v1803_v15 = vsel %vm587_vm3, %v1785_v12, -inf  ;;  %v1800_v18 = vadd.f32 %v5706_v14, %v6775_v60  ;;  %v561_v14 = vld [vmem:[%s7722_s27 + $0x18] sm:$0xff] }
 0x7d8   :  { %v1794_v16 = vpop.f32.mrf.mxu0  ;;  %1804 = vmax.xlane.f32.xlu0 %v1803_v15 }
 0x7d9   :  { %v1795_v17 = vadd.f32 %v1794_v16, %v6781_v4  ;;  %v1812_v20 = vsel %vm587_vm3, %v1800_v18, -inf  ;;  %v560_v4 = vld [vmem:[%s7722_s27 + $0x10] sm:$0xff] }
 0x7db   :  { %v1809_v55 = vsel %vm587_vm3, %v1795_v17, -inf }
 0x7dc   :  { %1810 = vmax.xlane.f32.xlu0 %v1809_v55 }
 0x7df   :  { %v1465_v19 = vpop.xlane.xlu0 %1464 }
 0x7e0   :  { %6065 = vrcp.f32 %v1465_v19  ;;  %1813 = vmax.xlane.f32.xlu0 %v1812_v20  ;;  %v5733_v19 = vpop.f32.mrf.mxu0 }
 0x7e3   :  { %v1471_v21 = vpop.xlane.xlu0 %1470 }
 0x7e4   :  { %6067 = vrcp.f32 %v1471_v21 }
 0x7e7   :  { %1853 = vrot.lane.b32.xlu1 %v6740_v44, %s6443_s16  ;;  %v1468_v22 = vpop.xlane.xlu1 %1467  ;;  %v1485_v23 = vpop.permute.xlu0 %1484 }
 0x7e8   :  { %6069 = vrcp.f32 %v1468_v22  ;;  %5673 = vmatprep.subr.mxu1 %v1485_v23 }
 0x7e9   :  { %5674 = vmatpush3.msra.mxu1 %v1485_v23 }
 0x7ea   :  { %5675 = vmatprep.subr.mxu1 %v1483_v57 }
 0x7eb   :  { %v1481_v60 = vpop.permute.xlu1 %1480  ;;  %5676 = vmatpush3.msra.mxu1 %v1483_v57  ;;  %v2131_v57 = vpop.f32.mrf.mxu0 }
 0x7ec   :  { %5677 = vmatprep.subr.mxu1 %v1481_v60 }
 0x7ed   :  { %v6066_v24 = vpop.eup %6065  ;;  %5678 = vmatpush3.msra.mxu1 %v1481_v60 }
 0x7ee   :  { %v1477_v25 = vmul.f32 %v6066_v24, %v6058_v51  ;;  %5685 = vmatprep.subr.mxu1 %v560_v4  ;;  %v5736_v24 = vpop.f32.mrf.mxu0 }
 0x7f0   :  { %5680 = vmatmul.mubr.msk.f32.vlgmr.msra.gmra.mxu1 %vm587_vm3, %v1477_v25 }
 0x7f1   :  { %5686 = vmatpush3.msra.mxu1 %v560_v4  ;;  %v6068_v44 = vpop.eup %6067 }
 0x7f2   :  { %v1479_v30 = vmul.f32 %v6068_v44, %v6966_v53 }
 0x7f5   :  { %v6070_v28 = vpop.eup %6069 }
 0x7f6   :  { %v1478_v29 = vmul.f32 %v6070_v28, %v6062_v58 }
 0x7f8   :  { %5682 = vmatprep.mubr.msk.f32.mxu1 %vm587_vm3, %v1478_v29 }
 0x7f9   :  { %5683 = vmatmul.mubr.msk.f32.gmra.mxu1 %vm587_vm3, %v1479_v30 }
 0x85f   :  { %v1808_v31 = vpop.xlane.xlu1 %1807 }
 0x860   :  { %v1816_v32 = vsub.f32 %v1790_v10, %v1808_v31 }
 0x861   :  { %v1805_v33 = vpop.xlane.xlu0 %1804 }
 0x862   :  { %v1821_v36 = vmul.f32 1.442695, %v1816_v32  ;;  %v1815_v37 = vsub.f32 %v1785_v12, %v1805_v33 }
 0x863   :  { %v1854_v38 = vpop.permute.xlu1 %1853 }
 0x864   :  { %6071 = vpow2.f32 %v1821_v36  ;;  %v1819_v39 = vmul.f32 1.442695, %v1815_v37  ;;  %5707 = vmatprep.subr.mxu1 %v1854_v38  ;;  %v5142_v36 = vld [vmem:[%s7723_s1] ss:$0 sm:$0xff] }
 0x865   :  { %v1811_v41 = vpop.xlane.xlu0 %1810 }
 0x866   :  { %6073 = vpow2.f32 %v1819_v39  ;;  %v1817_v7 = vsub.f32 %v1795_v17, %v1811_v41 }
 0x868   :  { %v1823_v51 = vmul.f32 1.442695, %v1817_v7 }
 0x869   :  { %v1814_v43 = vpop.xlane.xlu0 %1813 }
 0x86a   :  { %v1818_v6 = vsub.f32 %v1800_v18, %v1814_v43 }
 0x86c   :  { %v1825_v45 = vmul.f32 1.442695, %v1818_v6 }
 0x86e   :  { %6075 = vpow2.f32 %v1825_v45 }
 0x86f   :  { %6077 = vpow2.f32 %v1823_v51 }
 0x871   :  { %v6072_v47 = vpop.eup %6071 }
 0x872   :  { %v1830_v5 = vsel %vm587_vm3, %v6072_v47, 0.0 }
 0x873   :  { %v6074_v48 = vpop.eup %6073  ;;  %1831 = vadd.xlane.f32.xlu0 %v1830_v5 }
 0x874   :  { %v1827_v8 = vsel %vm587_vm3, %v6074_v48, 0.0 }
 0x875   :  { %1828 = vadd.xlane.f32.xlu1 %v1827_v8 }
 0x87b   :  { %v6076_v49 = vpop.eup %6075 }
 0x87c   :  { %v1836_v50 = vsel %vm587_vm3, %v6076_v49, 0.0  ;;  %v6078_v53 = vpop.eup %6077 }
 0x87d   :  { %1837 = vadd.xlane.f32.xlu0 %v1836_v50  ;;  %v1833_v58 = vsel %vm587_vm3, %v6078_v53, 0.0 }
 0x886   :  { %1849 = vrot.lane.b32.xlu1 %v6730_v40, %s6443_s16 }
 0x888   :  { %v5653_v52 = vpop.f32.mrf.mxu1 }
 0x889   :  { %v2137_v20 = vadd.f32 %v5733_v19, %v5653_v52 }
 0x88a   :  { %v1300_v54 = vpop.f32.mrf.mxu1 }
 0x88b   :  { %v2132_v22 = vadd.f32 %v2131_v57, %v1300_v54 }
 0x893   :  { %1851 = vrot.lane.b32.xlu0 %v6746_v46, %s6443_s16  ;;  %v5656_v56 = vpop.f32.mrf.mxu1 }
 0x894   :  { %v2147_v25 = vadd.f32 %v5736_v24, %v5656_v56 }
 0x895   :  { %v7005_v59 = vpop.f32.mrf.mxu1 }
 0x8aa   :  { %1834 = vadd.xlane.f32.xlu1 %v1833_v58 }
 0x8b0   :  { %v5681_v61 = vpop.f32.mrf.mxu1 }
 0x8b2   :  { %v1570_v62 = vpop.f32.mrf.mxu1 }
 0x8b3   :  { %5687 = vmatprep.mubr.msk.f32.mxu1 %vm697_vm4, %v1570_v62 }
 0x8b4   :  { %5688 = vmatmul.mubr.msk.f32.vlgmr.msra.gmra.mxu1 %vm697_vm4, %v5681_v61 }
 0x8b5   :  { %5708 = vmatpush3.msra.mxu1 %v1854_v38 }
 0x8b9   :  { %v5684_v40 = vpop.f32.mrf.mxu1 }
 0x8bb   :  { %v1580_v46 = vpop.f32.mrf.mxu1  ;;  %1847 = vrot.lane.b32.xlu1 %v6732_v42, %s6443_s16 }
 0x8bc   :  { %5690 = vmatprep.mubr.msk.f32.mxu1 %vm697_vm4, %v1580_v46 }
 0x8bd   :  { %5691 = vmatmul.mubr.msk.f32.gmra.mxu1 %vm697_vm4, %v5684_v40 }
 0x8fc   :  { %v1832_v1 = vpop.xlane.xlu0 %1831 }
 0x8fe   :  { %v1829_v63 = vpop.xlane.xlu1 %1828 }
 0x8ff   :  { %6079 = vrcp.f32 %v1829_v63 }
 0x900   :  { %6081 = vrcp.f32 %v1832_v1 }
 0x902   :  { %v1850_v10 = vpop.permute.xlu1 %1849 }
 0x906   :  { %v1838_v2 = vpop.xlane.xlu0 %1837 }
 0x907   :  { %6083 = vrcp.f32 %v1838_v2  ;;  %v566_v2 = vld [vmem:[%s7688_s7 + $0x18] sm:$0xff] }
 0x90a   :  { %v1852_v3 = vpop.permute.xlu0 %1851 }
 0x90b   :  { %5709 = vmatprep.subr.mxu1 %v1852_v3 }
 0x90c   :  { %v6080_v9 = vpop.eup %6079  ;;  %5710 = vmatpush3.msra.mxu1 %v1852_v3  ;;  %v565_v3 = vld [vmem:[%s7688_s7 + $0x10] sm:$0xff] }
 0x90d   :  { %5711 = vmatprep.subr.mxu1 %v1850_v10  ;;  %v1843_v11 = vmul.f32 %v6080_v9, %v6074_v48  ;;  %v6082_v12 = vpop.eup %6081  ;;  %v2141_v48 = vpop.f32.mrf.mxu0  ;;  %v564_v9 = vld [vmem:[%s7688_s7 + $0x8] sm:$0xff] }
 0x90e   :  { %5712 = vmatpush3.msra.mxu1 %v1850_v10  ;;  %v1844_v15 = vmul.f32 %v6082_v12, %v6072_v47  ;;  %v2142_v50 = vadd.f32 %v2141_v48, %v7005_v59  ;;  %v563_v10 = vld [vmem:[%s7688_s7] sm:$0xff] }
 0x90f   :  { %5715 = vmatprep.mubr.msk.f32.mxu1 %vm587_vm3, %v1843_v11 }
 0x914   :  { %v6084_v16 = vpop.eup %6083 }
 0x915   :  { %v1846_v55 = vmul.f32 %v6084_v16, %v6076_v49 }
 0x933   :  { %v1835_v42 = vpop.xlane.xlu1 %1834 }
 0x934   :  { %6085 = vrcp.f32 %v1835_v42 }
 0x937   :  { %v1848_v13 = vpop.permute.xlu1 %1847 }
 0x938   :  { %5713 = vmatprep.subr.mxu1 %v1848_v13 }
 0x939   :  { %5714 = vmatpush3.msra.mxu1 %v1848_v13 }
 0x93a   :  { %5716 = vmatmul.mubr.msk.f32.vlgmr.msra.gmra.mxu1 %vm587_vm3, %v1844_v15  ;;  %5721 = vmatprep.subr.mxu1 %v561_v14 }
 0x93b   :  { %5722 = vmatpush3.msra.mxu1 %v561_v14 }
 0x93c   :  { %5737 = vmatprep.subr.mxu1 %v566_v2 }
 0x941   :  { %v6086_v17 = vpop.eup %6085 }
 0x942   :  { %v1845_v18 = vmul.f32 %v6086_v17, %v6078_v53 }
 0x944   :  { %5718 = vmatprep.mubr.msk.f32.mxu1 %vm587_vm3, %v1845_v18 }
 0x945   :  { %5719 = vmatmul.mubr.msk.f32.gmra.mxu1 %vm587_vm3, %v1846_v55 }
 0x974   :  { %v5689_v21 = vpop.f32.mrf.mxu1 }
 0x975   :  { %v2151_v23 = vadd.f32 %v5689_v21, %v2137_v20 }
 0x976   :  { %v1667_v60 = vpop.f32.mrf.mxu1 }
 0x977   :  { %v2150_v4 = vadd.f32 %v2132_v22, %v1667_v60 }
 0x97d   :  { %v5692_v44 = vpop.f32.mrf.mxu1 }
 0x97e   :  { %v2153_v28 = vadd.f32 %v5692_v44, %v2147_v25 }
 0x97f   :  { %v1677_v29 = vpop.f32.mrf.mxu1 }
 0x980   :  { %v2152_v7 = vadd.f32 %v2142_v50, %v1677_v29 }
 0x9fa   :  { %v5717_v30 = vpop.f32.mrf.mxu1 }
 0x9fc   :  { %v1937_v31 = vpop.f32.mrf.mxu1 }
 0x9fd   :  { %5723 = vmatprep.mubr.msk.f32.mxu1 %vm697_vm4, %v1937_v31 }
 0x9fe   :  { %5724 = vmatmul.mubr.msk.f32.vlgmr.msra.gmra.mxu1 %vm697_vm4, %v5717_v30 }
 0x9ff   :  { %5738 = vmatpush3.msra.mxu1 %v566_v2  ;;  %v570_v2 = vld [vmem:[%s7690_s9 + $0x10] sm:$0xff] }
 0xa00   :  { %5739 = vmatprep.subr.mxu1 %v565_v3 }
 0xa01   :  { %5740 = vmatpush3.msra.mxu1 %v565_v3  ;;  %v569_v3 = vld [vmem:[%s7690_s9 + $0x8] sm:$0xff] }
 0xa02   :  { %5741 = vmatprep.subr.mxu1 %v564_v9 }
 0xa03   :  { %5742 = vmatpush3.msra.mxu1 %v564_v9  ;;  %v568_v9 = vld [vmem:[%s7690_s9] sm:$0xff] }
 0xa04   :  { %5743 = vmatprep.subr.mxu1 %v563_v10 }
 0xa05   :  { %v5720_v32 = vpop.f32.mrf.mxu1  ;;  %5744 = vmatpush3.msra.mxu1 %v563_v10  ;;  %v5145_v10 = vld [vmem:[%s7689_s8] ss:$0 sm:$0xff] }
 0xa07   :  { %v1947_v33 = vpop.f32.mrf.mxu1 }
 0xa08   :  { %5726 = vmatprep.mubr.msk.f32.mxu1 %vm697_vm4, %v1947_v33 }
 0xa09   :  { %5727 = vmatmul.mubr.msk.f32.gmra.mxu1 %vm697_vm4, %v5720_v32 }
 0xabe   :  { %v5725_v37 = vpop.f32.mrf.mxu1 }
 0xabf   :  { %v2155_v38 = vadd.f32 %v5725_v37, %v2151_v23 }
 0xac0   :  { %v2034_v39 = vpop.f32.mrf.mxu1 }
 0xac1   :  { %v2165_v41 = vadd.f32 %v5142_v36, %v2155_v38  ;;  %v2154_v43 = vadd.f32 %v2150_v4, %v2034_v39 }
 0xac3   :  { %v7028_v6 = vadd.f32 %v2165_v41, %v6707_v27  ;;  %v2164_v45 = vadd.f32 %v5142_v36, %v2154_v43 }
 0xac5   :  { %v7031_v47 = vadd.f32 %v2164_v45, %v6705_v26  ;;  %v2175_v5 = vsel %vm587_vm3, %v7028_v6, 0.0  ;;  %v2190_v49 = vmul.f32 %v7028_v6, %v7028_v6 }
 0xac6   :  { %2176 = vadd.xlane.f32.xlu1 %v2175_v5 }
 0xac7   :  { %v2172_v8 = vsel %vm587_vm3, %v7031_v47, 0.0  ;;  %v2196_v26 = vsel %vm587_vm3, %v2190_v49, 0.0  ;;  %v2189_v53 = vmul.f32 %v7031_v47, %v7031_v47 }
 0xac8   :  { %2173 = vadd.xlane.f32.xlu0 %v2172_v8  ;;  %v5143_v8 = vld [vmem:[#allocation4] ss:$0 sm:$0xff] }
 0xac9   :  { %v5728_v27 = vpop.f32.mrf.mxu1  ;;  %v2193_v62 = vsel %vm587_vm3, %v2189_v53, 0.0 }
 0xaca   :  { %v2157_v51 = vadd.f32 %v5728_v27, %v2153_v28 }
 0xacb   :  { %v2044_v52 = vpop.f32.mrf.mxu1 }
 0xacc   :  { %v2167_v54 = vadd.f32 %v5142_v36, %v2157_v51  ;;  %v2156_v58 = vadd.f32 %v2152_v7, %v2044_v52  ;;  %2197 = vadd.xlane.f32.xlu0 %v2196_v26  ;;  %v5144_v7 = vld [vmem:[#allocation6] ss:$0 sm:$0xff] }
 0xace   :  { %v2166_v56 = vadd.f32 %v5142_v36, %v2156_v58  ;;  %v7044_v61 = vadd.f32 %v2167_v54, %v6721_v35 }
 0xad0   :  { %v7048_v59 = vadd.f32 %v2166_v56, %v6719_v34  ;;  %2194 = vadd.xlane.f32.xlu0 %v2193_v62  ;;  %v2181_v63 = vsel %vm587_vm3, %v7044_v61, 0.0  ;;  %v2192_v35 = vmul.f32 %v7044_v61, %v7044_v61 }
 0xad2   :  { %v2178_v40 = vsel %vm587_vm3, %v7048_v59, 0.0  ;;  %v2191_v46 = vmul.f32 %v7048_v59, %v7048_v59  ;;  %v2202_v34 = vsel %vm587_vm3, %v2192_v35, 0.0  ;;  %v573_v35 = vld [vmem:[%s7690_s9 + $0x28] sm:$0xff] }
 0xad3   :  { %2179 = vadd.xlane.f32.xlu1 %v2178_v40 }
 0xad4   :  { %2182 = vadd.xlane.f32.xlu0 %v2181_v63  ;;  %v2199_v1 = vsel %vm587_vm3, %v2191_v46, 0.0 }
 0xad7   :  { %2200 = vadd.xlane.f32.xlu1 %v2199_v1  ;;  %v572_v1 = vld [vmem:[%s7690_s9 + $0x20] sm:$0xff] }
 0xad8   :  { %2203 = vadd.xlane.f32.xlu0 %v2202_v34  ;;  %v571_v34 = vld [vmem:[%s7690_s9 + $0x18] sm:$0xff] }
 0xb4f   :  { %v2177_v11 = vpop.xlane.xlu1 %2176 }
 0xb50   :  { %v2186_v12 = vmul.f32 0.03125, %v2177_v11 }
 0xb51   :  { %v2174_v42 = vpop.xlane.xlu0 %2173 }
 0xb52   :  { %v2210_v14 = vmul.f32 %v2186_v12, %v2186_v12  ;;  %v2185_v15 = vmul.f32 0.03125, %v2174_v42  ;;  %v2222_v45 = vsub.f32 %v7028_v6, %v2186_v12 }
 0xb54   :  { %v2209_v55 = vmul.f32 %v2185_v15, %v2185_v15  ;;  %v2221_v48 = vsub.f32 %v7031_v47, %v2185_v15 }
 0xb55   :  { %v2198_v13 = vpop.xlane.xlu0 %2197 }
 0xb56   :  { %v2206_v16 = vmul.f32 0.03125, %v2198_v13 }
 0xb58   :  { %v2214_v17 = vsub.f32 %v2206_v16, %v2210_v14 }
 0xb59   :  { %v2195_v18 = vpop.xlane.xlu0 %2194 }
 0xb5a   :  { %v2218_v19 = vmax.f32 %v2214_v17, 0.0  ;;  %v2205_v20 = vmul.f32 0.03125, %v2195_v18 }
 0xb5c   :  { %v2226_v57 = vadd.f32 1e-05, %v2218_v19  ;;  %v2213_v21 = vsub.f32 %v2205_v20, %v2209_v55  ;;  %v2180_v22 = vpop.xlane.xlu1 %2179 }
 0xb5d   :  { %v2187_v23 = vmul.f32 0.03125, %v2180_v22  ;;  %v2183_v60 = vpop.xlane.xlu0 %2182 }
 0xb5e   :  { %6087 = vrsqrt.f32 %v2226_v57  ;;  %v2217_v4 = vmax.f32 %v2213_v21, 0.0  ;;  %v2188_v24 = vmul.f32 0.03125, %v2183_v60 }
 0xb5f   :  { %v2211_v28 = vmul.f32 %v2187_v23, %v2187_v23  ;;  %v2223_v26 = vsub.f32 %v7048_v59, %v2187_v23  ;;  %v574_v59 = vld [vmem:[%s7690_s9 + $0x30] sm:$0xff] }
 0xb60   :  { %v2225_v25 = vadd.f32 1e-05, %v2217_v4  ;;  %v2201_v44 = vpop.xlane.xlu1 %2200  ;;  %v2212_v31 = vmul.f32 %v2188_v24, %v2188_v24  ;;  %v2224_v58 = vsub.f32 %v7044_v61, %v2188_v24  ;;  %v575_v61 = vld [vmem:[%s7690_s9 + $0x38] sm:$0xff] }
 0xb61   :  { %v2207_v29 = vmul.f32 0.03125, %v2201_v44  ;;  %v2204_v30 = vpop.xlane.xlu0 %2203  ;;  %5751 = vmatprep.subr.mxu0 %v575_v61 }
 0xb62   :  { %6089 = vrsqrt.f32 %v2225_v25  ;;  %v2208_v32 = vmul.f32 0.03125, %v2204_v30  ;;  %5752 = vmatpush3.msra.mxu0 %v575_v61 }
 0xb63   :  { %v2215_v33 = vsub.f32 %v2207_v29, %v2211_v28  ;;  %5753 = vmatprep.subr.mxu0 %v574_v59 }
 0xb64   :  { %v2216_v36 = vsub.f32 %v2208_v32, %v2212_v31  ;;  %5754 = vmatpush3.msra.mxu0 %v574_v59 }
 0xb65   :  { %v2219_v37 = vmax.f32 %v2215_v33, 0.0  ;;  %5755 = vmatprep.subr.mxu0 %v573_v35 }
 0xb66   :  { %v2220_v38 = vmax.f32 %v2216_v36, 0.0  ;;  %5756 = vmatpush3.msra.mxu0 %v573_v35 }
 0xb67   :  { %v2227_v39 = vadd.f32 1e-05, %v2219_v37  ;;  %5757 = vmatprep.subr.mxu0 %v572_v1 }
 0xb68   :  { %v2228_v41 = vadd.f32 1e-05, %v2220_v38  ;;  %5758 = vmatpush3.msra.mxu0 %v572_v1 }
 0xb69   :  { %6091 = vrsqrt.f32 %v2227_v39  ;;  %5759 = vmatprep.subr.mxu0 %v571_v34 }
 0xb6a   :  { %6093 = vrsqrt.f32 %v2228_v41  ;;  %5760 = vmatpush3.msra.mxu0 %v571_v34 }
 0xb6b   :  { %v6088_v43 = vpop.eup %6087  ;;  %5761 = vmatprep.subr.mxu0 %v570_v2 }
 0xb6c   :  { %v2234_v5 = vmul.f32 %v6088_v43, %v2222_v45  ;;  %5762 = vmatpush3.msra.mxu0 %v570_v2 }
 0xb6d   :  { %5763 = vmatprep.subr.mxu0 %v569_v3 }
 0xb6e   :  { %v2244_v27 = vmul.f32 %v5143_v8, %v2234_v5  ;;  %5764 = vmatpush3.msra.mxu0 %v569_v3 }
 0xb6f   :  { %v6090_v49 = vpop.eup %6089  ;;  %5765 = vmatprep.subr.mxu0 %v568_v9 }
 0xb70   :  { %v2233_v50 = vmul.f32 %v6090_v49, %v2221_v48  ;;  %v7077_v53 = vadd.f32 %v5144_v7, %v2244_v27  ;;  %5766 = vmatpush3.msra.mxu0 %v568_v9 }
 0xb72   :  { %v2243_v51 = vmul.f32 %v5143_v8, %v2233_v50 }
 0xb74   :  { %v7074_v52 = vadd.f32 %v5144_v7, %v2243_v51 }
 0xb76   :  { %v6092_v54 = vpop.eup %6091  ;;  %5745 = vmatprep.mubr.msk.f32.mxu1 %vm587_vm3, %v7074_v52 }
 0xb77   :  { %v6094_v6 = vpop.eup %6093  ;;  %5746 = vmatmul.mubr.msk.f32.vlgmr.msra.gmra.mxu1 %vm587_vm3, %v7077_v53  ;;  %v2235_v47 = vmul.f32 %v6092_v54, %v2223_v26 }
 0xb78   :  { %v2236_v56 = vmul.f32 %v6094_v6, %v2224_v58  ;;  %v5150_v58 = vld [vmem:[#allocation2] ss:$0 sm:$0xff] }
 0xb79   :  { %v2245_v62 = vmul.f32 %v5143_v8, %v2235_v47 }
 0xb7a   :  { %v2246_v40 = vmul.f32 %v5143_v8, %v2236_v56 }
 0xb7b   :  { %v7084_v46 = vadd.f32 %v5144_v7, %v2245_v62 }
 0xb7c   :  { %v7086_v63 = vadd.f32 %v5144_v7, %v2246_v40 }
 0xb7d   :  { %5748 = vmatprep.mubr.msk.f32.mxu1 %vm587_vm3, %v7084_v46 }
 0xb7e   :  { %5749 = vmatmul.mubr.msk.f32.gmra.mxu1 %vm587_vm3, %v7086_v63 }
 0xc37   :  { %v5747_v11 = vpop.f32.mrf.mxu1 }
 0xc38   :  { %v2347_v42 = vadd.f32 %v5747_v11, %v5145_v10 }
 0xc39   :  { %v2341_v12 = vpop.f32.mrf.mxu1 }
 0xc3a   :  { %v2365_v13 = vmul.f32 0.044715, %v2347_v42  ;;  %v2342_v14 = vadd.f32 %v5145_v10, %v2341_v12  ;;  %v2361_v45 = vmul.f32 0.5, %v2347_v42 }
 0xc3c   :  { %v2369_v15 = vmul.f32 %v2365_v13, %v2347_v42  ;;  %v2364_v16 = vmul.f32 0.044715, %v2342_v14  ;;  %v2360_v41 = vmul.f32 0.5, %v2342_v14 }
 0xc3e   :  { %v2373_v17 = vmul.f32 %v2369_v15, %v2347_v42  ;;  %v2368_v18 = vmul.f32 %v2364_v16, %v2342_v14  ;;  %v5750_v55 = vpop.f32.mrf.mxu1  ;;  %v5160_v16 = vld [vmem:[%s7719_s15 + $0x38] sm:$0xff] }
 0xc3f   :  { %v2357_v19 = vadd.f32 %v5750_v55, %v5145_v10  ;;  %5773 = vmatprep.subr.mxu1 %v5160_v16  ;;  %v5157_v55 = vld [vmem:[%s7719_s15 + $0x20] sm:$0xff] }
 0xc40   :  { %v2377_v20 = vadd.f32 %v2373_v17, %v2347_v42  ;;  %v2372_v57 = vmul.f32 %v2368_v18, %v2342_v14  ;;  %v2351_v21 = vpop.f32.mrf.mxu1  ;;  %v5159_v17 = vld [vmem:[%s7719_s15 + $0x30] sm:$0xff]  ;;  %5774 = vmatpush3.msra.mxu1 %v5160_v16  ;;  %v5158_v18 = vld [vmem:[%s7719_s15 + $0x28] sm:$0xff] }
 0xc41   :  { %v2367_v22 = vmul.f32 0.044715, %v2357_v19  ;;  %v2352_v23 = vadd.f32 %v5145_v10, %v2351_v21  ;;  %v2363_v51 = vmul.f32 0.5, %v2357_v19  ;;  %5775 = vmatprep.subr.mxu1 %v5159_v17 }
 0xc42   :  { %v2381_v60 = vmul.f32 0.7978846, %v2377_v20  ;;  %v2376_v4 = vadd.f32 %v2372_v57, %v2342_v14  ;;  %5776 = vmatpush3.msra.mxu1 %v5159_v17 }
 0xc43   :  { %v2371_v24 = vmul.f32 %v2367_v22, %v2357_v19  ;;  %v2366_v25 = vmul.f32 0.044715, %v2352_v23  ;;  %v2362_v27 = vmul.f32 0.5, %v2352_v23  ;;  %5777 = vmatprep.subr.mxu1 %v5158_v18 }
 0xc44   :  { %6095 = vtanh.f32 %v2381_v60  ;;  %v2380_v44 = vmul.f32 0.7978846, %v2376_v4  ;;  %5778 = vmatpush3.msra.mxu1 %v5158_v18 }
 0xc45   :  { %v2375_v28 = vmul.f32 %v2371_v24, %v2357_v19  ;;  %v2370_v29 = vmul.f32 %v2366_v25, %v2352_v23  ;;  %5779 = vmatprep.subr.mxu1 %v5157_v55 }
 0xc46   :  { %6097 = vtanh.f32 %v2380_v44  ;;  %5780 = vmatpush3.msra.mxu1 %v5157_v55 }
 0xc47   :  { %v2379_v30 = vadd.f32 %v2375_v28, %v2357_v19  ;;  %v2374_v31 = vmul.f32 %v2370_v29, %v2352_v23 }
 0xc49   :  { %v2378_v32 = vadd.f32 %v2374_v31, %v2352_v23  ;;  %v2383_v33 = vmul.f32 0.7978846, %v2379_v30 }
 0xc4b   :  { %v2382_v36 = vmul.f32 0.7978846, %v2378_v32  ;;  %6099 = vtanh.f32 %v2383_v33 }
 0xc4d   :  { %6101 = vtanh.f32 %v2382_v36 }
 0xc51   :  { %v6096_v37 = vpop.eup %6095 }
 0xc52   :  { %v2389_v39 = vadd.f32 1.0, %v6096_v37 }
 0xc53   :  { %v6098_v38 = vpop.eup %6097 }
 0xc54   :  { %v2388_v43 = vadd.f32 1.0, %v6098_v38  ;;  %v2393_v48 = vmul.f32 %v2389_v39, %v2361_v45 }
 0xc56   :  { %v2392_v5 = vmul.f32 %v2388_v43, %v2360_v41 }
 0xc58   :  { %v6100_v8 = vpop.eup %6099  ;;  %5767 = vmatprep.mubr.msk.f32.mxu0 %vm2402_vm5, %v2392_v5 }
 0xc59   :  { %5768 = vmatmul.mubr.msk.f32.vlgmr.msra.gmra.mxu0 %vm2402_vm5, %v2393_v48  ;;  %v2391_v50 = vadd.f32 1.0, %v6100_v8 }
 0xc5a   :  { %v6102_v49 = vpop.eup %6101 }
 0xc5b   :  { %v2390_v7 = vadd.f32 1.0, %v6102_v49  ;;  %v2395_v54 = vmul.f32 %v2391_v50, %v2363_v51 }
 0xc5d   :  { %v2394_v26 = vmul.f32 %v2390_v7, %v2362_v27 }
 0xc5f   :  { %5770 = vmatprep.mubr.msk.f32.mxu0 %vm2402_vm5, %v2394_v26 }
 0xc60   :  { %5771 = vmatmul.mubr.msk.f32.gmra.mxu0 %vm2402_vm5, %v2395_v54 }
 0xd19   :  { %v5769_v6 = vpop.f32.mrf.mxu0 }
 0xd1a   :  { %v2487_v47 = vadd.f32 %v5769_v6, %v5150_v58 }
 0xd1b   :  { %v2481_v56 = vpop.f32.mrf.mxu0 }
 0xd1c   :  { %v7124_v62 = vadd.f32 %v2487_v47, %v7077_v53  ;;  %v2482_v40 = vadd.f32 %v5150_v58, %v2481_v56  ;;  %v5155_v47 = vld [vmem:[#allocation7] ss:$0 sm:$0xff] }
 0xd1e   :  { %v7127_v61 = vadd.f32 %v2482_v40, %v7074_v52  ;;  %v2507_v59 = vsel %vm587_vm3, %v7124_v62, 0.0  ;;  %v2521_v35 = vmul.f32 %v7124_v62, %v7124_v62 }
 0xd1f   :  { %2508 = vadd.xlane.f32.xlu0 %v2507_v59 }
 0xd20   :  { %v5772_v1 = vpop.f32.mrf.mxu0  ;;  %v2504_v34 = vsel %vm587_vm3, %v7127_v61, 0.0  ;;  %v2520_v2 = vmul.f32 %v7127_v61, %v7127_v61  ;;  %v2527_v52 = vsel %vm587_vm3, %v2521_v35, 0.0  ;;  %v5156_v35 = vld [vmem:[#allocation9] ss:$0 sm:$0xff] }
 0xd21   :  { %v2497_v53 = vadd.f32 %v5772_v1, %v5150_v58  ;;  %2505 = vadd.xlane.f32.xlu1 %v2504_v34 }
 0xd22   :  { %v2491_v3 = vpop.f32.mrf.mxu0  ;;  %v2524_v11 = vsel %vm587_vm3, %v2520_v2, 0.0 }
 0xd23   :  { %v7139_v9 = vadd.f32 %v2497_v53, %v7086_v63  ;;  %v2492_v10 = vadd.f32 %v5150_v58, %v2491_v3  ;;  %2528 = vadd.xlane.f32.xlu0 %v2527_v52 }
 0xd25   :  { %v7143_v42 = vadd.f32 %v2492_v10, %v7084_v46  ;;  %2525 = vadd.xlane.f32.xlu1 %v2524_v11  ;;  %v2513_v12 = vsel %vm587_vm3, %v7139_v9, 0.0  ;;  %v2523_v13 = vmul.f32 %v7139_v9, %v7139_v9 }
 0xd27   :  { %2514 = vadd.xlane.f32.xlu0 %v2513_v12  ;;  %v2510_v14 = vsel %vm587_vm3, %v7143_v42, 0.0  ;;  %v2522_v63 = vmul.f32 %v7143_v42, %v7143_v42  ;;  %v2533_v15 = vsel %vm587_vm3, %v2523_v13, 0.0 }
 0xd29   :  { %2511 = vadd.xlane.f32.xlu1 %v2510_v14  ;;  %v2530_v46 = vsel %vm587_vm3, %v2522_v63, 0.0  ;;  %v5180_v14 = vld [vmem:[%s7721_s13 + $0x1] ss:$0 sm:$0xff] }
 0xd2b   :  { %2534 = vadd.xlane.f32.xlu0 %v2533_v15 }
 0xd2d   :  { %2531 = vadd.xlane.f32.xlu1 %v2530_v46 }
 0xda8   :  { %v2509_v19 = vpop.xlane.xlu0 %2508 }
 0xda9   :  { %v2517_v20 = vmul.f32 0.03125, %v2509_v19 }
 0xdaa   :  { %v2506_v57 = vpop.xlane.xlu1 %2505 }
 0xdab   :  { %v2516_v21 = vmul.f32 0.03125, %v2506_v57  ;;  %v2541_v23 = vmul.f32 %v2517_v20, %v2517_v20  ;;  %v2553_v26 = vsub.f32 %v7124_v62, %v2517_v20 }
 0xdac   :  { %v2529_v22 = vpop.xlane.xlu0 %2528 }
 0xdad   :  { %v2537_v60 = vmul.f32 0.03125, %v2529_v22  ;;  %v2540_v24 = vmul.f32 %v2516_v21, %v2516_v21  ;;  %v2552_v58 = vsub.f32 %v7127_v61, %v2516_v21 }
 0xdae   :  { %v2526_v4 = vpop.xlane.xlu1 %2525 }
 0xdaf   :  { %v2545_v25 = vsub.f32 %v2537_v60, %v2541_v23  ;;  %v2536_v44 = vmul.f32 0.03125, %v2526_v4 }
 0xdb0   :  { %v2515_v28 = vpop.xlane.xlu0 %2514 }
 0xdb1   :  { %v2549_v29 = vmax.f32 %v2545_v25, 0.0  ;;  %v2544_v30 = vsub.f32 %v2536_v44, %v2540_v24  ;;  %v2519_v31 = vmul.f32 0.03125, %v2515_v28  ;;  %v7230_v25 = vld [vmem:[#allocation13 + $0x8] sm:$0xff] }
 0xdb2   :  { %v2512_v32 = vpop.xlane.xlu1 %2511 }
 0xdb3   :  { %v2557_v33 = vadd.f32 1e-05, %v2549_v29  ;;  %v2548_v36 = vmax.f32 %v2544_v30, 0.0  ;;  %v2518_v37 = vmul.f32 0.03125, %v2512_v32  ;;  %v2543_v41 = vmul.f32 %v2519_v31, %v2519_v31  ;;  %v7233_v29 = vld [vmem:[#allocation13] sm:$0xff] }
 0xdb4   :  { %v2535_v38 = vpop.xlane.xlu0 %2534  ;;  %v2555_v34 = vsub.f32 %v7139_v9, %v2519_v31 }
 0xdb5   :  { %6103 = vrsqrt.f32 %v2557_v33  ;;  %v2556_v39 = vadd.f32 1e-05, %v2548_v36  ;;  %v2539_v43 = vmul.f32 0.03125, %v2535_v38  ;;  %v2542_v5 = vmul.f32 %v2518_v37, %v2518_v37  ;;  %v7237_v33 = vld [vmem:[#allocation13 + $0x18] sm:$0xff] }
 0xdb6   :  { %v2532_v45 = vpop.xlane.xlu1 %2531  ;;  %v2554_v52 = vsub.f32 %v7143_v42, %v2518_v37 }
 0xdb7   :  { %6105 = vrsqrt.f32 %v2556_v39  ;;  %v2547_v48 = vsub.f32 %v2539_v43, %v2543_v41  ;;  %v2538_v8 = vmul.f32 0.03125, %v2532_v45  ;;  %v7241_v39 = vld [vmem:[#allocation13 + $0x10] sm:$0xff] }
 0xdb9   :  { %v2551_v49 = vmax.f32 %v2547_v48, 0.0  ;;  %v2546_v50 = vsub.f32 %v2538_v8, %v2542_v5 }
 0xdbb   :  { %v2559_v27 = vadd.f32 1e-05, %v2551_v49  ;;  %v2550_v7 = vmax.f32 %v2546_v50, 0.0 }
 0xdbd   :  { %6107 = vrsqrt.f32 %v2559_v27  ;;  %v2558_v51 = vadd.f32 1e-05, %v2550_v7 }
 0xdbf   :  { %6109 = vrsqrt.f32 %v2558_v51 }
 0xdc2   :  { %v6104_v54 = vpop.eup %6103 }
 0xdc3   :  { %v2565_v6 = vmul.f32 %v6104_v54, %v2553_v26 }
 0xdc4   :  { %v6106_v56 = vpop.eup %6105 }
 0xdc5   :  { %v2564_v40 = vmul.f32 %v6106_v56, %v2552_v58  ;;  %v2575_v59 = vmul.f32 %v5155_v47, %v2565_v6 }
 0xdc7   :  { %v2574_v1 = vmul.f32 %v5155_v47, %v2564_v40  ;;  %v7172_v3 = vadd.f32 %v5156_v35, %v2575_v59 }
 0xdc9   :  { %v7170_v2 = vadd.f32 %v5156_v35, %v2574_v1 }
 0xdca   :  { %v6108_v53 = vpop.eup %6107 }
 0xdcb   :  { %5781 = vmatprep.mubr.msk.f32.mxu1 %vm587_vm3, %v7170_v2  ;;  %v2567_v62 = vmul.f32 %v6108_v53, %v2555_v34 }
 0xdcc   :  { %v6110_v61 = vpop.eup %6109  ;;  %5782 = vmatmul.mubr.msk.f32.vlgmr.msra.gmra.mxu1 %vm587_vm3, %v7172_v3 }
 0xdcd   :  { %v2566_v10 = vmul.f32 %v6110_v61, %v2554_v52  ;;  %v2577_v11 = vmul.f32 %v5155_v47, %v2567_v62 }
 0xdcf   :  { %v2576_v12 = vmul.f32 %v5155_v47, %v2566_v10  ;;  %v7181_v9 = vadd.f32 %v5156_v35, %v2577_v11 }
 0xdd1   :  { %v7179_v13 = vadd.f32 %v5156_v35, %v2576_v12 }
 0xdd3   :  { %5784 = vmatprep.mubr.msk.f32.mxu1 %vm587_vm3, %v7179_v13 }
 0xdd4   :  { %5785 = vmatmul.mubr.msk.f32.gmra.mxu1 %vm587_vm3, %v7181_v9 }
 0xe8c   :  { %v5783_v42 = vpop.f32.mrf.mxu1 }
 0xe8d   :  { %v7200_v55 = vadd.f32 %v5783_v42, %v5180_v14 }
 0xe8e   :  { %v2712_v63 = vpop.f32.mrf.mxu1 }
 0xe8f   :  { %v7190_v15 = vadd.f32 %v5180_v14, %v2712_v63 }
 0xe91   :  { %5795 = vmatprep.mubr.msk.f32.mxu1 %vm697_vm4, %v7190_v15 }
 0xe94   :  { %v5786_v46 = vpop.f32.mrf.mxu1 }
 0xe95   :  { %v7194_v16 = vadd.f32 %v5786_v46, %v5180_v14 }
 0xe96   :  { %v2722_v17 = vpop.f32.mrf.mxu1 }
 0xe97   :  { %v7196_v18 = vadd.f32 %v5180_v14, %v2722_v17  ;;  %2741 = vrot.lane.b32.xlu1 %v7194_v16, %s6433_s30 }
 0xe99   :  { %2739 = vrot.lane.b32.xlu0 %v7196_v18, %s6433_s30 }
 0xe9b   :  { %2737 = vrot.lane.b32.xlu1 %v7200_v55, %s6433_s30 }
 0xe9d   :  { %2892 = vrot.lane.b32.xlu0 %v7196_v18, %s6434_s5 }
 0xe9f   :  { %2735 = vrot.lane.b32.xlu1 %v7190_v15, %s6433_s30 }
 0xea3   :  { %2894 = vrot.lane.b32.xlu1 %v7194_v16, %s6434_s5 }
 0xea7   :  { %2890 = vrot.lane.b32.xlu1 %v7200_v55, %s6434_s5 }
 0xeab   :  { %2888 = vrot.lane.b32.xlu1 %v7190_v15, %s6434_s5 }
 0xf09   :  { %v2742_v19 = vpop.permute.xlu1 %2741 }
 0xf0a   :  { %5787 = vmatprep.subr.msk.mxu1 %vm697_vm4, %v2742_v19 }
 0xf0b   :  { %5788 = vmatpush3.xpose.msk.msra.mxu1 %vm697_vm4, %v2742_v19  ;;  %v2740_v20 = vpop.permute.xlu0 %2739 }
 0xf0c   :  { %5789 = vmatprep.subr.msk.mxu1 %vm697_vm4, %v2740_v20 }
 0xf0d   :  { %v2738_v57 = vpop.permute.xlu1 %2737 }
 0xf0f   :  { %5790 = vmatpush3.xpose.msk.msra.mxu1 %vm697_vm4, %v2740_v20  ;;  %v2893_v23 = vpop.permute.xlu0 %2892 }
 0xf10   :  { %5791 = vmatprep.subr.msk.mxu1 %vm697_vm4, %v2738_v57 }
 0xf11   :  { %v2736_v21 = vpop.permute.xlu1 %2735 }
 0xf13   :  { %5792 = vmatpush3.xpose.msk.msra.mxu1 %vm697_vm4, %v2738_v57 }
 0xf14   :  { %5793 = vmatprep.subr.msk.mxu1 %vm697_vm4, %v2736_v21 }
 0xf15   :  { %v2895_v22 = vpop.permute.xlu1 %2894 }
 0xf16   :  { %5801 = vmatprep.subr.mxu0 %v2895_v22 }
 0xf17   :  { %5794 = vmatpush3.xpose.msk.msra.mxu1 %vm697_vm4, %v2736_v21  ;;  %5802 = vmatpush3.msra.mxu0 %v2895_v22 }
 0xf18   :  { %5803 = vmatprep.subr.mxu0 %v2893_v23 }
 0xf19   :  { %v2891_v60 = vpop.permute.xlu1 %2890  ;;  %5804 = vmatpush3.msra.mxu0 %v2893_v23 }
 0xf1a   :  { %5796 = vmatmul.mubr.msk.f32.vlgmr.msra.gmra.mxu1 %vm697_vm4, %v7200_v55  ;;  %5805 = vmatprep.subr.mxu0 %v2891_v60 }
 0xf1b   :  { %5798 = vmatprep.mubr.msk.f32.mxu1 %vm697_vm4, %v7196_v18  ;;  %5806 = vmatpush3.msra.mxu0 %v2891_v60 }
 0xf1d   :  { %v2889_v4 = vpop.permute.xlu1 %2888 }
 0xf1e   :  { %5799 = vmatmul.mubr.msk.f32.gmra.mxu1 %vm697_vm4, %v7194_v16  ;;  %5807 = vmatprep.subr.mxu0 %v2889_v4 }
 0xf1f   :  { %5808 = vmatpush3.msra.mxu0 %v2889_v4 }
 0xfda   :  { %v5797_v24 = vpop.f32.mrf.mxu1 }
 0xfdb   :  { %v2831_v44 = vadd.f32 %v7230_v25, %v5797_v24 }
 0xfdc   :  { %v2825_v28 = vpop.f32.mrf.mxu1 }
 0xfdd   :  { %v2826_v30 = vadd.f32 %v7233_v29, %v2825_v28  ;;  %v2847_v31 = vsel %vm587_vm3, %v2831_v44, -inf }
 0xfde   :  { %2848 = vmax.xlane.f32.xlu1 %v2847_v31  ;;  %v5800_v32 = vpop.f32.mrf.mxu1 }
 0xfdf   :  { %v2841_v36 = vadd.f32 %v7237_v33, %v5800_v32  ;;  %v2844_v37 = vsel %vm587_vm3, %v2826_v30, -inf }
 0xfe0   :  { %v2835_v38 = vpop.f32.mrf.mxu1  ;;  %2845 = vmax.xlane.f32.xlu0 %v2844_v37 }
 0xfe1   :  { %v2836_v41 = vadd.f32 %v7241_v39, %v2835_v38  ;;  %v2853_v43 = vsel %vm587_vm3, %v2841_v36, -inf }
 0xfe3   :  { %v2850_v45 = vsel %vm587_vm3, %v2836_v41, -inf }
 0xfe4   :  { %2854 = vmax.xlane.f32.xlu0 %v2853_v43 }
 0xfe8   :  { %2851 = vmax.xlane.f32.xlu0 %v2850_v45 }
 0xfef   :  { %3009 = vrot.lane.b32.xlu1 %v7196_v18, %s6435_s12 }
 0xffe   :  { %3011 = vrot.lane.b32.xlu0 %v7194_v16, %s6435_s12 }
0x1067   :  { %v2849_v5 = vpop.xlane.xlu1 %2848 }
0x1068   :  { %v2857_v48 = vsub.f32 %v2831_v44, %v2849_v5 }
0x1069   :  { %v2846_v8 = vpop.xlane.xlu0 %2845 }
0x106a   :  { %v2862_v49 = vmul.f32 1.442695, %v2857_v48  ;;  %v2856_v50 = vsub.f32 %v2826_v30, %v2846_v8 }
0x106b   :  { %v3010_v62 = vpop.permute.xlu1 %3009 }
0x106c   :  { %6111 = vpow2.f32 %v2862_v49  ;;  %v2860_v27 = vmul.f32 1.442695, %v2856_v50 }
0x106d   :  { %v2855_v7 = vpop.xlane.xlu0 %2854 }
0x106e   :  { %6113 = vpow2.f32 %v2860_v27  ;;  %v2859_v56 = vsub.f32 %v2841_v36, %v2855_v7 }
0x1070   :  { %v2866_v59 = vmul.f32 1.442695, %v2859_v56 }
0x1071   :  { %v2852_v51 = vpop.xlane.xlu0 %2851 }
0x1072   :  { %v2858_v40 = vsub.f32 %v2836_v41, %v2852_v51  ;;  %6115 = vpow2.f32 %v2866_v59 }
0x1074   :  { %v2864_v35 = vmul.f32 1.442695, %v2858_v40 }
0x1075   :  { %v3012_v26 = vpop.permute.xlu0 %3011 }
0x1076   :  { %5815 = vmatprep.subr.msk.mxu0 %vm697_vm4, %v3012_v26  ;;  %6117 = vpow2.f32 %v2864_v35 }
0x1079   :  { %v6112_v54 = vpop.eup %6111 }
0x107a   :  { %v2871_v58 = vsel %vm587_vm3, %v6112_v54, 0.0 }
0x107b   :  { %v6114_v6 = vpop.eup %6113  ;;  %2872 = vadd.xlane.f32.xlu0 %v2871_v58 }
0x107c   :  { %v2868_v47 = vsel %vm587_vm3, %v6114_v6, 0.0 }
0x107d   :  { %2869 = vadd.xlane.f32.xlu1 %v2868_v47 }
0x107f   :  { %v6116_v1 = vpop.eup %6115 }
0x1080   :  { %v2877_v53 = vsel %vm587_vm3, %v6116_v1, 0.0 }
0x1083   :  { %v6118_v34 = vpop.eup %6117 }
0x1084   :  { %v2874_v52 = vsel %vm587_vm3, %v6118_v34, 0.0 }
0x108e   :  { %3005 = vrot.lane.b32.xlu1 %v7190_v15, %s6435_s12 }
0x1091   :  { %3007 = vrot.lane.b32.xlu0 %v7200_v55, %s6435_s12 }
0x10b0   :  { %2878 = vadd.xlane.f32.xlu0 %v2877_v53 }
0x10b2   :  { %2875 = vadd.xlane.f32.xlu1 %v2874_v52 }
0x10c3   :  { %2999 = vrot.lane.b32.xlu1 %v7200_v55, %s6436_s24 }
0x10c6   :  { %2997 = vrot.lane.b32.xlu0 %v7190_v15, %s6436_s24 }
0x10c7   :  { %3003 = vrot.lane.b32.xlu1 %v7194_v16, %s6436_s24 }
0x10ca   :  { %3001 = vrot.lane.b32.xlu0 %v7196_v18, %s6436_s24 }
0x10cb   :  { %3376 = vrot.lane.b32.xlu1 %v7196_v18, %s6437_s6 }
0x10ce   :  { %3378 = vrot.lane.b32.xlu0 %v7194_v16, %s6437_s6 }
0x10cf   :  { %3372 = vrot.lane.b32.xlu1 %v7190_v15, %s6437_s6 }
0x10d2   :  { %3374 = vrot.lane.b32.xlu0 %v7200_v55, %s6437_s6 }
0x10d3   :  { %3366 = vrot.lane.b32.xlu1 %v7200_v55, %s6438_s25 }
0x10d6   :  { %3364 = vrot.lane.b32.xlu0 %v7190_v15, %s6438_s25 }
0x10d7   :  { %3370 = vrot.lane.b32.xlu1 %v7194_v16, %s6438_s25 }
0x10da   :  { %3368 = vrot.lane.b32.xlu0 %v7196_v18, %s6438_s25 }
0x1104   :  { %v2873_v61 = vpop.xlane.xlu0 %2872 }
0x1105   :  { %6119 = vrcp.f32 %v2873_v61 }
0x1106   :  { %v2870_v10 = vpop.xlane.xlu1 %2869 }
0x1107   :  { %6121 = vrcp.f32 %v2870_v10 }
0x1108   :  { %v3008_v63 = vpop.permute.xlu0 %3007 }
0x110a   :  { %v3006_v46 = vpop.permute.xlu1 %3005 }
0x1112   :  { %v6120_v11 = vpop.eup %6119 }
0x1113   :  { %v2885_v14 = vmul.f32 %v6120_v11, %v6112_v54 }
0x1114   :  { %v6122_v12 = vpop.eup %6121 }
0x1115   :  { %v2884_v42 = vmul.f32 %v6122_v12, %v6114_v6 }
0x1117   :  { %5809 = vmatprep.mubr.msk.f32.mxu0 %vm587_vm3, %v2884_v42 }
0x1118   :  { %5810 = vmatmul.mubr.msk.f32.vlgmr.msra.gmra.mxu0 %vm587_vm3, %v2885_v14 }
0x1119   :  { %5816 = vmatpush3.xpose.msk.msra.mxu0 %vm697_vm4, %v3012_v26 }
0x111a   :  { %5817 = vmatprep.subr.msk.mxu0 %vm697_vm4, %v3010_v62 }
0x111d   :  { %5818 = vmatpush3.xpose.msk.msra.mxu0 %vm697_vm4, %v3010_v62 }
0x111e   :  { %5819 = vmatprep.subr.msk.mxu0 %vm697_vm4, %v3008_v63 }
0x1121   :  { %5820 = vmatpush3.xpose.msk.msra.mxu0 %vm697_vm4, %v3008_v63 }
0x1122   :  { %5821 = vmatprep.subr.msk.mxu0 %vm697_vm4, %v3006_v46 }
0x1125   :  { %5822 = vmatpush3.xpose.msk.msra.mxu0 %vm697_vm4, %v3006_v46 }
0x1139   :  { %v2879_v17 = vpop.xlane.xlu0 %2878 }
0x113a   :  { %6123 = vrcp.f32 %v2879_v17 }
0x113b   :  { %v2876_v19 = vpop.xlane.xlu1 %2875 }
0x113c   :  { %6125 = vrcp.f32 %v2876_v19 }
0x113d   :  { %v2998_v20 = vpop.permute.xlu0 %2997 }
0x113f   :  { %v3000_v22 = vpop.permute.xlu1 %2999 }
0x1141   :  { %v3002_v57 = vpop.permute.xlu0 %3001 }
0x1143   :  { %v3004_v44 = vpop.permute.xlu1 %3003 }
0x1145   :  { %v3379_v21 = vpop.permute.xlu0 %3378 }
0x1146   :  { %5851 = vmatprep.subr.msk.mxu0 %vm697_vm4, %v3379_v21 }
0x1147   :  { %v6124_v23 = vpop.eup %6123  ;;  %v3377_v30 = vpop.permute.xlu1 %3376 }
0x1148   :  { %v2887_v24 = vmul.f32 %v6124_v23, %v6116_v1 }
0x1149   :  { %v6126_v60 = vpop.eup %6125  ;;  %v3375_v28 = vpop.permute.xlu0 %3374 }
0x114a   :  { %v2886_v4 = vmul.f32 %v6126_v60, %v6118_v34 }
0x114b   :  { %v3373_v32 = vpop.permute.xlu1 %3372 }
0x114c   :  { %5812 = vmatprep.mubr.msk.f32.mxu0 %vm587_vm3, %v2886_v4 }
0x114d   :  { %5813 = vmatmul.mubr.msk.f32.gmra.mxu0 %vm587_vm3, %v2887_v24  ;;  %v3365_v31 = vpop.permute.xlu0 %3364 }
0x114e   :  { %5823 = vmatprep.mubr.msk.f32.mxu0 %vm697_vm4, %v2998_v20 }
0x114f   :  { %v3367_v36 = vpop.permute.xlu1 %3366 }
0x1151   :  { %5824 = vmatmul.mubr.msk.f32.vlgmr.msra.gmra.mxu0 %vm697_vm4, %v3000_v22  ;;  %v3369_v37 = vpop.permute.xlu0 %3368 }
0x1152   :  { %5852 = vmatpush3.xpose.msk.msra.mxu0 %vm697_vm4, %v3379_v21  ;;  %5826 = vmatprep.mubr.msk.f32.mxu0 %vm697_vm4, %v3002_v57 }
0x1153   :  { %5853 = vmatprep.subr.msk.mxu0 %vm697_vm4, %v3377_v30  ;;  %v3371_v38 = vpop.permute.xlu1 %3370 }
0x1155   :  { %5827 = vmatmul.mubr.msk.f32.gmra.mxu0 %vm697_vm4, %v3004_v44 }
0x1156   :  { %5854 = vmatpush3.xpose.msk.msra.mxu0 %vm697_vm4, %v3377_v30  ;;  %5859 = vmatprep.mubr.msk.f32.mxu0 %vm697_vm4, %v3365_v31 }
0x1157   :  { %5855 = vmatprep.subr.msk.mxu0 %vm697_vm4, %v3375_v28 }
0x115a   :  { %5856 = vmatpush3.xpose.msk.msra.mxu0 %vm697_vm4, %v3375_v28 }
0x115b   :  { %5857 = vmatprep.subr.msk.mxu0 %vm697_vm4, %v3373_v32 }
0x115e   :  { %5858 = vmatpush3.xpose.msk.msra.mxu0 %vm697_vm4, %v3373_v32 }
0x1161   :  { %5860 = vmatmul.mubr.msk.f32.vlgmr.msra.gmra.mxu0 %vm697_vm4, %v3367_v36 }
0x1162   :  { %5862 = vmatprep.mubr.msk.f32.mxu0 %vm697_vm4, %v3369_v37 }
0x1165   :  { %5863 = vmatmul.mubr.msk.f32.gmra.mxu0 %vm697_vm4, %v3371_v38 }
0x11d8   :  { %v7310_v41 = vpop.f32.mrf.mxu0 }
0x11da   :  { %v7312_v43 = vpop.f32.mrf.mxu0 }
0x120d   :  { %v7314_v45 = vpop.f32.mrf.mxu0 }
0x120f   :  { %v7316_v5 = vpop.f32.mrf.mxu0 }
0x1211   :  { %v5825_v48 = vpop.f32.mrf.mxu0 }
0x1212   :  { %v3101_v8 = vadd.f32 %v7230_v25, %v5825_v48 }
0x1213   :  { %v3095_v49 = vpop.f32.mrf.mxu0 }
0x1214   :  { %v3096_v50 = vadd.f32 %v7233_v29, %v3095_v49  ;;  %v3117_v27 = vsel %vm587_vm3, %v3101_v8, -inf }
0x1215   :  { %3118 = vmax.xlane.f32.xlu1 %v3117_v27  ;;  %v5828_v7 = vpop.f32.mrf.mxu0 }
0x1216   :  { %v3114_v51 = vsel %vm587_vm3, %v3096_v50, -inf  ;;  %v3111_v58 = vadd.f32 %v7237_v33, %v5828_v7 }
0x1217   :  { %3115 = vmax.xlane.f32.xlu0 %v3114_v51  ;;  %v3105_v26 = vpop.f32.mrf.mxu0 }
0x1218   :  { %v3106_v54 = vadd.f32 %v7241_v39, %v3105_v26  ;;  %v3123_v47 = vsel %vm587_vm3, %v3111_v58, -inf }
0x121a   :  { %v3120_v6 = vsel %vm587_vm3, %v3106_v54, -inf }
0x121b   :  { %3121 = vmax.xlane.f32.xlu0 %v3120_v6 }
0x121f   :  { %3124 = vmax.xlane.f32.xlu0 %v3123_v47  ;;  %v5163_v47 = vld [vmem:[%s7722_s27 + $0x28] sm:$0xff] }
0x1221   :  { %v5861_v21 = vpop.f32.mrf.mxu0 }
0x1222   :  { %v7379_v32 = vadd.f32 %v7230_v25, %v5861_v21 }
0x1223   :  { %v3462_v22 = vpop.f32.mrf.mxu0 }
0x1224   :  { %v7356_v60 = vadd.f32 %v7233_v29, %v3462_v22  ;;  %v3484_v36 = vsel %vm587_vm3, %v7379_v32, -inf }
0x1225   :  { %v5864_v23 = vpop.f32.mrf.mxu0 }
0x1226   :  { %3164 = vrot.lane.b32.xlu1 %v7194_v16, %s6439_s3  ;;  %v3481_v44 = vsel %vm587_vm3, %v7356_v60, -inf  ;;  %v7368_v28 = vadd.f32 %v7237_v33, %v5864_v23 }
0x1227   :  { %v3472_v4 = vpop.f32.mrf.mxu0 }
0x1228   :  { %v7361_v24 = vadd.f32 %v7241_v39, %v3472_v4  ;;  %v3490_v31 = vsel %vm587_vm3, %v7368_v28, -inf }
0x122a   :  { %v3487_v30 = vsel %vm587_vm3, %v7361_v24, -inf }
0x129e   :  { %v3119_v56 = vpop.xlane.xlu1 %3118 }
0x129f   :  { %v3127_v40 = vsub.f32 %v3101_v8, %v3119_v56 }
0x12a0   :  { %v3116_v59 = vpop.xlane.xlu0 %3115 }
0x12a1   :  { %v3132_v35 = vmul.f32 1.442695, %v3127_v40  ;;  %v3126_v1 = vsub.f32 %v3096_v50, %v3116_v59 }
0x12a2   :  { %v3165_v34 = vpop.permute.xlu1 %3164 }
0x12a3   :  { %6127 = vpow2.f32 %v3132_v35  ;;  %v3130_v53 = vmul.f32 1.442695, %v3126_v1  ;;  %5829 = vmatprep.subr.mxu1 %v3165_v34 }
0x12a4   :  { %5830 = vmatpush3.msra.mxu1 %v3165_v34  ;;  %v3122_v52 = vpop.xlane.xlu0 %3121 }
0x12a5   :  { %6129 = vpow2.f32 %v3130_v53  ;;  %v3128_v17 = vsub.f32 %v3106_v54, %v3122_v52  ;;  %v5162_v52 = vld [vmem:[%s7722_s27 + $0x20] sm:$0xff] }
0x12a7   :  { %v3134_v19 = vmul.f32 1.442695, %v3128_v17 }
0x12a8   :  { %v3125_v62 = vpop.xlane.xlu0 %3124 }
0x12a9   :  { %v3129_v61 = vsub.f32 %v3111_v58, %v3125_v62 }
0x12ab   :  { %v3136_v10 = vmul.f32 1.442695, %v3129_v61 }
0x12ad   :  { %6131 = vpow2.f32 %v3136_v10 }
0x12ae   :  { %6133 = vpow2.f32 %v3134_v19 }
0x12b0   :  { %v7328_v11 = vpop.eup %6127 }
0x12b1   :  { %v3141_v12 = vsel %vm587_vm3, %v7328_v11, 0.0 }
0x12b2   :  { %v6130_v42 = vpop.eup %6129  ;;  %3142 = vadd.xlane.f32.xlu0 %v3141_v12 }
0x12b3   :  { %v3138_v14 = vsel %vm587_vm3, %v6130_v42, 0.0 }
0x12b4   :  { %3139 = vadd.xlane.f32.xlu1 %v3138_v14 }
0x12ba   :  { %v7333_v63 = vpop.eup %6131 }
0x12bb   :  { %v3147_v46 = vsel %vm587_vm3, %v7333_v63, 0.0  ;;  %v7349_v20 = vpop.eup %6133 }
0x12bc   :  { %3148 = vadd.xlane.f32.xlu0 %v3147_v46  ;;  %v3144_v57 = vsel %vm587_vm3, %v7349_v20, 0.0 }
0x12c5   :  { %3160 = vrot.lane.b32.xlu1 %v7200_v55, %s6439_s3 }
0x12d2   :  { %3162 = vrot.lane.b32.xlu0 %v7196_v18, %s6439_s3 }
0x12d6   :  { %3745 = vrot.lane.b32.xlu0 %v7194_v16, %s6440_s26 }
0x12da   :  { %3741 = vrot.lane.b32.xlu0 %v7200_v55, %s6440_s26 }
0x12de   :  { %3731 = vrot.lane.b32.xlu0 %v7190_v15, %s6441_s14 }
0x12e2   :  { %3735 = vrot.lane.b32.xlu0 %v7196_v18, %s6441_s14 }
0x12e9   :  { %3145 = vadd.xlane.f32.xlu1 %v3144_v57 }
0x12fa   :  { %3158 = vrot.lane.b32.xlu1 %v7190_v15, %s6439_s3 }
0x12fe   :  { %3743 = vrot.lane.b32.xlu1 %v7196_v18, %s6440_s26 }
0x1301   :  { %3482 = vmax.xlane.f32.xlu0 %v3481_v44 }
0x1302   :  { %3739 = vrot.lane.b32.xlu1 %v7190_v15, %s6440_s26 }
0x1305   :  { %3488 = vmax.xlane.f32.xlu0 %v3487_v30 }
0x1306   :  { %3733 = vrot.lane.b32.xlu1 %v7200_v55, %s6441_s14 }
0x1309   :  { %3491 = vmax.xlane.f32.xlu0 %v3490_v31 }
0x130a   :  { %3737 = vrot.lane.b32.xlu1 %v7194_v16, %s6441_s14 }
0x132e   :  { %3485 = vmax.xlane.f32.xlu1 %v3484_v36 }
0x133b   :  { %v3143_v38 = vpop.xlane.xlu0 %3142 }
0x133d   :  { %v3140_v37 = vpop.xlane.xlu1 %3139 }
0x133e   :  { %6135 = vrcp.f32 %v3140_v37 }
0x133f   :  { %3531 = vrot.lane.b32.xlu1 %v7194_v16, %s6442_s0  ;;  %6137 = vrcp.f32 %v3143_v38 }
0x1341   :  { %v3161_v50 = vpop.permute.xlu1 %3160 }
0x1345   :  { %v3149_v48 = vpop.xlane.xlu0 %3148 }
0x1346   :  { %6139 = vrcp.f32 %v3149_v48 }
0x1349   :  { %v3163_v8 = vpop.permute.xlu0 %3162 }
0x134a   :  { %5831 = vmatprep.subr.mxu1 %v3163_v8 }
0x134b   :  { %v6136_v49 = vpop.eup %6135  ;;  %5832 = vmatpush3.msra.mxu1 %v3163_v8 }
0x134c   :  { %5833 = vmatprep.subr.mxu1 %v3161_v50  ;;  %v3154_v27 = vmul.f32 %v6136_v49, %v6130_v42  ;;  %v6138_v58 = vpop.eup %6137 }
0x134d   :  { %5834 = vmatpush3.msra.mxu1 %v3161_v50  ;;  %v3746_v7 = vpop.permute.xlu0 %3745  ;;  %v3155_v56 = vmul.f32 %v6138_v58, %v7328_v11 }
0x134e   :  { %5837 = vmatprep.mubr.msk.f32.mxu1 %vm587_vm3, %v3154_v27  ;;  %5887 = vmatprep.subr.msk.mxu0 %vm697_vm4, %v3746_v7 }
0x134f   :  { %5888 = vmatpush3.xpose.msk.msra.mxu0 %vm697_vm4, %v3746_v7 }
0x1351   :  { %v3742_v51 = vpop.permute.xlu0 %3741 }
0x1353   :  { %v6140_v35 = vpop.eup %6139 }
0x1354   :  { %v3157_v53 = vmul.f32 %v6140_v35, %v7333_v63 }
0x1355   :  { %v3732_v26 = vpop.permute.xlu0 %3731 }
0x1356   :  { %5895 = vmatprep.mubr.msk.f32.mxu0 %vm697_vm4, %v3732_v26 }
0x1359   :  { %v3736_v61 = vpop.permute.xlu0 %3735 }
0x1372   :  { %v3146_v54 = vpop.xlane.xlu1 %3145 }
0x1373   :  { %6141 = vrcp.f32 %v3146_v54 }
0x1376   :  { %v3159_v6 = vpop.permute.xlu1 %3158 }
0x1377   :  { %5835 = vmatprep.subr.mxu1 %v3159_v6 }
0x1378   :  { %5836 = vmatpush3.msra.mxu1 %v3159_v6 }
0x1379   :  { %5838 = vmatmul.mubr.msk.f32.vlgmr.msra.gmra.mxu1 %vm587_vm3, %v3155_v56  ;;  %5843 = vmatprep.subr.mxu1 %v5163_v47 }
0x137a   :  { %v3744_v40 = vpop.permute.xlu1 %3743  ;;  %5844 = vmatpush3.msra.mxu1 %v5163_v47 }
0x137b   :  { %5889 = vmatprep.subr.msk.mxu0 %vm697_vm4, %v3744_v40 }
0x137c   :  { %5890 = vmatpush3.xpose.msk.msra.mxu0 %vm697_vm4, %v3744_v40 }
0x137d   :  { %5891 = vmatprep.subr.msk.mxu0 %vm697_vm4, %v3742_v51 }
0x137e   :  { %v3740_v59 = vpop.permute.xlu1 %3739 }
0x1380   :  { %v6142_v1 = vpop.eup %6141  ;;  %5892 = vmatpush3.xpose.msk.msra.mxu0 %vm697_vm4, %v3742_v51 }
0x1381   :  { %5893 = vmatprep.subr.msk.mxu0 %vm697_vm4, %v3740_v59  ;;  %v3156_v34 = vmul.f32 %v6142_v1, %v7349_v20 }
0x1382   :  { %v3734_v62 = vpop.permute.xlu1 %3733 }
0x1383   :  { %5840 = vmatprep.mubr.msk.f32.mxu1 %vm587_vm3, %v3156_v34 }
0x1384   :  { %5841 = vmatmul.mubr.msk.f32.gmra.mxu1 %vm587_vm3, %v3157_v53  ;;  %5894 = vmatpush3.xpose.msk.msra.mxu0 %vm697_vm4, %v3740_v59 }
0x1385   :  { %5923 = vmatprep.subr.mxu0 %v5162_v52 }
0x1386   :  { %v3738_v10 = vpop.permute.xlu1 %3737 }
0x1387   :  { %5896 = vmatmul.mubr.msk.f32.vlgmr.msra.gmra.mxu0 %vm697_vm4, %v3734_v62 }
0x1388   :  { %5898 = vmatprep.mubr.msk.f32.mxu0 %vm697_vm4, %v3736_v61  ;;  %5924 = vmatpush3.msra.mxu0 %v5162_v52 }
0x138a   :  { %v3483_v11 = vpop.xlane.xlu0 %3482 }
0x138b   :  { %v3493_v12 = vsub.f32 %v7356_v60, %v3483_v11  ;;  %5899 = vmatmul.mubr.msk.f32.gmra.mxu0 %vm697_vm4, %v3738_v10 }
0x138c   :  { %5925 = vmatprep.mubr.msk.f32.mxu0 %vm697_vm4, %v7312_v43 }
0x138d   :  { %v3497_v42 = vmul.f32 1.442695, %v3493_v12 }
0x138e   :  { %v3489_v46 = vpop.xlane.xlu0 %3488 }
0x138f   :  { %6143 = vpow2.f32 %v3497_v42  ;;  %5926 = vmatmul.mubr.msk.f32.vlgmr.msra.gmra.mxu0 %vm697_vm4, %v7310_v41  ;;  %v3495_v20 = vsub.f32 %v7361_v24, %v3489_v46 }
0x1390   :  { %5928 = vmatprep.mubr.msk.f32.mxu0 %vm697_vm4, %v7316_v5 }
0x1392   :  { %v3492_v43 = vpop.xlane.xlu0 %3491 }
0x1393   :  { %5929 = vmatmul.mubr.msk.f32.gmra.mxu0 %vm697_vm4, %v7314_v45  ;;  %v3496_v17 = vsub.f32 %v7368_v28, %v3492_v43  ;;  %v3501_v45 = vmul.f32 1.442695, %v3495_v20 }
0x1395   :  { %v3503_v5 = vmul.f32 1.442695, %v3496_v17 }
0x139c   :  { %v6144_v14 = vpop.eup %6143 }
0x139d   :  { %v3505_v63 = vsel %vm587_vm3, %v6144_v14, 0.0 }
0x139e   :  { %3506 = vadd.xlane.f32.xlu1 %v3505_v63 }
0x13af   :  { %3527 = vrot.lane.b32.xlu1 %v7200_v55, %s6442_s0 }
0x13b7   :  { %v3486_v19 = vpop.xlane.xlu1 %3485 }
0x13b8   :  { %v3494_v41 = vsub.f32 %v7379_v32, %v3486_v19 }
0x13ba   :  { %v3499_v57 = vmul.f32 1.442695, %v3494_v41 }
0x13bb   :  { %v3532_v21 = vpop.permute.xlu1 %3531 }
0x13bc   :  { %6145 = vpow2.f32 %v3499_v57  ;;  %5865 = vmatprep.subr.mxu1 %v3532_v21 }
0x13bd   :  { %6147 = vpow2.f32 %v3503_v5 }
0x13be   :  { %6149 = vpow2.f32 %v3501_v45 }
0x13c9   :  { %v6146_v22 = vpop.eup %6145 }
0x13ca   :  { %v3508_v23 = vsel %vm587_vm3, %v6146_v22, 0.0  ;;  %v7426_v60 = vpop.eup %6147 }
0x13cb   :  { %3509 = vadd.xlane.f32.xlu0 %v3508_v23  ;;  %v3514_v4 = vsel %vm587_vm3, %v7426_v60, 0.0  ;;  %v6150_v44 = vpop.eup %6149 }
0x13cc   :  { %v3511_v24 = vsel %vm587_vm3, %v6150_v44, 0.0 }
0x13cf   :  { %3515 = vadd.xlane.f32.xlu0 %v3514_v4 }
0x13d3   :  { %3512 = vadd.xlane.f32.xlu1 %v3511_v24 }
0x13e4   :  { %3525 = vrot.lane.b32.xlu1 %v7190_v15, %s6442_s0 }
0x13e5   :  { %3529 = vrot.lane.b32.xlu0 %v7196_v18, %s6442_s0 }
0x1427   :  { %v3507_v28 = vpop.xlane.xlu1 %3506 }
0x1428   :  { %6151 = vrcp.f32 %v3507_v28 }
0x1435   :  { %v6152_v32 = vpop.eup %6151 }
0x1436   :  { %v3521_v48 = vmul.f32 %v6152_v32, %v6144_v14 }
0x1439   :  { %v5839_v30 = vpop.f32.mrf.mxu1 }
0x143b   :  { %v3248_v31 = vpop.f32.mrf.mxu1 }
0x143c   :  { %5845 = vmatprep.mubr.msk.f32.mxu1 %vm697_vm4, %v3248_v31 }
0x143d   :  { %5846 = vmatmul.mubr.msk.f32.vlgmr.msra.gmra.mxu1 %vm697_vm4, %v5839_v30 }
0x143e   :  { %5866 = vmatpush3.msra.mxu1 %v3532_v21 }
0x1444   :  { %v5842_v36 = vpop.f32.mrf.mxu1 }
0x1446   :  { %v3258_v37 = vpop.f32.mrf.mxu1 }
0x1447   :  { %5848 = vmatprep.mubr.msk.f32.mxu1 %vm697_vm4, %v3258_v37  ;;  %v5897_v38 = vpop.f32.mrf.mxu0 }
0x1448   :  { %v3835_v8 = vadd.f32 %v7230_v25, %v5897_v38  ;;  %5849 = vmatmul.mubr.msk.f32.gmra.mxu1 %vm697_vm4, %v5842_v36 }
0x1449   :  { %5873 = vmatprep.mubr.msk.f32.mxu1 %vm587_vm3, %v3521_v48  ;;  %v3829_v49 = vpop.f32.mrf.mxu0 }
0x144a   :  { %v3830_v50 = vadd.f32 %v7233_v29, %v3829_v49  ;;  %v3851_v27 = vsel %vm587_vm3, %v3835_v8, -inf  ;;  %v3528_v29 = vpop.permute.xlu1 %3527 }
0x144b   :  { %v5900_v7 = vpop.f32.mrf.mxu0  ;;  %3852 = vmax.xlane.f32.xlu1 %v3851_v27 }
0x144c   :  { %v3848_v51 = vsel %vm587_vm3, %v3830_v50, -inf  ;;  %v3845_v58 = vadd.f32 %v7237_v33, %v5900_v7  ;;  %v5165_v7 = vld [vmem:[%s7722_s27 + $0x38] sm:$0xff] }
0x144d   :  { %v3839_v26 = vpop.f32.mrf.mxu0  ;;  %3849 = vmax.xlane.f32.xlu0 %v3848_v51 }
0x144e   :  { %v3840_v54 = vadd.f32 %v7241_v39, %v3839_v26  ;;  %v3857_v47 = vsel %vm587_vm3, %v3845_v58, -inf  ;;  %v5164_v39 = vld [vmem:[%s7722_s27 + $0x30] sm:$0xff] }
0x1450   :  { %v3854_v25 = vsel %vm587_vm3, %v3840_v54, -inf }
0x1451   :  { %3855 = vmax.xlane.f32.xlu0 %v3854_v25 }
0x1454   :  { %v3510_v6 = vpop.xlane.xlu0 %3509 }
0x1455   :  { %6153 = vrcp.f32 %v3510_v6  ;;  %3858 = vmax.xlane.f32.xlu0 %v3857_v47  ;;  %v5927_v6 = vpop.f32.mrf.mxu0 }
0x1458   :  { %v3516_v56 = vpop.xlane.xlu0 %3515 }
0x1459   :  { %6155 = vrcp.f32 %v3516_v56 }
0x145c   :  { %3898 = vrot.lane.b32.xlu1 %v7194_v16, %s6443_s16  ;;  %v3513_v40 = vpop.xlane.xlu1 %3512  ;;  %v3530_v59 = vpop.permute.xlu0 %3529 }
0x145d   :  { %6157 = vrcp.f32 %v3513_v40  ;;  %5867 = vmatprep.subr.mxu1 %v3530_v59 }
0x145e   :  { %5868 = vmatpush3.msra.mxu1 %v3530_v59 }
0x145f   :  { %5869 = vmatprep.subr.mxu1 %v3528_v29 }
0x1460   :  { %v3526_v33 = vpop.permute.xlu1 %3525  ;;  %5870 = vmatpush3.msra.mxu1 %v3528_v29  ;;  %v4176_v29 = vpop.f32.mrf.mxu0 }
0x1461   :  { %5871 = vmatprep.subr.mxu1 %v3526_v33 }
0x1462   :  { %v6154_v35 = vpop.eup %6153  ;;  %5872 = vmatpush3.msra.mxu1 %v3526_v33 }
0x1463   :  { %v3522_v1 = vmul.f32 %v6154_v35, %v6146_v22  ;;  %5879 = vmatprep.subr.mxu1 %v5164_v39  ;;  %v5930_v35 = vpop.f32.mrf.mxu0 }
0x1465   :  { %5874 = vmatmul.mubr.msk.f32.vlgmr.msra.gmra.mxu1 %vm587_vm3, %v3522_v1 }
0x1466   :  { %5880 = vmatpush3.msra.mxu1 %v5164_v39  ;;  %v6156_v16 = vpop.eup %6155 }
0x1467   :  { %v3524_v52 = vmul.f32 %v6156_v16, %v7426_v60 }
0x146a   :  { %v6158_v34 = vpop.eup %6157 }
0x146b   :  { %v3523_v53 = vmul.f32 %v6158_v34, %v6150_v44 }
0x146d   :  { %5876 = vmatprep.mubr.msk.f32.mxu1 %vm587_vm3, %v3523_v53 }
0x146e   :  { %5877 = vmatmul.mubr.msk.f32.gmra.mxu1 %vm587_vm3, %v3524_v52 }
0x14d4   :  { %v3853_v62 = vpop.xlane.xlu1 %3852 }
0x14d5   :  { %v3861_v61 = vsub.f32 %v3835_v8, %v3853_v62 }
0x14d6   :  { %v3850_v10 = vpop.xlane.xlu0 %3849 }
0x14d7   :  { %v3866_v11 = vmul.f32 1.442695, %v3861_v61  ;;  %v3860_v12 = vsub.f32 %v3830_v50, %v3850_v10 }
0x14d8   :  { %v3899_v42 = vpop.permute.xlu1 %3898 }
0x14d9   :  { %6159 = vpow2.f32 %v3866_v11  ;;  %v3864_v14 = vmul.f32 1.442695, %v3860_v12  ;;  %5901 = vmatprep.subr.mxu1 %v3899_v42  ;;  %v5249_v11 = vld [vmem:[%s7723_s1 + $0x1] ss:$0 sm:$0xff] }
0x14da   :  { %v3856_v63 = vpop.xlane.xlu0 %3855 }
0x14db   :  { %6161 = vpow2.f32 %v3864_v14  ;;  %v3862_v45 = vsub.f32 %v3840_v54, %v3856_v63 }
0x14dd   :  { %v3868_v22 = vmul.f32 1.442695, %v3862_v45 }
0x14de   :  { %v3859_v46 = vpop.xlane.xlu0 %3858 }
0x14df   :  { %v3863_v43 = vsub.f32 %v3845_v58, %v3859_v46 }
0x14e1   :  { %v3870_v17 = vmul.f32 1.442695, %v3863_v43 }
0x14e3   :  { %6163 = vpow2.f32 %v3870_v17 }
0x14e4   :  { %6165 = vpow2.f32 %v3868_v22 }
0x14e6   :  { %v6160_v19 = vpop.eup %6159 }
0x14e7   :  { %v3875_v41 = vsel %vm587_vm3, %v6160_v19, 0.0 }
0x14e8   :  { %v6162_v20 = vpop.eup %6161  ;;  %3876 = vadd.xlane.f32.xlu0 %v3875_v41 }
0x14e9   :  { %v3872_v5 = vsel %vm587_vm3, %v6162_v20, 0.0 }
0x14ea   :  { %3873 = vadd.xlane.f32.xlu1 %v3872_v5 }
0x14f0   :  { %v6164_v57 = vpop.eup %6163 }
0x14f1   :  { %v3881_v21 = vsel %vm587_vm3, %v6164_v57, 0.0  ;;  %v6166_v60 = vpop.eup %6165 }
0x14f2   :  { %3882 = vadd.xlane.f32.xlu0 %v3881_v21  ;;  %v3878_v44 = vsel %vm587_vm3, %v6166_v60, 0.0 }
0x14fb   :  { %3894 = vrot.lane.b32.xlu1 %v7200_v55, %s6443_s16 }
0x14fd   :  { %v5847_v23 = vpop.f32.mrf.mxu1 }
0x14fe   :  { %v4182_v47 = vadd.f32 %v5927_v6, %v5847_v23 }
0x14ff   :  { %v3345_v4 = vpop.f32.mrf.mxu1 }
0x1500   :  { %v4177_v40 = vadd.f32 %v4176_v29, %v3345_v4 }
0x1508   :  { %3896 = vrot.lane.b32.xlu0 %v7196_v18, %s6443_s16  ;;  %v5850_v24 = vpop.f32.mrf.mxu1 }
0x1509   :  { %v4192_v1 = vadd.f32 %v5930_v35, %v5850_v24 }
0x150a   :  { %v7465_v28 = vpop.f32.mrf.mxu1 }
0x151f   :  { %3879 = vadd.xlane.f32.xlu1 %v3878_v44 }
0x1525   :  { %v5875_v30 = vpop.f32.mrf.mxu1 }
0x1527   :  { %v3615_v31 = vpop.f32.mrf.mxu1 }
0x1528   :  { %5881 = vmatprep.mubr.msk.f32.mxu1 %vm697_vm4, %v3615_v31 }
0x1529   :  { %5882 = vmatmul.mubr.msk.f32.vlgmr.msra.gmra.mxu1 %vm697_vm4, %v5875_v30 }
0x152a   :  { %5902 = vmatpush3.msra.mxu1 %v3899_v42 }
0x152e   :  { %v5878_v55 = vpop.f32.mrf.mxu1 }
0x1530   :  { %v3625_v18 = vpop.f32.mrf.mxu1  ;;  %3892 = vrot.lane.b32.xlu1 %v7190_v15, %s6443_s16 }
0x1531   :  { %5884 = vmatprep.mubr.msk.f32.mxu1 %vm697_vm4, %v3625_v18 }
0x1532   :  { %5885 = vmatmul.mubr.msk.f32.gmra.mxu1 %vm697_vm4, %v5878_v55 }
0x1571   :  { %v3877_v36 = vpop.xlane.xlu0 %3876 }
0x1573   :  { %v3874_v32 = vpop.xlane.xlu1 %3873 }
0x1574   :  { %6167 = vrcp.f32 %v3874_v32 }
0x1575   :  { %6169 = vrcp.f32 %v3877_v36 }
0x1577   :  { %v3895_v8 = vpop.permute.xlu1 %3894 }
0x157b   :  { %v3883_v37 = vpop.xlane.xlu0 %3882 }
0x157c   :  { %6171 = vrcp.f32 %v3883_v37  ;;  %v5170_v37 = vld [vmem:[%s7688_s7 + $0x38] sm:$0xff] }
0x157f   :  { %v3897_v38 = vpop.permute.xlu0 %3896 }
0x1580   :  { %5903 = vmatprep.subr.mxu1 %v3897_v38 }
0x1581   :  { %v6168_v48 = vpop.eup %6167  ;;  %5904 = vmatpush3.msra.mxu1 %v3897_v38  ;;  %v5169_v38 = vld [vmem:[%s7688_s7 + $0x30] sm:$0xff] }
0x1582   :  { %5905 = vmatprep.subr.mxu1 %v3895_v8  ;;  %v3888_v49 = vmul.f32 %v6168_v48, %v6162_v20  ;;  %v6170_v50 = vpop.eup %6169  ;;  %v4186_v20 = vpop.f32.mrf.mxu0  ;;  %v5168_v48 = vld [vmem:[%s7688_s7 + $0x28] sm:$0xff] }
0x1583   :  { %5906 = vmatpush3.msra.mxu1 %v3895_v8  ;;  %v3889_v51 = vmul.f32 %v6170_v50, %v6160_v19  ;;  %v4187_v21 = vadd.f32 %v4186_v20, %v7465_v28  ;;  %v5167_v8 = vld [vmem:[%s7688_s7 + $0x20] sm:$0xff] }
0x1584   :  { %5909 = vmatprep.mubr.msk.f32.mxu1 %vm587_vm3, %v3888_v49 }
0x1589   :  { %v6172_v26 = vpop.eup %6171 }
0x158a   :  { %v3891_v25 = vmul.f32 %v6172_v26, %v6164_v57 }
0x15a8   :  { %v3880_v15 = vpop.xlane.xlu1 %3879 }
0x15a9   :  { %6173 = vrcp.f32 %v3880_v15 }
0x15ac   :  { %v3893_v27 = vpop.permute.xlu1 %3892 }
0x15ad   :  { %5907 = vmatprep.subr.mxu1 %v3893_v27 }
0x15ae   :  { %5908 = vmatpush3.msra.mxu1 %v3893_v27 }
0x15af   :  { %5910 = vmatmul.mubr.msk.f32.vlgmr.msra.gmra.mxu1 %vm587_vm3, %v3889_v51  ;;  %5915 = vmatprep.subr.mxu1 %v5165_v7 }
0x15b0   :  { %5916 = vmatpush3.msra.mxu1 %v5165_v7 }
0x15b1   :  { %5931 = vmatprep.subr.mxu1 %v5170_v37 }
0x15b6   :  { %v6174_v54 = vpop.eup %6173 }
0x15b7   :  { %v3890_v58 = vmul.f32 %v6174_v54, %v6166_v60 }
0x15b9   :  { %5912 = vmatprep.mubr.msk.f32.mxu1 %vm587_vm3, %v3890_v58 }
0x15ba   :  { %5913 = vmatmul.mubr.msk.f32.gmra.mxu1 %vm587_vm3, %v3891_v25 }
0x15e9   :  { %v5883_v56 = vpop.f32.mrf.mxu1 }
0x15ea   :  { %v4196_v59 = vadd.f32 %v5883_v56, %v4182_v47 }
0x15eb   :  { %v3712_v33 = vpop.f32.mrf.mxu1 }
0x15ec   :  { %v4195_v39 = vadd.f32 %v4177_v40, %v3712_v33 }
0x15f2   :  { %v5886_v16 = vpop.f32.mrf.mxu1 }
0x15f3   :  { %v4198_v34 = vadd.f32 %v5886_v16, %v4192_v1 }
0x15f4   :  { %v3722_v53 = vpop.f32.mrf.mxu1 }
0x15f5   :  { %v4197_v45 = vadd.f32 %v4187_v21, %v3722_v53 }
0x166f   :  { %v5911_v52 = vpop.f32.mrf.mxu1 }
0x1671   :  { %v3982_v62 = vpop.f32.mrf.mxu1 }
0x1672   :  { %5917 = vmatprep.mubr.msk.f32.mxu1 %vm697_vm4, %v3982_v62 }
0x1673   :  { %5918 = vmatmul.mubr.msk.f32.vlgmr.msra.gmra.mxu1 %vm697_vm4, %v5911_v52 }
0x1674   :  { %5932 = vmatpush3.msra.mxu1 %v5170_v37  ;;  %v5174_v37 = vld [vmem:[%s7690_s9 + $0x50] sm:$0xff] }
0x1675   :  { %5933 = vmatprep.subr.mxu1 %v5169_v38 }
0x1676   :  { %5934 = vmatpush3.msra.mxu1 %v5169_v38  ;;  %v5173_v38 = vld [vmem:[%s7690_s9 + $0x48] sm:$0xff] }
0x1677   :  { %5935 = vmatprep.subr.mxu1 %v5168_v48 }
0x1678   :  { %5936 = vmatpush3.msra.mxu1 %v5168_v48  ;;  %v5172_v48 = vld [vmem:[%s7690_s9 + $0x40] sm:$0xff] }
0x1679   :  { %5937 = vmatprep.subr.mxu1 %v5167_v8 }
0x167a   :  { %v5914_v61 = vpop.f32.mrf.mxu1  ;;  %5938 = vmatpush3.msra.mxu1 %v5167_v8  ;;  %v5252_v8 = vld [vmem:[%s7689_s8 + $0x1] ss:$0 sm:$0xff] }
0x167b   :  { %5967 = vmatprep.subr.mxu1 %v6431_v0 }
0x167c   :  { %v3992_v10 = vpop.f32.mrf.mxu1 }
0x167d   :  { %5920 = vmatprep.mubr.msk.f32.mxu1 %vm697_vm4, %v3992_v10 }
0x167e   :  { %5921 = vmatmul.mubr.msk.f32.gmra.mxu1 %vm697_vm4, %v5914_v61 }
0x1733   :  { %v5919_v12 = vpop.f32.mrf.mxu1 }
0x1734   :  { %v4200_v42 = vadd.f32 %v5919_v12, %v4196_v59 }
0x1735   :  { %v4079_v14 = vpop.f32.mrf.mxu1 }
0x1736   :  { %v4210_v63 = vadd.f32 %v5249_v11, %v4200_v42  ;;  %v4199_v46 = vadd.f32 %v4195_v39, %v4079_v14 }
0x1738   :  { %v7488_v43 = vadd.f32 %v4210_v63, %v7172_v3  ;;  %v4209_v17 = vadd.f32 %v5249_v11, %v4199_v46 }
0x173a   :  { %v7491_v19 = vadd.f32 %v4209_v17, %v7170_v2  ;;  %v4220_v41 = vsel %vm587_vm3, %v7488_v43, 0.0  ;;  %v4234_v57 = vmul.f32 %v7488_v43, %v7488_v43 }
0x173b   :  { %4221 = vadd.xlane.f32.xlu1 %v4220_v41 }
0x173c   :  { %v4217_v5 = vsel %vm587_vm3, %v7491_v19, 0.0  ;;  %v4240_v2 = vsel %vm587_vm3, %v4234_v57, 0.0  ;;  %v4233_v60 = vmul.f32 %v7491_v19, %v7491_v19 }
0x173d   :  { %4218 = vadd.xlane.f32.xlu0 %v4217_v5  ;;  %v5250_v5 = vld [vmem:[#allocation4 + $0x1] ss:$0 sm:$0xff] }
0x173e   :  { %v5922_v3 = vpop.f32.mrf.mxu1  ;;  %v4237_v31 = vsel %vm587_vm3, %v4233_v60, 0.0 }
0x173f   :  { %v4202_v22 = vadd.f32 %v5922_v3, %v4198_v34 }
0x1740   :  { %v4089_v23 = vpop.f32.mrf.mxu1 }
0x1741   :  { %v4212_v4 = vadd.f32 %v5249_v11, %v4202_v22  ;;  %v4201_v44 = vadd.f32 %v4197_v45, %v4089_v23  ;;  %4241 = vadd.xlane.f32.xlu0 %v4240_v2  ;;  %v5251_v45 = vld [vmem:[#allocation6 + $0x1] ss:$0 sm:$0xff] }
0x1743   :  { %v4211_v24 = vadd.f32 %v5249_v11, %v4201_v44  ;;  %v7504_v30 = vadd.f32 %v4212_v4, %v7181_v9 }
0x1745   :  { %v7508_v28 = vadd.f32 %v4211_v24, %v7179_v13  ;;  %4238 = vadd.xlane.f32.xlu0 %v4237_v31  ;;  %v4226_v32 = vsel %vm587_vm3, %v7504_v30, 0.0  ;;  %v4236_v9 = vmul.f32 %v7504_v30, %v7504_v30 }
0x1747   :  { %v4223_v55 = vsel %vm587_vm3, %v7508_v28, 0.0  ;;  %v4235_v18 = vmul.f32 %v7508_v28, %v7508_v28  ;;  %v4246_v13 = vsel %vm587_vm3, %v4236_v9, 0.0  ;;  %v5177_v9 = vld [vmem:[%s7690_s9 + $0x68] sm:$0xff] }
0x1748   :  { %4224 = vadd.xlane.f32.xlu1 %v4223_v55 }
0x1749   :  { %4227 = vadd.xlane.f32.xlu0 %v4226_v32  ;;  %v4243_v36 = vsel %vm587_vm3, %v4235_v18, 0.0 }
0x174c   :  { %4244 = vadd.xlane.f32.xlu1 %v4243_v36  ;;  %v5176_v36 = vld [vmem:[%s7690_s9 + $0x60] sm:$0xff] }
0x174d   :  { %4247 = vadd.xlane.f32.xlu0 %v4246_v13  ;;  %v5175_v13 = vld [vmem:[%s7690_s9 + $0x58] sm:$0xff] }
0x17c4   :  { %v4222_v49 = vpop.xlane.xlu1 %4221 }
0x17c5   :  { %v4230_v50 = vmul.f32 0.03125, %v4222_v49 }
0x17c6   :  { %v4219_v15 = vpop.xlane.xlu0 %4218 }
0x17c7   :  { %v4254_v7 = vmul.f32 %v4230_v50, %v4230_v50  ;;  %v4229_v51 = vmul.f32 0.03125, %v4219_v15  ;;  %v4266_v17 = vsub.f32 %v7488_v43, %v4230_v50 }
0x17c9   :  { %v4253_v25 = vmul.f32 %v4229_v51, %v4229_v51  ;;  %v4265_v20 = vsub.f32 %v7491_v19, %v4229_v51 }
0x17ca   :  { %v4242_v27 = vpop.xlane.xlu0 %4241 }
0x17cb   :  { %v4250_v26 = vmul.f32 0.03125, %v4242_v27 }
0x17cd   :  { %v4258_v54 = vsub.f32 %v4250_v26, %v4254_v7 }
0x17ce   :  { %v4239_v58 = vpop.xlane.xlu0 %4238 }
0x17cf   :  { %v4262_v6 = vmax.f32 %v4258_v54, 0.0  ;;  %v4249_v47 = vmul.f32 0.03125, %v4239_v58 }
0x17d1   :  { %v4270_v29 = vadd.f32 1e-05, %v4262_v6  ;;  %v4257_v56 = vsub.f32 %v4249_v47, %v4253_v25  ;;  %v4225_v40 = vpop.xlane.xlu1 %4224 }
0x17d2   :  { %v4231_v59 = vmul.f32 0.03125, %v4225_v40  ;;  %v4228_v33 = vpop.xlane.xlu0 %4227 }
0x17d3   :  { %6175 = vrsqrt.f32 %v4270_v29  ;;  %v4261_v39 = vmax.f32 %v4257_v56, 0.0  ;;  %v4232_v35 = vmul.f32 0.03125, %v4228_v33 }
0x17d4   :  { %v4255_v34 = vmul.f32 %v4231_v59, %v4231_v59  ;;  %v4267_v2 = vsub.f32 %v7508_v28, %v4231_v59  ;;  %v5178_v28 = vld [vmem:[%s7690_s9 + $0x70] sm:$0xff] }
0x17d5   :  { %v4269_v1 = vadd.f32 1e-05, %v4261_v39  ;;  %v4245_v16 = vpop.xlane.xlu1 %4244  ;;  %v4256_v62 = vmul.f32 %v4232_v35, %v4232_v35  ;;  %v4268_v44 = vsub.f32 %v7504_v30, %v4232_v35  ;;  %v5179_v30 = vld [vmem:[%s7690_s9 + $0x78] sm:$0xff] }
0x17d6   :  { %v4251_v53 = vmul.f32 0.03125, %v4245_v16  ;;  %v4248_v52 = vpop.xlane.xlu0 %4247  ;;  %5945 = vmatprep.subr.mxu0 %v5179_v30 }
0x17d7   :  { %6177 = vrsqrt.f32 %v4269_v1  ;;  %v4252_v61 = vmul.f32 0.03125, %v4248_v52  ;;  %5946 = vmatpush3.msra.mxu0 %v5179_v30 }
0x17d8   :  { %v4259_v10 = vsub.f32 %v4251_v53, %v4255_v34  ;;  %5947 = vmatprep.subr.mxu0 %v5178_v28 }
0x17d9   :  { %v4260_v11 = vsub.f32 %v4252_v61, %v4256_v62  ;;  %5948 = vmatpush3.msra.mxu0 %v5178_v28  ;;  %v4574_v28 = vld [vmem:[#allocation10 + $0x18] sm:$0xff] }
0x17da   :  { %v4263_v12 = vmax.f32 %v4259_v10, 0.0  ;;  %5949 = vmatprep.subr.mxu0 %v5177_v9 }
0x17db   :  { %v4264_v42 = vmax.f32 %v4260_v11, 0.0  ;;  %5950 = vmatpush3.msra.mxu0 %v5177_v9  ;;  %v4573_v9 = vld [vmem:[#allocation10 + $0x10] sm:$0xff] }
0x17dc   :  { %v4271_v14 = vadd.f32 1e-05, %v4263_v12  ;;  %5951 = vmatprep.subr.mxu0 %v5176_v36 }
0x17dd   :  { %v4272_v63 = vadd.f32 1e-05, %v4264_v42  ;;  %5952 = vmatpush3.msra.mxu0 %v5176_v36  ;;  %v4572_v36 = vld [vmem:[#allocation10 + $0x8] sm:$0xff] }
0x17de   :  { %6179 = vrsqrt.f32 %v4271_v14  ;;  %5953 = vmatprep.subr.mxu0 %v5175_v13 }
0x17df   :  { %6181 = vrsqrt.f32 %v4272_v63  ;;  %5954 = vmatpush3.msra.mxu0 %v5175_v13  ;;  %v4571_v13 = vld [vmem:[#allocation10] sm:$0xff] }
0x17e0   :  { %v6176_v46 = vpop.eup %6175  ;;  %5955 = vmatprep.subr.mxu0 %v5174_v37 }
0x17e1   :  { %v4278_v41 = vmul.f32 %v6176_v46, %v4266_v17  ;;  %5956 = vmatpush3.msra.mxu0 %v5174_v37 }
0x17e2   :  { %5957 = vmatprep.subr.mxu0 %v5173_v38 }
0x17e3   :  { %v4288_v3 = vmul.f32 %v5250_v5, %v4278_v41  ;;  %5958 = vmatpush3.msra.mxu0 %v5173_v38 }
0x17e4   :  { %v6178_v57 = vpop.eup %6177  ;;  %5959 = vmatprep.subr.mxu0 %v5172_v48 }
0x17e5   :  { %v4277_v21 = vmul.f32 %v6178_v57, %v4265_v20  ;;  %v4298_v60 = vadd.f32 %v5251_v45, %v4288_v3  ;;  %5960 = vmatpush3.msra.mxu0 %v5172_v48 }
0x17e7   :  { %v4287_v22 = vmul.f32 %v5250_v5, %v4277_v21 }
0x17e9   :  { %v4297_v23 = vadd.f32 %v5251_v45, %v4287_v22 }
0x17eb   :  { %v6180_v4 = vpop.eup %6179  ;;  %5939 = vmatprep.mubr.msk.f32.mxu1 %vm587_vm3, %v4297_v23 }
0x17ec   :  { %v6182_v24 = vpop.eup %6181  ;;  %5940 = vmatmul.mubr.msk.f32.vlgmr.msra.gmra.mxu1 %vm587_vm3, %v4298_v60  ;;  %v4279_v43 = vmul.f32 %v6180_v4, %v4267_v2 }
0x17ed   :  { %v4280_v19 = vmul.f32 %v6182_v24, %v4268_v44  ;;  %v5257_v44 = vld [vmem:[#allocation2 + $0x1] ss:$0 sm:$0xff]  ;;  %5968 = vmatpush3.msra.mxu1 %v4574_v28 }
0x17ee   :  { %v4289_v31 = vmul.f32 %v5250_v5, %v4279_v43  ;;  %5969 = vmatprep.subr.mxu1 %v6431_v0 }
0x17ef   :  { %v4290_v55 = vmul.f32 %v5250_v5, %v4280_v19  ;;  %5970 = vmatpush3.msra.mxu1 %v4573_v9 }
0x17f0   :  { %v4299_v18 = vadd.f32 %v5251_v45, %v4289_v31  ;;  %5971 = vmatprep.subr.mxu1 %v6431_v0 }
0x17f1   :  { %v7539_v32 = vadd.f32 %v5251_v45, %v4290_v55  ;;  %5972 = vmatpush3.msra.mxu1 %v4572_v36 }
0x17f2   :  { %5942 = vmatprep.mubr.msk.f32.mxu1 %vm587_vm3, %v4299_v18  ;;  %5973 = vmatprep.subr.mxu1 %v6431_v0 }
0x17f3   :  { %5943 = vmatmul.mubr.msk.f32.gmra.mxu1 %vm587_vm3, %v7539_v32 }
0x17f4   :  { %5975 = vmatprep.mubr.msk.f32.mxu1 %vm6432_vm0, %v6431_v0  ;;  %5974 = vmatpush3.msra.mxu1 %v4571_v13 }
0x18ac   :  { %v5941_v49 = vpop.f32.mrf.mxu1 }
0x18ad   :  { %v4391_v15 = vadd.f32 %v5941_v49, %v5252_v8 }
0x18ae   :  { %v4385_v50 = vpop.f32.mrf.mxu1 }
0x18af   :  { %v4409_v27 = vmul.f32 0.044715, %v4391_v15  ;;  %v4386_v7 = vadd.f32 %v5252_v8, %v4385_v50  ;;  %v4405_v17 = vmul.f32 0.5, %v4391_v15 }
0x18b1   :  { %v4413_v51 = vmul.f32 %v4409_v27, %v4391_v15  ;;  %v4408_v26 = vmul.f32 0.044715, %v4386_v7  ;;  %v4404_v63 = vmul.f32 0.5, %v4386_v7 }
0x18b3   :  { %v4417_v54 = vmul.f32 %v4413_v51, %v4391_v15  ;;  %v4412_v58 = vmul.f32 %v4408_v26, %v4386_v7  ;;  %v5944_v25 = vpop.f32.mrf.mxu1  ;;  %v5262_v51 = vld [vmem:[#allocation7 + $0x1] ss:$0 sm:$0xff] }
0x18b4   :  { %v4401_v6 = vadd.f32 %v5944_v25, %v5252_v8 }
0x18b5   :  { %v4421_v47 = vadd.f32 %v4417_v54, %v4391_v15  ;;  %v4416_v29 = vmul.f32 %v4412_v58, %v4386_v7  ;;  %v4395_v56 = vpop.f32.mrf.mxu1  ;;  %v5263_v54 = vld [vmem:[#allocation9 + $0x1] ss:$0 sm:$0xff] }
0x18b6   :  { %v4411_v40 = vmul.f32 0.044715, %v4401_v6  ;;  %v4396_v59 = vadd.f32 %v5252_v8, %v4395_v56  ;;  %v4407_v22 = vmul.f32 0.5, %v4401_v6  ;;  %v4860_v56 = vld [vmem:[%s7699_s18 + $0x38] sm:$0x3] }
0x18b7   :  { %v4425_v33 = vmul.f32 0.7978846, %v4421_v47  ;;  %v4420_v39 = vadd.f32 %v4416_v29, %v4386_v7  ;;  %v4695_v47 = vld [vmem:[%s7698_s17 + $0x30] sm:$0x3]  ;;  %v4693_v29 = vld [vmem:[%s7698_s17 + $0x20] sm:$0xff]  ;;  %5273 = vmatprep.subr.msk.mxu0 %vm4702_vm6, %v4860_v56 }
0x18b8   :  { %v4415_v35 = vmul.f32 %v4411_v40, %v4401_v6  ;;  %v4410_v1 = vmul.f32 0.044715, %v4396_v59  ;;  %v4406_v3 = vmul.f32 0.5, %v4396_v59  ;;  %v4859_v40 = vld [vmem:[%s7699_s18 + $0x30] sm:$0x3] }
0x18b9   :  { %6183 = vtanh.f32 %v4425_v33  ;;  %v4424_v16 = vmul.f32 0.7978846, %v4420_v39 }
0x18ba   :  { %v4419_v34 = vmul.f32 %v4415_v35, %v4401_v6  ;;  %v4414_v53 = vmul.f32 %v4410_v1, %v4396_v59 }
0x18bb   :  { %6185 = vtanh.f32 %v4424_v16 }
0x18bc   :  { %v4423_v52 = vadd.f32 %v4419_v34, %v4401_v6  ;;  %v4418_v62 = vmul.f32 %v4414_v53, %v4396_v59  ;;  %v4696_v6 = vld [vmem:[%s7698_s17 + $0x38] sm:$0x3] }
0x18bd   :  { %5268 = vmatprep.subr.msk.mxu1 %vm4702_vm6, %v4696_v6 }
0x18be   :  { %v4422_v61 = vadd.f32 %v4418_v62, %v4396_v59  ;;  %v4427_v10 = vmul.f32 0.7978846, %v4423_v52  ;;  %v5264_v59 = vld [vmem:[#allocation12] ss:$0 sm:$0xff]  ;;  %v4692_v62 = vld [vmem:[%s7698_s17 + $0x18] sm:$0xff] }
0x18c0   :  { %v4426_v11 = vmul.f32 0.7978846, %v4422_v61  ;;  %6187 = vtanh.f32 %v4427_v10  ;;  %v4857_v61 = vld [vmem:[%s7699_s18 + $0x20] sm:$0xff]  ;;  %v4690_v10 = vld [vmem:[%s7698_s17 + $0x8] sm:$0xff] }
0x18c2   :  { %6189 = vtanh.f32 %v4426_v11  ;;  %v4856_v11 = vld [vmem:[%s7699_s18 + $0x18] sm:$0xff] }
0x18c6   :  { %v6184_v12 = vpop.eup %6183 }
0x18c7   :  { %v4433_v14 = vadd.f32 1.0, %v6184_v12  ;;  %v4689_v12 = vld [vmem:[%s7698_s17] sm:$0xff] }
0x18c8   :  { %v6186_v42 = vpop.eup %6185 }
0x18c9   :  { %v4432_v46 = vadd.f32 1.0, %v6186_v42  ;;  %v4437_v20 = vmul.f32 %v4433_v14, %v4405_v17  ;;  %v4854_v42 = vld [vmem:[%s7699_s18 + $0x8] sm:$0xff]  ;;  %v4853_v14 = vld [vmem:[%s7699_s18] sm:$0xff] }
0x18cb   :  { %v4436_v41 = vmul.f32 %v4432_v46, %v4404_v63 }
0x18cd   :  { %v6188_v5 = vpop.eup %6187  ;;  %5961 = vmatprep.mubr.msk.f32.mxu0 %vm2402_vm5, %v4436_v41 }
0x18ce   :  { %5962 = vmatmul.mubr.msk.f32.vlgmr.msra.gmra.mxu0 %vm2402_vm5, %v4437_v20  ;;  %v4435_v21 = vadd.f32 1.0, %v6188_v5  ;;  %v5017_v20 = vlaneseq }
0x18cf   :  { %v6190_v57 = vpop.eup %6189  ;;  %5274 = vmatpush1.msk.msra.mxu0 %vm4702_vm6, %v4859_v40 }
0x18d0   :  { %v4434_v45 = vadd.f32 1.0, %v6190_v57  ;;  %v4439_v2 = vmul.f32 %v4435_v21, %v4407_v22  ;;  %4899 = vmatprep.subr.mxu0 %v4857_v61  ;;  %v7634_v5 = vand.u32 127, %v5017_v20  ;;  %v5267_v21 = vld [vmem:[#allocation16] ss:$0 sm:$0xff] }
0x18d1   :  { %4900 = vmatpush1.msra.mxu0 %v4856_v11 }
0x18d2   :  { %v4438_v23 = vmul.f32 %v4434_v45, %v4406_v3  ;;  %4901 = vmatprep.subr.mxu0 %v4854_v42  ;;  %vm5019_vm7 = vcmp.lt.s32.totalorder %v7634_v5, 2  ;;  %v5266_v45 = vld [vmem:[#allocation15] ss:$0 sm:$0xff]  ;;  %vm5030_vm9 = vcmp.ge.s32.totalorder %v7634_v5, 8  ;;  %vm5031_vm10 = vcmp.lt.s32.totalorder %v7634_v5, 26 }
0x18d3   :  { %4902 = vmatpush1.msra.mxu0 %v4853_v14  ;;  %vm5032_vm11 = vmand %vm5030_vm9, %vm5031_vm10 }
0x18d4   :  { %5964 = vmatprep.mubr.msk.f32.mxu0 %vm2402_vm5, %v4438_v23 }
0x18d5   :  { %5965 = vmatmul.mubr.msk.f32.gmra.mxu0 %vm2402_vm5, %v4439_v2 }
0x18d6   :  { %4935 = vmatprep.mubr.f32.mxu0 %v6431_v0 }
0x198e   :  { %v5963_v60 = vpop.f32.mrf.mxu0 }
0x1990   :  { %v4524_v4 = vpop.f32.mrf.mxu0 }
0x1991   :  { %v4697_v4 = vld [vmem:[%s7698_s17 + $0x40] sm:$0x3] }
0x1995   :  { %v5966_v24 = vpop.f32.mrf.mxu0 }
0x1996   :  { %v4537_v43 = vadd.f32 %v5966_v24, %v5257_v44  ;;  %v4694_v44 = vld [vmem:[%s7698_s17 + $0x28] sm:$0xff]  ;;  %v4691_v24 = vld [vmem:[%s7698_s17 + $0x10] sm:$0xff] }
0x1997   :  { %v4532_v19 = vpop.f32.mrf.mxu0 }
0x1998   :  { %v4540_v31 = vadd.f32 %v4537_v43, %v7539_v32  ;;  %v4861_v43 = vld [vmem:[%s7699_s18 + $0x40] sm:$0x3]  ;;  %v4858_v19 = vld [vmem:[%s7699_s18 + $0x28] sm:$0xff] }
0x199a   :  { %v4541_v55 = vsel %vm587_vm3, %v4540_v31, 0.0  ;;  %v4545_v18 = vmul.f32 %v4540_v31, %v4540_v31 }
0x199b   :  { %4542 = vadd.xlane.f32.xlu1 %v4541_v55 }
0x199c   :  { %v4546_v30 = vsel %vm587_vm3, %v4545_v18, 0.0 }
0x199d   :  { %4547 = vadd.xlane.f32.xlu0 %v4546_v30 }
0x1a24   :  { %v4543_v32 = vpop.xlane.xlu1 %4542 }
0x1a25   :  { %v4544_v37 = vmul.f32 0.03125, %v4543_v32 }
0x1a26   :  { %v4548_v38 = vpop.xlane.xlu0 %4547 }
0x1a27   :  { %v4550_v48 = vmul.f32 %v4544_v37, %v4544_v37  ;;  %v4549_v8 = vmul.f32 0.03125, %v4548_v38  ;;  %v4553_v27 = vsub.f32 %v4540_v31, %v4544_v37  ;;  %v4855_v31 = vld [vmem:[%s7699_s18 + $0x10] sm:$0xff] }
0x1a29   :  { %v4551_v49 = vsub.f32 %v4549_v8, %v4550_v48 }
0x1a2b   :  { %v4552_v15 = vmax.f32 %v4551_v49, 0.0 }
0x1a2d   :  { %v4554_v50 = vadd.f32 1e-05, %v4552_v15 }
0x1a2f   :  { %6191 = vrsqrt.f32 %v4554_v50 }
0x1a3c   :  { %v6192_v7 = vpop.eup %6191 }
0x1a3d   :  { %v4556_v26 = vmul.f32 %v6192_v7, %v4553_v27 }
0x1a3f   :  { %v4563_v58 = vmul.f32 %v5262_v51, %v4556_v26 }
0x1a41   :  { %v4570_v25 = vadd.f32 %v5263_v54, %v4563_v58 }
0x1a43   :  { %5976 = vmatmul.mubr.msk.f32.vlgmr.msra.gmra.mxu1 %vm587_vm3, %v4570_v25 }
0x1a44   :  { %4776 = vmatprep.mubr.f32.mxu1 %v6431_v0  ;;  %5269 = vmatpush1.msk.msra.mxu1 %vm4702_vm6, %v4695_v47 }
0x1a45   :  { %4740 = vmatprep.subr.mxu1 %v4693_v29 }
0x1a46   :  { %4741 = vmatpush1.msra.mxu1 %v4692_v62 }
0x1a47   :  { %4742 = vmatprep.subr.mxu1 %v4690_v10 }
0x1a48   :  { %4743 = vmatpush1.msra.mxu1 %v4689_v12 }
0x1a49   :  { %5978 = vmatprep.subr.mxu1 %v6431_v0 }
0x1b03   :  { %v4651_v33 = vpop.f32.mrf.mxu1 }
0x1b04   :  { %v7605_v39 = vadd.f32 %v5264_v59, %v4651_v33 }
0x1b05   :  { %v5977_v35 = vpop.f32.mrf.mxu1 }
0x1b06   :  { %v4657_v1 = vand.u32 2147483647, %v7605_v39  ;;  %4684 = vrot.lane.b32.xlu0 %v7605_v39, %s6436_s24  ;;  %v4656_v46 = vmax.f32 %v7605_v39, 0.0  ;;  %v5020_v57 = vsel %vm5019_vm7, %v7605_v39, -1e+30 }
0x1b08   :  { %v4658_v16 = vsub.f32 0.0, %v4657_v1 }
0x1b0a   :  { %v4659_v34 = vmul.f32 1.442695, %v4658_v16 }
0x1b0c   :  { %6193 = vpow2.f32 %v4659_v34 }
0x1b19   :  { %v6194_v53 = vpop.eup %6193 }
0x1b1a   :  { %v4661_v52 = vadd.f32 1.0, %v6194_v53 }
0x1b1c   :  { %6195 = vlog2.f32 %v4661_v52 }
0x1b29   :  { %v6196_v63 = vpop.eup %6195 }
0x1b2a   :  { %v4663_v17 = vmul.f32 0.6931472, %v6196_v63 }
0x1b2c   :  { %v4664_v41 = vadd.f32 %v4663_v17, %v4656_v46 }
0x1b2e   :  { %4672 = vrot.lane.b32.xlu1 %v4664_v41, %s6436_s24 }
0x1b52   :  { %5021 = vmax.xlane.f32.xlu1 %v5020_v57 }
0x1b78   :  { %v4685_v3 = vpop.permute.xlu0 %4684 }
0x1b79   :  { %v4687_v23 = vmul.f32 %v5267_v21, %v4685_v3 }
0x1ba0   :  { %v4673_v22 = vpop.permute.xlu1 %4672 }
0x1ba1   :  { %v4675_v2 = vmul.f32 %v5266_v45, %v4673_v22 }
0x1ba3   :  { %v4688_v60 = vadd.f32 %v4687_v23, %v4675_v2 }
0x1ba5   :  { %5270 = vmatmul.mubr.msk.f32.vlgmr.msra.gmra.mxu1 %vm4698_vm8, %v4688_v60  ;;  %5275 = vmatmul.mubr.msk.f32.vlgmr.msra.gmra.mxu0 %vm4698_vm8, %v4688_v60 }
0x1ba6   :  { %5979 = vmatpush3.msk.msra.mxu1 %vm4702_vm6, %v4697_v4  ;;  %5984 = vmatprep.mubr.msk.f32.mxu1 %vm6432_vm0, %v6431_v0 }
0x1ba7   :  { %5980 = vmatprep.subr.mxu1 %v6431_v0 }
0x1ba8   :  { %5981 = vmatpush3.msra.mxu1 %v4694_v44 }
0x1ba9   :  { %5982 = vmatprep.subr.mxu1 %v6431_v0 }
0x1baa   :  { %5983 = vmatpush3.msra.mxu1 %v4691_v24 }
0x1bab   :  { %5985 = vmatmul.mubr.msk.f32.vlgmr.msra.gmra.mxu1 %vm4698_vm8, %v4688_v60  ;;  %5987 = vmatprep.subr.mxu1 %v6431_v0 }
0x1bac   :  { %5988 = vmatpush3.msk.msra.mxu1 %vm4702_vm6, %v4861_v43  ;;  %5993 = vmatprep.mubr.msk.f32.mxu1 %vm6432_vm0, %v6431_v0 }
0x1bad   :  { %5989 = vmatprep.subr.mxu1 %v6431_v0 }
0x1bae   :  { %5990 = vmatpush3.msra.mxu1 %v4858_v19 }
0x1baf   :  { %5991 = vmatprep.subr.mxu1 %v6431_v0 }
0x1bb0   :  { %5992 = vmatpush3.msra.mxu1 %v4855_v31 }
0x1bb1   :  { %5994 = vmatmul.mubr.msk.f32.vlgmr.msra.gmra.mxu1 %vm4698_vm8, %v4688_v60 }
0x1bdb   :  { %v5022_v55 = vpop.xlane.xlu1 %5021 }
0x1bdc   :  { %v5023_v18 = vsub.f32 %v5020_v57, %v5022_v55 }
0x1bde   :  { %v5024_v30 = vmul.f32 1.442695, %v5023_v18 }
0x1be0   :  { %6197 = vpow2.f32 %v5024_v30 }
0x1bed   :  { %v6198_v28 = vpop.eup %6197 }
0x1bee   :  { %5026 = vadd.xlane.f32.xlu0 %v6198_v28 }
0x1c65   :  { %v4778_v9 = vpop.f32.mrf.mxu1  ;;  %v4937_v48 = vpop.f32.mrf.mxu0 }
0x1c66   :  { %v5012_v15 = vmul.f32 %v4937_v48, %v4778_v9 }
0x1c67   :  { %v4780_v36 = vpop.f32.mrf.mxu1  ;;  %v4939_v49 = vpop.f32.mrf.mxu0 }
0x1c68   :  { %v5013_v0 = vmul.f32 %v4939_v49, %v4780_v36 }
0x1c6a   :  { %v5014_v27 = vadd.f32 %v5013_v0, %v5012_v15 }
0x1c6b   :  { %v4849_v13 = vpop.f32.mrf.mxu1 }
0x1c6d   :  { %v5986_v32 = vpop.f32.mrf.mxu1 }
0x1c71   :  { %v5008_v37 = vpop.f32.mrf.mxu1 }
0x1c72   :  { %v5015_v50 = vmul.f32 %v5008_v37, %v4849_v13 }
0x1c73   :  { %v5995_v38 = vpop.f32.mrf.mxu1 }
0x1c74   :  { %v5016_v7 = vadd.f32 %v5015_v50, %v5014_v27 }
0x1c76   :  { %v5033_v54 = vsel %vm5032_vm11, %v5016_v7, %v7605_v39 }
0x1c77   :  { %v5027_v8 = vpop.xlane.xlu0 %5026 }
0x1c78   :  { %6199 = vrcp.f32 %v5027_v8 }
0x1c85   :  { %v6200_v51 = vpop.eup %6199 }
0x1c86   :  { %v5029_v26 = vmul.f32 %v6200_v51, %v6198_v28 }
0x1c88   :  { %v5034_v58 = vsel %vm5019_vm7, %v5029_v26, %v5033_v54 }
0x1c89   :  { %5035 = vst [vmem:[%s7703_s22] sm:$0xff] %v5034_v58 }
0x1c8a   :  { %5040 = vsyncpa [#allocation3], 1 }
0x1c8b   :  { %5041 = vsyncpa [#allocation5], 1 }
0x1c8c   :  { %5042 = vsyncpa [#allocation8], 1 }
0x1c8d   :  { %5043 = vsyncpa [#allocation11], 1 }
0x1c8e   :  { %5044 = vsyncpa [#allocation14], 1 }
0x1c8f   :  { %5045 = vsyncpa [#allocation17], 1 }

</bundles_post_ra>
